<compile_context>
chip_gen: v5e
topology: v5e:2x2
jax: 0.10.0
libtpu: 0.0.40
codegen_flags: <defaults>
</compile_context>

<pallas_src>
import functools

import jax
import jax.numpy as jnp
import numpy as np
from jax.experimental import pallas as pl
from jax.experimental.pallas import tpu as pltpu

LEAKY_SLOPE = 0.01
BN_EPS = 1e-5


# ----------------------------------------------------------------------------
# small in-kernel helpers
# ----------------------------------------------------------------------------
def _leaky(x):
    return jnp.where(x >= 0, x, LEAKY_SLOPE * x)


def _bn_train(h, gamma, beta):
    # PyTorch BatchNorm1d training-mode semantics: batch mean, biased variance.
    mu = jnp.mean(h, axis=0, keepdims=True)
    d = h - mu
    var = jnp.mean(d * d, axis=0, keepdims=True)
    return d * jax.lax.rsqrt(var + BN_EPS) * gamma + beta


def _dot(a, b):
    return jnp.dot(a, b, preferred_element_type=jnp.float32)


# ----------------------------------------------------------------------------
# Pallas kernels (3 total)
# ----------------------------------------------------------------------------
def _encoder_kernel(xv_ref, wv_ref, bv_ref, wfcv_ref, bfcv_ref,
                    xe_ref, we_ref, be_ref, wfce_ref, bfce_ref,
                    ov_ref, oe_ref):
    """Fused vertex + edge encoders.

    Vertex:  h = xv @ blockdiag(v_in_layers) + b ; vf = leaky(h @ W_fc_v_in + b)
             vf *= occupancy (first column of V)
    Edge  :  same without the occupancy mask.
    """
    xv = xv_ref[...]
    hv = _dot(xv, wv_ref[...]) + bv_ref[...]
    vf = _leaky(_dot(hv, wfcv_ref[...]) + bfcv_ref[...])
    ov_ref[...] = vf * xv[:, 0:1]                      # occupancy mask

    xe = xe_ref[...]
    he = _dot(xe, we_ref[...]) + be_ref[...]
    oe_ref[...] = _leaky(_dot(he, wfce_ref[...]) + bfce_ref[...])


def _trunk_kernel(vf_ref, ef_ref, t_ref, wvh_ref, weh_ref, win_ref, b3_ref,
                  w1f_ref, w1t_ref, w2_ref, lvec_ref, wwide_ref, bwide_ref,
                  o_ref, *, n_layers, hd, tpe, use_bn):
    """fc_v_h + fc_e_h + fc_in + all trunk layers + merged wide projections."""
    emb_t = t_ref[...]                                  # (B, tpe)
    b3 = b3_ref[...]                                    # (8, hd): b_vh, b_eh, b_in, pad

    v_h = _leaky(_dot(vf_ref[...], wvh_ref[...]) + b3[0:1, :])
    e_h = _leaky(_dot(ef_ref[...], weh_ref[...]) + b3[1:2, :])

    # fc_in on concat([v_h, e_h, emb_t]) via split-row dots (no lane concat).
    w_in = win_ref[...]                                 # (2*hd + tpe, hd)
    f = (_dot(v_h, w_in[0:hd, :]) +
         _dot(e_h, w_in[hd:2 * hd, :]) +
         _dot(emb_t, w_in[2 * hd:2 * hd + tpe, :]) + b3[2:3, :])
    f = _leaky(f)

    acc = None
    for layer in range(n_layers):
        lv = lvec_ref[layer]                            # (8, hd): b1,g1,be1,b2,g2,be2,pad
        # Linear on concat([f, emb_t]) via split weights w1 = [w1_f ; w1_t].
        h = _dot(f, w1f_ref[layer]) + _dot(emb_t, w1t_ref[layer]) + lv[0:1, :]
        if use_bn:
            h = _bn_train(h, lv[1:2, :], lv[2:3, :])
        h = _leaky(h)
        h2 = _dot(h, w2_ref[layer]) + lv[3:4, :]
        if use_bn:
            h2 = _bn_train(h2, lv[4:5, :], lv[5:6, :])
        f = _leaky(h2)
        # wide_fc_[v|e] on concat(f_list) == sum over layers of f_l @ W_wide[l]
        contrib = _dot(f, wwide_ref[layer])
        acc = contrib if acc is None else acc + contrib

    o_ref[...] = acc + bwide_ref[...]                   # (B, K*vd + E_num*ed)


def _heads_kernel(xv_ref, wv1_ref, bv1_ref, wv2_ref, bv2_ref, wv3_ref, bv3_ref,
                  xe_ref, we1_ref, be1_ref, we2_ref, be2_ref, we3_ref, be3_ref,
                  ov_ref, oe_ref):
    """All v-heads and e-heads fused (concat-N l1, block-diag l2/l3, padded out)."""
    h = _leaky(_dot(xv_ref[...], wv1_ref[...]) + bv1_ref[...])
    h = _leaky(_dot(h, wv2_ref[...]) + bv2_ref[...])
    ov_ref[...] = _dot(h, wv3_ref[...]) + bv3_ref[...]

    g = _leaky(_dot(xe_ref[...], we1_ref[...]) + be1_ref[...])
    g = _leaky(_dot(g, we2_ref[...]) + be2_ref[...])
    oe_ref[...] = _dot(g, we3_ref[...]) + be3_ref[...]


# ----------------------------------------------------------------------------
# pallas_call wrapper: no grid, full arrays resident in VMEM
# ----------------------------------------------------------------------------
def _vmem_call(kernel, args, out_shapes, flops):
    vmem_spec = pl.BlockSpec(memory_space=pltpu.MemorySpace.VMEM)
    bytes_accessed = 4 * (sum(int(np.prod(a.shape)) for a in args) +
                          sum(int(np.prod(s.shape)) for s in out_shapes))
    return pl.pallas_call(
        kernel,
        in_specs=[vmem_spec] * len(args),
        out_specs=tuple(pl.BlockSpec(memory_space=pltpu.MemorySpace.VMEM)
                        for _ in out_shapes),
        out_shape=tuple(out_shapes),
        compiler_params=pltpu.CompilerParams(vmem_limit_bytes=32 * 1024 * 1024),
        cost_estimate=pl.CostEstimate(flops=int(flops), transcendentals=0,
                                      bytes_accessed=int(bytes_accessed)),
    )(*args)


def _mm_flops(*mkns):
    return int(sum(2 * m * k * n for (m, k, n) in mkns))


# ----------------------------------------------------------------------------
# Parameter init (deterministic, PyTorch-Linear-style uniform bounds)
# ----------------------------------------------------------------------------
def sinusoidal_embedding(n, d):
    j = jnp.arange(d, dtype=jnp.float32)
    wk = 1.0 / (10000.0 ** (2.0 * j / d))
    t = jnp.arange(n, dtype=jnp.float32)[:, None]
    emb = jnp.zeros((n, d), jnp.float32)
    emb = emb.at[:, 0::2].set(jnp.sin(t * wk[None, 0::2]))
    emb = emb.at[:, 1::2].set(jnp.cos(t * wk[None, 0::2]))
    return emb


def init_linear(key, din, dout):
    kw, kb = jax.random.split(key)
    bound = 1.0 / float(np.sqrt(din))
    w = jax.random.uniform(kw, (din, dout), jnp.float32, -bound, bound)
    b = jax.random.uniform(kb, (dout,), jnp.float32, -bound, bound)
    return w, b


def init_params(key, cfg):
    keys = iter(jax.random.split(key, 512))
    K, M = cfg["K"], cfg["M"]
    E_num = K * (K - 1) // 2
    vd, ed = cfg["v_enc_dim"], cfg["e_enc_dim"]
    hd, tpe = cfg["h_dim"], cfg["t_pe_dim"]

    p = {}
    p["t_pe"] = sinusoidal_embedding(M, tpe)
    p["v_in"] = [init_linear(next(keys), c, vd) for c in cfg["V_dims"]]
    p["fc_v_in"] = init_linear(next(keys), vd * len(cfg["V_dims"]), vd)
    p["e_in"] = [init_linear(next(keys), c, ed) for c in cfg["E_dims"]]
    p["fc_e_in"] = init_linear(next(keys), ed * len(cfg["E_dims"]), ed)
    p["fc_v_h"] = init_linear(next(keys), K * vd, hd)
    p["fc_e_h"] = init_linear(next(keys), E_num * ed, hd)
    p["fc_in"] = init_linear(next(keys), hd * 2 + tpe, hd)
    layers = []
    for _ in range(cfg["n_layers"]):
        w1, b1 = init_linear(next(keys), hd + tpe, hd)
        w2, b2 = init_linear(next(keys), hd, hd)
        g1, be1 = jnp.ones((hd,), jnp.float32), jnp.zeros((hd,), jnp.float32)
        g2, be2 = jnp.ones((hd,), jnp.float32), jnp.zeros((hd,), jnp.float32)
        layers.append((w1, b1, g1, be1, w2, b2, g2, be2))
    p["layers"] = layers
    p["wide_fc_v"] = init_linear(next(keys), hd * cfg["n_layers"], K * vd)
    p["wide_fc_e"] = init_linear(next(keys), hd * cfg["n_layers"], E_num * ed)
    p["v_out"] = [
        (init_linear(next(keys), vd, vd),
         init_linear(next(keys), vd, vd),
         init_linear(next(keys), vd, vout))
        for vout in cfg["V_dims"]
    ]
    p["e_out"] = [
        (init_linear(next(keys), ed, ed),
         init_linear(next(keys), ed, ed),
         init_linear(next(keys), ed, eout))
        for eout in cfg["E_dims"]
    ]
    return p


# ----------------------------------------------------------------------------
# One-time packing of weights into fused/block-diagonal layouts
# ----------------------------------------------------------------------------
def _block_diag(mats):
    r = sum(m.shape[0] for m in mats)
    c = sum(m.shape[1] for m in mats)
    out = jnp.zeros((r, c), jnp.float32)
    ro = co = 0
    for m in mats:
        out = out.at[ro:ro + m.shape[0], co:co + m.shape[1]].set(m)
        ro += m.shape[0]
        co += m.shape[1]
    return out


def _pad_rows(x, rows):
    return jnp.pad(x, ((0, rows - x.shape[0]), (0, 0)))


def _lane_pad(n):
    return ((n + 127) // 128) * 128


def pack_params(p, cfg):
    K = cfg["K"]
    E_num = K * (K - 1) // 2
    vd, ed = cfg["v_enc_dim"], cfg["e_enc_dim"]
    hd, tpe = cfg["h_dim"], cfg["t_pe_dim"]
    L = cfg["n_layers"]

    q = {"t_pe": p["t_pe"]}

    # --- encoders: block-diagonal per-slice weights, concatenated biases ---
    q["Wv_bd"] = _block_diag([w for (w, _) in p["v_in"]])            # (sumV, nV*vd)
    q["bv_cat"] = jnp.concatenate([b for (_, b) in p["v_in"]])[None, :]
    wfcv, bfcv = p["fc_v_in"]
    q["W_fcv"], q["b_fcv"] = wfcv, bfcv[None, :]
    q["We_bd"] = _block_diag([w for (w, _) in p["e_in"]])            # (sumE, nE*ed)
    q["be_cat"] = jnp.concatenate([b for (_, b) in p["e_in"]])[None, :]
    wfce, bfce = p["fc_e_in"]
    q["W_fce"], q["b_fce"] = wfce, bfce[None, :]

    # --- trunk ---
    w_vh, b_vh = p["fc_v_h"]
    w_eh, b_eh = p["fc_e_h"]
    w_in, b_in = p["fc_in"]
    q["W_vh"], q["W_eh"], q["W_in"] = w_vh, w_eh, w_in
    q["b3"] = _pad_rows(jnp.stack([b_vh, b_eh, b_in], axis=0), 8)    # (8, hd)

    w_wide_v, b_wide_v = p["wide_fc_v"]                              # (hd*L, K*vd)
    w_wide_e, b_wide_e = p["wide_fc_e"]                              # (hd*L, E_num*ed)
    w_wide = jnp.concatenate([w_wide_v, w_wide_e], axis=1)           # (hd*L, wide_n)

    w1f, w1t, w2s, lvecs, wwide = [], [], [], [], []
    for l, (w1, b1, g1, be1, w2, b2, g2, be2) in enumerate(p["layers"]):
        w1f.append(w1[:hd, :])                                       # f part
        w1t.append(w1[hd:hd + tpe, :])                               # emb_t part
        w2s.append(w2)
        lvecs.append(_pad_rows(jnp.stack([b1, g1, be1, b2, g2, be2], axis=0), 8))
        wwide.append(w_wide[l * hd:(l + 1) * hd, :])
    q["w1f"] = jnp.stack(w1f)                                        # (L, hd, hd)
    q["w1t"] = jnp.stack(w1t)                                        # (L, tpe, hd)
    q["w2"] = jnp.stack(w2s)                                         # (L, hd, hd)
    q["lvec"] = jnp.stack(lvecs)                                     # (L, 8, hd)
    q["wwide"] = jnp.stack(wwide)                                    # (L, hd, wide_n)
    q["bwide"] = jnp.concatenate([b_wide_v, b_wide_e])[None, :]      # (1, wide_n)

    # --- output heads: concat-N l1, block-diag l2, block-diag + lane-pad l3 ---
    def pack_heads(heads, out_dims):
        w1 = jnp.concatenate([l1[0] for (l1, _, _) in heads], axis=1)
        b1 = jnp.concatenate([l1[1] for (l1, _, _) in heads])[None, :]
        w2 = _block_diag([l2[0] for (_, l2, _) in heads])
        b2 = jnp.concatenate([l2[1] for (_, l2, _) in heads])[None, :]
        w3 = _block_diag([l3[0] for (_, _, l3) in heads])
        b3 = jnp.concatenate([l3[1] for (_, _, l3) in heads])[None, :]
        pad = _lane_pad(sum(out_dims)) - w3.shape[1]
        w3 = jnp.pad(w3, ((0, 0), (0, pad)))
        b3 = jnp.pad(b3, ((0, 0), (0, pad)))
        return w1, b1, w2, b2, w3, b3

    (q["Wv1"], q["bv1"], q["Wv2"], q["bv2"], q["Wv3"], q["bv3"]) = \
        pack_heads(p["v_out"], cfg["V_dims"])
    (q["We1"], q["be1"], q["We2"], q["be2"], q["We3"], q["be3"]) = \
        pack_heads(p["e_out"], cfg["E_dims"])
    return q


# ----------------------------------------------------------------------------
# Forward pass: 3 pallas_calls + trivial reshape/slice glue
# ----------------------------------------------------------------------------
def forward(packed, cfg, V_noisy, E_noisy, t):
    B, K, _ = V_noisy.shape
    E_num = K * (K - 1) // 2
    vd, ed = cfg["v_enc_dim"], cfg["e_enc_dim"]
    hd, tpe = cfg["h_dim"], cfg["t_pe_dim"]
    L = cfg["n_layers"]
    nV, nE = len(cfg["V_dims"]), len(cfg["E_dims"])
    sumV, sumE = sum(cfg["V_dims"]), sum(cfg["E_dims"])
    wide_n = K * vd + E_num * ed
    padV, padE = _lane_pad(sumV), _lane_pad(sumE)

    emb_t = packed["t_pe"][t]                                        # (B, tpe)
    xv = V_noisy.reshape(B * K, sumV)
    xe = E_noisy.reshape(B * E_num, sumE)

    # ---- kernel 1: fused encoders ----
    enc_args = (xv, packed["Wv_bd"], packed["bv_cat"], packed["W_fcv"], packed["b_fcv"],
                xe, packed["We_bd"], packed["be_cat"], packed["W_fce"], packed["b_fce"])
    enc_flops = _mm_flops((B * K, sumV, nV * vd), (B * K, nV * vd, vd),
                          (B * E_num, sumE, nE * ed), (B * E_num, nE * ed, ed))
    v_f, e_f = _vmem_call(
        _encoder_kernel, enc_args,
        (jax.ShapeDtypeStruct((B * K, vd), jnp.float32),
         jax.ShapeDtypeStruct((B * E_num, ed), jnp.float32)),
        enc_flops)

    # ---- kernel 2: trunk (fc_v_h + fc_e_h + fc_in + layers + wide) ----
    trunk_args = (v_f.reshape(B, K * vd), e_f.reshape(B, E_num * ed), emb_t,
                  packed["W_vh"], packed["W_eh"], packed["W_in"], packed["b3"],
                  packed["w1f"], packed["w1t"], packed["w2"], packed["lvec"],
                  packed["wwide"], packed["bwide"])
    trunk_flops = _mm_flops((B, K * vd, hd), (B, E_num * ed, hd), (B, 2 * hd + tpe, hd)) \
        + L * _mm_flops((B, hd, hd), (B, tpe, hd), (B, hd, hd), (B, hd, wide_n))
    trunk_kernel = functools.partial(_trunk_kernel, n_layers=L, hd=hd, tpe=tpe,
                                     use_bn=cfg["use_bn"])
    (wide,) = _vmem_call(
        trunk_kernel, trunk_args,
        (jax.ShapeDtypeStruct((B, wide_n), jnp.float32),),
        trunk_flops)

    v_f2 = wide[:, :K * vd].reshape(B * K, vd)
    e_f2 = wide[:, K * vd:].reshape(B * E_num, ed)

    # ---- kernel 3: fused output heads ----
    head_args = (v_f2, packed["Wv1"], packed["bv1"], packed["Wv2"], packed["bv2"],
                 packed["Wv3"], packed["bv3"],
                 e_f2, packed["We1"], packed["be1"], packed["We2"], packed["be2"],
                 packed["We3"], packed["be3"])
    head_flops = _mm_flops((B * K, vd, nV * vd), (B * K, nV * vd, nV * vd),
                           (B * K, nV * vd, padV),
                           (B * E_num, ed, nE * ed), (B * E_num, nE * ed, nE * ed),
                           (B * E_num, nE * ed, padE))
    v_pad, e_pad = _vmem_call(
        _heads_kernel, head_args,
        (jax.ShapeDtypeStruct((B * K, padV), jnp.float32),
         jax.ShapeDtypeStruct((B * E_num, padE), jnp.float32)),
        head_flops)

    v_out = v_pad[:, :sumV].reshape(B, K, sumV)
    e_out = e_pad[:, :sumE].reshape(B, E_num, sumE)
    return v_out, e_out


# ----------------------------------------------------------------------------
# Pure-JAX reference (mirrors the PyTorch module layer-by-layer) for checking
# ----------------------------------------------------------------------------
def forward_ref(params, cfg, V_noisy, E_noisy, t):
    B, K, _ = V_noisy.shape
    E_num = K * (K - 1) // 2
    vd, ed = cfg["v_enc_dim"], cfg["e_enc_dim"]
    leaky = lambda x: jnp.where(x >= 0, x, LEAKY_SLOPE * x)

    def bn(h, g, b):
        mu = jnp.mean(h, 0, keepdims=True)
        var = jnp.mean((h - mu) ** 2, 0, keepdims=True)
        return (h - mu) * jax.lax.rsqrt(var + BN_EPS) * g + b

    emb_t = params["t_pe"][t]
    v_occ = V_noisy[..., :1]
    cur, v_f = 0, []
    for i, c in enumerate(cfg["V_dims"]):
        w, b = params["v_in"][i]
        v_f.append(V_noisy[..., cur:cur + c] @ w + b)
        cur += c
    w, b = params["fc_v_in"]
    v_f = leaky(jnp.concatenate(v_f, -1) @ w + b) * v_occ
    cur, e_f = 0, []
    for i, c in enumerate(cfg["E_dims"]):
        w, b = params["e_in"][i]
        e_f.append(E_noisy[..., cur:cur + c] @ w + b)
        cur += c
    w, b = params["fc_e_in"]
    e_f = leaky(jnp.concatenate(e_f, -1) @ w + b)
    w, b = params["fc_v_h"]
    v_h = leaky(v_f.reshape(B, -1) @ w + b)
    w, b = params["fc_e_h"]
    e_h = leaky(e_f.reshape(B, -1) @ w + b)
    w, b = params["fc_in"]
    f = leaky(jnp.concatenate([v_h, e_h, emb_t], -1) @ w + b)
    f_list = []
    for (w1, b1, g1, be1, w2, b2, g2, be2) in params["layers"]:
        h = jnp.concatenate([f, emb_t], -1) @ w1 + b1
        if cfg["use_bn"]:
            h = bn(h, g1, be1)
        h = leaky(h)
        h2 = h @ w2 + b2
        if cfg["use_bn"]:
            h2 = bn(h2, g2, be2)
        f = leaky(h2)
        f_list.append(f)
    fcat = jnp.concatenate(f_list, -1)
    w, b = params["wide_fc_v"]
    v_f2 = (fcat @ w + b).reshape(B * K, vd)
    w, b = params["wide_fc_e"]
    e_f2 = (fcat @ w + b).reshape(B * E_num, ed)
    v_outs, e_outs = [], []
    for (l1, l2, l3) in params["v_out"]:
        h = leaky(v_f2 @ l1[0] + l1[1])
        h = leaky(h @ l2[0] + l2[1])
        v_outs.append(h @ l3[0] + l3[1])
    for (l1, l2, l3) in params["e_out"]:
        h = leaky(e_f2 @ l1[0] + l1[1])
        h = leaky(h @ l2[0] + l2[1])
        e_outs.append(h @ l3[0] + l3[1])
    v_out = jnp.concatenate(v_outs, -1).reshape(B, K, sum(cfg["V_dims"]))
    e_out = jnp.concatenate(e_outs, -1).reshape(B, E_num, sum(cfg["E_dims"]))
    return v_out, e_out


# TODO(synk): scatter_trilist_to_mtx / tri_ind_to_full_ind are not used by
# forward() in the reference module, so they are intentionally not ported.

# ----------------------------------------------------------------------------
if __name__ == "__main__":
    cfg = dict(
        K=4, M=8,
        t_pe_dim=32, v_enc_dim=64, e_enc_dim=32,
        V_dims=[1, 3, 3, 16], E_dims=[3, 6, 4],
        h_dim=128, n_layers=2, use_bn=True,
    )
    B = 2
    K = cfg["K"]
    E_num = K * (K - 1) // 2

    params = init_params(jax.random.PRNGKey(42), cfg)
    packed = pack_params(params, cfg)

    key = jax.random.PRNGKey(0)
    k1, k2, k3 = jax.random.split(key, 3)
    V_noisy = jax.random.normal(k1, (B, K, sum(cfg["V_dims"])), jnp.float32)      # (2, 4, 23)
    E_noisy = jax.random.normal(k2, (B, E_num, sum(cfg["E_dims"])), jnp.float32)  # (2, 6, 13)
    t = jax.random.randint(k3, (B,), 0, cfg["M"])                                 # (2,)

    fwd = jax.jit(lambda p, V, E, tt: forward(p, cfg, V, E, tt))
    v_out, e_out = fwd(packed, V_noisy, E_noisy, t)
    jax.block_until_ready((v_out, e_out))

    assert v_out.shape == (B, K, sum(cfg["V_dims"]))
    assert e_out.shape == (B, E_num, sum(cfg["E_dims"]))
    assert bool(jnp.all(jnp.isfinite(v_out))) and bool(jnp.all(jnp.isfinite(e_out)))

    # correctness check vs. plain-JAX reference (loose tol: matmul paths differ)
    v_ref, e_ref = forward_ref(params, cfg, V_noisy, E_noisy, t)
    np.testing.assert_allclose(np.asarray(v_out), np.asarray(v_ref), rtol=5e-2, atol=1e-2)
    np.testing.assert_allclose(np.asarray(e_out), np.asarray(e_ref), rtol=5e-2, atol=1e-2)

    print("KERNEL_OK")
</pallas_src>

<mosaic_0001>
module attributes {stable_mosaic.version = 11 : i64} {
  func.func @_encoder_kernel(%arg0: memref<8x23xf32, #tpu.memory_space<vmem>>, %arg1: memref<23x256xf32, #tpu.memory_space<vmem>>, %arg2: memref<1x256xf32, #tpu.memory_space<vmem>>, %arg3: memref<256x64xf32, #tpu.memory_space<vmem>>, %arg4: memref<1x64xf32, #tpu.memory_space<vmem>>, %arg5: memref<12x13xf32, #tpu.memory_space<vmem>>, %arg6: memref<13x96xf32, #tpu.memory_space<vmem>>, %arg7: memref<1x96xf32, #tpu.memory_space<vmem>>, %arg8: memref<96x32xf32, #tpu.memory_space<vmem>>, %arg9: memref<1x32xf32, #tpu.memory_space<vmem>>, %arg10: memref<8x64xf32, #tpu.memory_space<vmem>>, %arg11: memref<12x32xf32, #tpu.memory_space<vmem>>) attributes {dimension_semantics = [], scalar_prefetch = 0 : i64, scratch_operands = 0 : i64, tpu.core_type = #tpu.core_type<tc>} {
    %c0 = arith.constant 0 : index
    %c0_0 = arith.constant 0 : index
    %0 = vector.load %arg0[%c0, %c0_0] : memref<8x23xf32, #tpu.memory_space<vmem>>, vector<8x23xf32>
    %c0_1 = arith.constant 0 : index
    %c0_2 = arith.constant 0 : index
    %1 = vector.load %arg1[%c0_1, %c0_2] : memref<23x256xf32, #tpu.memory_space<vmem>>, vector<23x256xf32>
    %cst = arith.constant dense<0.000000e+00> : vector<8x256xf32>
    %2 = tpu.matmul %0, %1, %cst {dimension_numbers = #tpu.dot_dimension_numbers<[1], [0], [0], [1], [0, 0, 1, 1], [], []>} : vector<8x23xf32>, vector<23x256xf32>, vector<8x256xf32> -> vector<8x256xf32>
    %c0_3 = arith.constant 0 : index
    %c0_4 = arith.constant 0 : index
    %3 = vector.load %arg2[%c0_3, %c0_4] : memref<1x256xf32, #tpu.memory_space<vmem>>, vector<1x256xf32>
    %4 = vector.broadcast %3 : vector<1x256xf32> to vector<8x256xf32>
    %5 = arith.addf %2, %4 : vector<8x256xf32>
    %c0_5 = arith.constant 0 : index
    %c0_6 = arith.constant 0 : index
    %6 = vector.load %arg3[%c0_5, %c0_6] : memref<256x64xf32, #tpu.memory_space<vmem>>, vector<256x64xf32>
    %cst_7 = arith.constant dense<0.000000e+00> : vector<8x64xf32>
    %7 = tpu.matmul %5, %6, %cst_7 {dimension_numbers = #tpu.dot_dimension_numbers<[1], [0], [0], [1], [0, 0, 1, 1], [], []>} : vector<8x256xf32>, vector<256x64xf32>, vector<8x64xf32> -> vector<8x64xf32>
    %c0_8 = arith.constant 0 : index
    %c0_9 = arith.constant 0 : index
    %8 = vector.load %arg4[%c0_8, %c0_9] : memref<1x64xf32, #tpu.memory_space<vmem>>, vector<1x64xf32>
    %9 = vector.broadcast %8 : vector<1x64xf32> to vector<8x64xf32>
    %10 = arith.addf %7, %9 : vector<8x64xf32>
    %cst_10 = arith.constant 0.000000e+00 : f32
    %11 = vector.broadcast %cst_10 : f32 to vector<8x64xf32>
    %12 = arith.cmpf oge, %10, %11 : vector<8x64xf32>
    %cst_11 = arith.constant 0.00999999977 : f32
    %13 = vector.broadcast %cst_11 : f32 to vector<8x64xf32>
    %14 = arith.mulf %13, %10 : vector<8x64xf32>
    %15 = arith.select %12, %10, %14 : vector<8x64xi1>, vector<8x64xf32>
    %16 = vector.extract_strided_slice %0 {offsets = [0, 0], sizes = [8, 1], strides = [1, 1]} : vector<8x23xf32> to vector<8x1xf32>
    %17 = vector.broadcast %16 : vector<8x1xf32> to vector<8x64xf32>
    %18 = arith.mulf %15, %17 : vector<8x64xf32>
    %c0_12 = arith.constant 0 : index
    %c0_13 = arith.constant 0 : index
    %19 = vector.load %arg10[%c0_12, %c0_13] : memref<8x64xf32, #tpu.memory_space<vmem>>, vector<8x64xf32>
    tpu.vector_store %arg10[%c0_12, %c0_13], %18 {strides = array<i32>} : memref<8x64xf32, #tpu.memory_space<vmem>>, vector<8x64xf32>,
    %c0_14 = arith.constant 0 : index
    %c0_15 = arith.constant 0 : index
    %20 = vector.load %arg5[%c0_14, %c0_15] : memref<12x13xf32, #tpu.memory_space<vmem>>, vector<12x13xf32>
    %c0_16 = arith.constant 0 : index
    %c0_17 = arith.constant 0 : index
    %21 = vector.load %arg6[%c0_16, %c0_17] : memref<13x96xf32, #tpu.memory_space<vmem>>, vector<13x96xf32>
    %cst_18 = arith.constant dense<0.000000e+00> : vector<12x96xf32>
    %22 = tpu.matmul %20, %21, %cst_18 {dimension_numbers = #tpu.dot_dimension_numbers<[1], [0], [0], [1], [0, 0, 1, 1], [], []>} : vector<12x13xf32>, vector<13x96xf32>, vector<12x96xf32> -> vector<12x96xf32>
    %c0_19 = arith.constant 0 : index
    %c0_20 = arith.constant 0 : index
    %23 = vector.load %arg7[%c0_19, %c0_20] : memref<1x96xf32, #tpu.memory_space<vmem>>, vector<1x96xf32>
    %24 = vector.broadcast %23 : vector<1x96xf32> to vector<12x96xf32>
    %25 = arith.addf %22, %24 : vector<12x96xf32>
    %c0_21 = arith.constant 0 : index
    %c0_22 = arith.constant 0 : index
    %26 = vector.load %arg8[%c0_21, %c0_22] : memref<96x32xf32, #tpu.memory_space<vmem>>, vector<96x32xf32>
    %cst_23 = arith.constant dense<0.000000e+00> : vector<12x32xf32>
    %27 = tpu.matmul %25, %26, %cst_23 {dimension_numbers = #tpu.dot_dimension_numbers<[1], [0], [0], [1], [0, 0, 1, 1], [], []>} : vector<12x96xf32>, vector<96x32xf32>, vector<12x32xf32> -> vector<12x32xf32>
    %c0_24 = arith.constant 0 : index
    %c0_25 = arith.constant 0 : index
    %28 = vector.load %arg9[%c0_24, %c0_25] : memref<1x32xf32, #tpu.memory_space<vmem>>, vector<1x32xf32>
    %29 = vector.broadcast %28 : vector<1x32xf32> to vector<12x32xf32>
    %30 = arith.addf %27, %29 : vector<12x32xf32>
    %cst_26 = arith.constant 0.000000e+00 : f32
    %31 = vector.broadcast %cst_26 : f32 to vector<12x32xf32>
    %32 = arith.cmpf oge, %30, %31 : vector<12x32xf32>
    %cst_27 = arith.constant 0.00999999977 : f32
    %33 = vector.broadcast %cst_27 : f32 to vector<12x32xf32>
    %34 = arith.mulf %33, %30 : vector<12x32xf32>
    %35 = arith.select %32, %30, %34 : vector<12x32xi1>, vector<12x32xf32>
    %c0_28 = arith.constant 0 : index
    %c0_29 = arith.constant 0 : index
    %36 = vector.load %arg11[%c0_28, %c0_29] : memref<12x32xf32, #tpu.memory_space<vmem>>, vector<12x32xf32>
    tpu.vector_store %arg11[%c0_28, %c0_29], %35 {strides = array<i32>} : memref<12x32xf32, #tpu.memory_space<vmem>>, vector<12x32xf32>,
    return
  }
}

module attributes {stable_mosaic.version = 11 : i64} {
  func.func @_trunk_kernel(%arg0: memref<2x256xf32, #tpu.memory_space<vmem>>, %arg1: memref<2x192xf32, #tpu.memory_space<vmem>>, %arg2: memref<2x32xf32, #tpu.memory_space<vmem>>, %arg3: memref<256x128xf32, #tpu.memory_space<vmem>>, %arg4: memref<192x128xf32, #tpu.memory_space<vmem>>, %arg5: memref<288x128xf32, #tpu.memory_space<vmem>>, %arg6: memref<8x128xf32, #tpu.memory_space<vmem>>, %arg7: memref<2x128x128xf32, #tpu.memory_space<vmem>>, %arg8: memref<2x32x128xf32, #tpu.memory_space<vmem>>, %arg9: memref<2x128x128xf32, #tpu.memory_space<vmem>>, %arg10: memref<2x8x128xf32, #tpu.memory_space<vmem>>, %arg11: memref<2x128x448xf32, #tpu.memory_space<vmem>>, %arg12: memref<1x448xf32, #tpu.memory_space<vmem>>, %arg13: memref<2x448xf32, #tpu.memory_space<vmem>>) attributes {dimension_semantics = [], scalar_prefetch = 0 : i64, scratch_operands = 0 : i64, tpu.core_type = #tpu.core_type<tc>} {
    %c0 = arith.constant 0 : index
    %c0_0 = arith.constant 0 : index
    %0 = vector.load %arg2[%c0, %c0_0] : memref<2x32xf32, #tpu.memory_space<vmem>>, vector<2x32xf32>
    %c0_1 = arith.constant 0 : index
    %c0_2 = arith.constant 0 : index
    %1 = vector.load %arg6[%c0_1, %c0_2] : memref<8x128xf32, #tpu.memory_space<vmem>>, vector<8x128xf32>
    %c0_3 = arith.constant 0 : index
    %c0_4 = arith.constant 0 : index
    %2 = vector.load %arg0[%c0_3, %c0_4] : memref<2x256xf32, #tpu.memory_space<vmem>>, vector<2x256xf32>
    %c0_5 = arith.constant 0 : index
    %c0_6 = arith.constant 0 : index
    %3 = vector.load %arg3[%c0_5, %c0_6] : memref<256x128xf32, #tpu.memory_space<vmem>>, vector<256x128xf32>
    %cst = arith.constant dense<0.000000e+00> : vector<2x128xf32>
    %4 = tpu.matmul %2, %3, %cst {dimension_numbers = #tpu.dot_dimension_numbers<[1], [0], [0], [1], [0, 0, 1, 1], [], []>} : vector<2x256xf32>, vector<256x128xf32>, vector<2x128xf32> -> vector<2x128xf32>
    %5 = vector.extract_strided_slice %1 {offsets = [0, 0], sizes = [1, 128], strides = [1, 1]} : vector<8x128xf32> to vector<1x128xf32>
    %6 = vector.broadcast %5 : vector<1x128xf32> to vector<2x128xf32>
    %7 = arith.addf %4, %6 : vector<2x128xf32>
    %cst_7 = arith.constant 0.000000e+00 : f32
    %8 = vector.broadcast %cst_7 : f32 to vector<2x128xf32>
    %9 = arith.cmpf oge, %7, %8 : vector<2x128xf32>
    %cst_8 = arith.constant 0.00999999977 : f32
    %10 = vector.broadcast %cst_8 : f32 to vector<2x128xf32>
    %11 = arith.mulf %10, %7 : vector<2x128xf32>
    %12 = arith.select %9, %7, %11 : vector<2x128xi1>, vector<2x128xf32>
    %c0_9 = arith.constant 0 : index
    %c0_10 = arith.constant 0 : index
    %13 = vector.load %arg1[%c0_9, %c0_10] : memref<2x192xf32, #tpu.memory_space<vmem>>, vector<2x192xf32>
    %c0_11 = arith.constant 0 : index
    %c0_12 = arith.constant 0 : index
    %14 = vector.load %arg4[%c0_11, %c0_12] : memref<192x128xf32, #tpu.memory_space<vmem>>, vector<192x128xf32>
    %cst_13 = arith.constant dense<0.000000e+00> : vector<2x128xf32>
    %15 = tpu.matmul %13, %14, %cst_13 {dimension_numbers = #tpu.dot_dimension_numbers<[1], [0], [0], [1], [0, 0, 1, 1], [], []>} : vector<2x192xf32>, vector<192x128xf32>, vector<2x128xf32> -> vector<2x128xf32>
    %16 = vector.extract_strided_slice %1 {offsets = [1, 0], sizes = [1, 128], strides = [1, 1]} : vector<8x128xf32> to vector<1x128xf32>
    %17 = vector.broadcast %16 : vector<1x128xf32> to vector<2x128xf32>
    %18 = arith.addf %15, %17 : vector<2x128xf32>
    %cst_14 = arith.constant 0.000000e+00 : f32
    %19 = vector.broadcast %cst_14 : f32 to vector<2x128xf32>
    %20 = arith.cmpf oge, %18, %19 : vector<2x128xf32>
    %cst_15 = arith.constant 0.00999999977 : f32
    %21 = vector.broadcast %cst_15 : f32 to vector<2x128xf32>
    %22 = arith.mulf %21, %18 : vector<2x128xf32>
    %23 = arith.select %20, %18, %22 : vector<2x128xi1>, vector<2x128xf32>
    %c0_16 = arith.constant 0 : index
    %c0_17 = arith.constant 0 : index
    %24 = vector.load %arg5[%c0_16, %c0_17] : memref<288x128xf32, #tpu.memory_space<vmem>>, vector<288x128xf32>
    %25 = vector.extract_strided_slice %24 {offsets = [0, 0], sizes = [128, 128], strides = [1, 1]} : vector<288x128xf32> to vector<128x128xf32>
    %cst_18 = arith.constant dense<0.000000e+00> : vector<2x128xf32>
    %26 = tpu.matmul %12, %25, %cst_18 {dimension_numbers = #tpu.dot_dimension_numbers<[1], [0], [0], [1], [0, 0, 1, 1], [], []>} : vector<2x128xf32>, vector<128x128xf32>, vector<2x128xf32> -> vector<2x128xf32>
    %27 = vector.extract_strided_slice %24 {offsets = [128, 0], sizes = [128, 128], strides = [1, 1]} : vector<288x128xf32> to vector<128x128xf32>
    %cst_19 = arith.constant dense<0.000000e+00> : vector<2x128xf32>
    %28 = tpu.matmul %23, %27, %cst_19 {dimension_numbers = #tpu.dot_dimension_numbers<[1], [0], [0], [1], [0, 0, 1, 1], [], []>} : vector<2x128xf32>, vector<128x128xf32>, vector<2x128xf32> -> vector<2x128xf32>
    %29 = arith.addf %26, %28 : vector<2x128xf32>
    %30 = vector.extract_strided_slice %24 {offsets = [256, 0], sizes = [32, 128], strides = [1, 1]} : vector<288x128xf32> to vector<32x128xf32>
    %cst_20 = arith.constant dense<0.000000e+00> : vector<2x128xf32>
    %31 = tpu.matmul %0, %30, %cst_20 {dimension_numbers = #tpu.dot_dimension_numbers<[1], [0], [0], [1], [0, 0, 1, 1], [], []>} : vector<2x32xf32>, vector<32x128xf32>, vector<2x128xf32> -> vector<2x128xf32>
    %32 = arith.addf %29, %31 : vector<2x128xf32>
    %33 = vector.extract_strided_slice %1 {offsets = [2, 0], sizes = [1, 128], strides = [1, 1]} : vector<8x128xf32> to vector<1x128xf32>
    %34 = vector.broadcast %33 : vector<1x128xf32> to vector<2x128xf32>
    %35 = arith.addf %32, %34 : vector<2x128xf32>
    %cst_21 = arith.constant 0.000000e+00 : f32
    %36 = vector.broadcast %cst_21 : f32 to vector<2x128xf32>
    %37 = arith.cmpf oge, %35, %36 : vector<2x128xf32>
    %cst_22 = arith.constant 0.00999999977 : f32
    %38 = vector.broadcast %cst_22 : f32 to vector<2x128xf32>
    %39 = arith.mulf %38, %35 : vector<2x128xf32>
    %40 = arith.select %37, %35, %39 : vector<2x128xi1>, vector<2x128xf32>
    %c0_23 = arith.constant 0 : index
    %c0_24 = arith.constant 0 : index
    %c0_25 = arith.constant 0 : index
    %41 = vector.load %arg10[%c0_23, %c0_24, %c0_25] : memref<2x8x128xf32, #tpu.memory_space<vmem>>, vector<1x8x128xf32>
    %42 = vector.shape_cast %41 : vector<1x8x128xf32> to vector<8x128xf32>
    %c0_26 = arith.constant 0 : index
    %c0_27 = arith.constant 0 : index
    %c0_28 = arith.constant 0 : index
    %43 = vector.load %arg7[%c0_26, %c0_27, %c0_28] : memref<2x128x128xf32, #tpu.memory_space<vmem>>, vector<1x128x128xf32>
    %44 = vector.shape_cast %43 : vector<1x128x128xf32> to vector<128x128xf32>
    %cst_29 = arith.constant dense<0.000000e+00> : vector<2x128xf32>
    %45 = tpu.matmul %40, %44, %cst_29 {dimension_numbers = #tpu.dot_dimension_numbers<[1], [0], [0], [1], [0, 0, 1, 1], [], []>} : vector<2x128xf32>, vector<128x128xf32>, vector<2x128xf32> -> vector<2x128xf32>
    %c0_30 = arith.constant 0 : index
    %c0_31 = arith.constant 0 : index
    %c0_32 = arith.constant 0 : index
    %46 = vector.load %arg8[%c0_30, %c0_31, %c0_32] : memref<2x32x128xf32, #tpu.memory_space<vmem>>, vector<1x32x128xf32>
    %47 = vector.shape_cast %46 : vector<1x32x128xf32> to vector<32x128xf32>
    %cst_33 = arith.constant dense<0.000000e+00> : vector<2x128xf32>
    %48 = tpu.matmul %0, %47, %cst_33 {dimension_numbers = #tpu.dot_dimension_numbers<[1], [0], [0], [1], [0, 0, 1, 1], [], []>} : vector<2x32xf32>, vector<32x128xf32>, vector<2x128xf32> -> vector<2x128xf32>
    %49 = arith.addf %45, %48 : vector<2x128xf32>
    %50 = vector.extract_strided_slice %42 {offsets = [0, 0], sizes = [1, 128], strides = [1, 1]} : vector<8x128xf32> to vector<1x128xf32>
    %51 = vector.broadcast %50 : vector<1x128xf32> to vector<2x128xf32>
    %52 = arith.addf %49, %51 : vector<2x128xf32>
    %53 = vector.extract_strided_slice %42 {offsets = [1, 0], sizes = [1, 128], strides = [1, 1]} : vector<8x128xf32> to vector<1x128xf32>
    %54 = vector.extract_strided_slice %42 {offsets = [2, 0], sizes = [1, 128], strides = [1, 1]} : vector<8x128xf32> to vector<1x128xf32>
    %cst_34 = arith.constant dense<0.000000e+00> : vector<128xf32>
    %55 = vector.multi_reduction <add>, %52, %cst_34 [0] : vector<2x128xf32> to vector<128xf32>
    %56 = vector.shape_cast %55 : vector<128xf32> to vector<1x128xf32>
    %cst_35 = arith.constant 2.000000e+00 : f32
    %57 = vector.broadcast %cst_35 : f32 to vector<1x128xf32>
    %58 = arith.divf %56, %57 : vector<1x128xf32>
    %59 = vector.broadcast %58 : vector<1x128xf32> to vector<2x128xf32>
    %60 = arith.subf %52, %59 : vector<2x128xf32>
    %61 = arith.mulf %60, %60 : vector<2x128xf32>
    %cst_36 = arith.constant dense<0.000000e+00> : vector<128xf32>
    %62 = vector.multi_reduction <add>, %61, %cst_36 [0] : vector<2x128xf32> to vector<128xf32>
    %63 = vector.shape_cast %62 : vector<128xf32> to vector<1x128xf32>
    %cst_37 = arith.constant 2.000000e+00 : f32
    %64 = vector.broadcast %cst_37 : f32 to vector<1x128xf32>
    %65 = arith.divf %63, %64 : vector<1x128xf32>
    %cst_38 = arith.constant 9.99999974E-6 : f32
    %66 = vector.broadcast %cst_38 : f32 to vector<1x128xf32>
    %67 = arith.addf %65, %66 : vector<1x128xf32>
    %68 = math.rsqrt %67 : vector<1x128xf32>
    %69 = vector.broadcast %68 : vector<1x128xf32> to vector<2x128xf32>
    %70 = arith.mulf %60, %69 : vector<2x128xf32>
    %71 = vector.broadcast %53 : vector<1x128xf32> to vector<2x128xf32>
    %72 = arith.mulf %70, %71 : vector<2x128xf32>
    %73 = vector.broadcast %54 : vector<1x128xf32> to vector<2x128xf32>
    %74 = arith.addf %72, %73 : vector<2x128xf32>
    %cst_39 = arith.constant 0.000000e+00 : f32
    %75 = vector.broadcast %cst_39 : f32 to vector<2x128xf32>
    %76 = arith.cmpf oge, %74, %75 : vector<2x128xf32>
    %cst_40 = arith.constant 0.00999999977 : f32
    %77 = vector.broadcast %cst_40 : f32 to vector<2x128xf32>
    %78 = arith.mulf %77, %74 : vector<2x128xf32>
    %79 = arith.select %76, %74, %78 : vector<2x128xi1>, vector<2x128xf32>
    %c0_41 = arith.constant 0 : index
    %c0_42 = arith.constant 0 : index
    %c0_43 = arith.constant 0 : index
    %80 = vector.load %arg9[%c0_41, %c0_42, %c0_43] : memref<2x128x128xf32, #tpu.memory_space<vmem>>, vector<1x128x128xf32>
    %81 = vector.shape_cast %80 : vector<1x128x128xf32> to vector<128x128xf32>
    %cst_44 = arith.constant dense<0.000000e+00> : vector<2x128xf32>
    %82 = tpu.matmul %79, %81, %cst_44 {dimension_numbers = #tpu.dot_dimension_numbers<[1], [0], [0], [1], [0, 0, 1, 1], [], []>} : vector<2x128xf32>, vector<128x128xf32>, vector<2x128xf32> -> vector<2x128xf32>
    %83 = vector.extract_strided_slice %42 {offsets = [3, 0], sizes = [1, 128], strides = [1, 1]} : vector<8x128xf32> to vector<1x128xf32>
    %84 = vector.broadcast %83 : vector<1x128xf32> to vector<2x128xf32>
    %85 = arith.addf %82, %84 : vector<2x128xf32>
    %86 = vector.extract_strided_slice %42 {offsets = [4, 0], sizes = [1, 128], strides = [1, 1]} : vector<8x128xf32> to vector<1x128xf32>
    %87 = vector.extract_strided_slice %42 {offsets = [5, 0], sizes = [1, 128], strides = [1, 1]} : vector<8x128xf32> to vector<1x128xf32>
    %cst_45 = arith.constant dense<0.000000e+00> : vector<128xf32>
    %88 = vector.multi_reduction <add>, %85, %cst_45 [0] : vector<2x128xf32> to vector<128xf32>
    %89 = vector.shape_cast %88 : vector<128xf32> to vector<1x128xf32>
    %cst_46 = arith.constant 2.000000e+00 : f32
    %90 = vector.broadcast %cst_46 : f32 to vector<1x128xf32>
    %91 = arith.divf %89, %90 : vector<1x128xf32>
    %92 = vector.broadcast %91 : vector<1x128xf32> to vector<2x128xf32>
    %93 = arith.subf %85, %92 : vector<2x128xf32>
    %94 = arith.mulf %93, %93 : vector<2x128xf32>
    %cst_47 = arith.constant dense<0.000000e+00> : vector<128xf32>
    %95 = vector.multi_reduction <add>, %94, %cst_47 [0] : vector<2x128xf32> to vector<128xf32>
    %96 = vector.shape_cast %95 : vector<128xf32> to vector<1x128xf32>
    %cst_48 = arith.constant 2.000000e+00 : f32
    %97 = vector.broadcast %cst_48 : f32 to vector<1x128xf32>
    %98 = arith.divf %96, %97 : vector<1x128xf32>
    %cst_49 = arith.constant 9.99999974E-6 : f32
    %99 = vector.broadcast %cst_49 : f32 to vector<1x128xf32>
    %100 = arith.addf %98, %99 : vector<1x128xf32>
    %101 = math.rsqrt %100 : vector<1x128xf32>
    %102 = vector.broadcast %101 : vector<1x128xf32> to vector<2x128xf32>
    %103 = arith.mulf %93, %102 : vector<2x128xf32>
    %104 = vector.broadcast %86 : vector<1x128xf32> to vector<2x128xf32>
    %105 = arith.mulf %103, %104 : vector<2x128xf32>
    %106 = vector.broadcast %87 : vector<1x128xf32> to vector<2x128xf32>
    %107 = arith.addf %105, %106 : vector<2x128xf32>
    %cst_50 = arith.constant 0.000000e+00 : f32
    %108 = vector.broadcast %cst_50 : f32 to vector<2x128xf32>
    %109 = arith.cmpf oge, %107, %108 : vector<2x128xf32>
    %cst_51 = arith.constant 0.00999999977 : f32
    %110 = vector.broadcast %cst_51 : f32 to vector<2x128xf32>
    %111 = arith.mulf %110, %107 : vector<2x128xf32>
    %112 = arith.select %109, %107, %111 : vector<2x128xi1>, vector<2x128xf32>
    %c0_52 = arith.constant 0 : index
    %c0_53 = arith.constant 0 : index
    %c0_54 = arith.constant 0 : index
    %113 = vector.load %arg11[%c0_52, %c0_53, %c0_54] : memref<2x128x448xf32, #tpu.memory_space<vmem>>, vector<1x128x448xf32>
    %114 = vector.shape_cast %113 : vector<1x128x448xf32> to vector<128x448xf32>
    %cst_55 = arith.constant dense<0.000000e+00> : vector<2x448xf32>
    %115 = tpu.matmul %112, %114, %cst_55 {dimension_numbers = #tpu.dot_dimension_numbers<[1], [0], [0], [1], [0, 0, 1, 1], [], []>} : vector<2x128xf32>, vector<128x448xf32>, vector<2x448xf32> -> vector<2x448xf32>
    %c1 = arith.constant 1 : index
    %c0_56 = arith.constant 0 : index
    %c0_57 = arith.constant 0 : index
    %116 = vector.load %arg10[%c1, %c0_56, %c0_57] : memref<2x8x128xf32, #tpu.memory_space<vmem>>, vector<1x8x128xf32>
    %117 = vector.shape_cast %116 : vector<1x8x128xf32> to vector<8x128xf32>
    %c1_58 = arith.constant 1 : index
    %c0_59 = arith.constant 0 : index
    %c0_60 = arith.constant 0 : index
    %118 = vector.load %arg7[%c1_58, %c0_59, %c0_60] : memref<2x128x128xf32, #tpu.memory_space<vmem>>, vector<1x128x128xf32>
    %119 = vector.shape_cast %118 : vector<1x128x128xf32> to vector<128x128xf32>
    %cst_61 = arith.constant dense<0.000000e+00> : vector<2x128xf32>
    %120 = tpu.matmul %112, %119, %cst_61 {dimension_numbers = #tpu.dot_dimension_numbers<[1], [0], [0], [1], [0, 0, 1, 1], [], []>} : vector<2x128xf32>, vector<128x128xf32>, vector<2x128xf32> -> vector<2x128xf32>
    %c1_62 = arith.constant 1 : index
    %c0_63 = arith.constant 0 : index
    %c0_64 = arith.constant 0 : index
    %121 = vector.load %arg8[%c1_62, %c0_63, %c0_64] : memref<2x32x128xf32, #tpu.memory_space<vmem>>, vector<1x32x128xf32>
    %122 = vector.shape_cast %121 : vector<1x32x128xf32> to vector<32x128xf32>
    %cst_65 = arith.constant dense<0.000000e+00> : vector<2x128xf32>
    %123 = tpu.matmul %0, %122, %cst_65 {dimension_numbers = #tpu.dot_dimension_numbers<[1], [0], [0], [1], [0, 0, 1, 1], [], []>} : vector<2x32xf32>, vector<32x128xf32>, vector<2x128xf32> -> vector<2x128xf32>
    %124 = arith.addf %120, %123 : vector<2x128xf32>
    %125 = vector.extract_strided_slice %117 {offsets = [0, 0], sizes = [1, 128], strides = [1, 1]} : vector<8x128xf32> to vector<1x128xf32>
    %126 = vector.broadcast %125 : vector<1x128xf32> to vector<2x128xf32>
    %127 = arith.addf %124, %126 : vector<2x128xf32>
    %128 = vector.extract_strided_slice %117 {offsets = [1, 0], sizes = [1, 128], strides = [1, 1]} : vector<8x128xf32> to vector<1x128xf32>
    %129 = vector.extract_strided_slice %117 {offsets = [2, 0], sizes = [1, 128], strides = [1, 1]} : vector<8x128xf32> to vector<1x128xf32>
    %cst_66 = arith.constant dense<0.000000e+00> : vector<128xf32>
    %130 = vector.multi_reduction <add>, %127, %cst_66 [0] : vector<2x128xf32> to vector<128xf32>
    %131 = vector.shape_cast %130 : vector<128xf32> to vector<1x128xf32>
    %cst_67 = arith.constant 2.000000e+00 : f32
    %132 = vector.broadcast %cst_67 : f32 to vector<1x128xf32>
    %133 = arith.divf %131, %132 : vector<1x128xf32>
    %134 = vector.broadcast %133 : vector<1x128xf32> to vector<2x128xf32>
    %135 = arith.subf %127, %134 : vector<2x128xf32>
    %136 = arith.mulf %135, %135 : vector<2x128xf32>
    %cst_68 = arith.constant dense<0.000000e+00> : vector<128xf32>
    %137 = vector.multi_reduction <add>, %136, %cst_68 [0] : vector<2x128xf32> to vector<128xf32>
    %138 = vector.shape_cast %137 : vector<128xf32> to vector<1x128xf32>
    %cst_69 = arith.constant 2.000000e+00 : f32
    %139 = vector.broadcast %cst_69 : f32 to vector<1x128xf32>
    %140 = arith.divf %138, %139 : vector<1x128xf32>
    %cst_70 = arith.constant 9.99999974E-6 : f32
    %141 = vector.broadcast %cst_70 : f32 to vector<1x128xf32>
    %142 = arith.addf %140, %141 : vector<1x128xf32>
    %143 = math.rsqrt %142 : vector<1x128xf32>
    %144 = vector.broadcast %143 : vector<1x128xf32> to vector<2x128xf32>
    %145 = arith.mulf %135, %144 : vector<2x128xf32>
    %146 = vector.broadcast %128 : vector<1x128xf32> to vector<2x128xf32>
    %147 = arith.mulf %145, %146 : vector<2x128xf32>
    %148 = vector.broadcast %129 : vector<1x128xf32> to vector<2x128xf32>
    %149 = arith.addf %147, %148 : vector<2x128xf32>
    %cst_71 = arith.constant 0.000000e+00 : f32
    %150 = vector.broadcast %cst_71 : f32 to vector<2x128xf32>
    %151 = arith.cmpf oge, %149, %150 : vector<2x128xf32>
    %cst_72 = arith.constant 0.00999999977 : f32
    %152 = vector.broadcast %cst_72 : f32 to vector<2x128xf32>
    %153 = arith.mulf %152, %149 : vector<2x128xf32>
    %154 = arith.select %151, %149, %153 : vector<2x128xi1>, vector<2x128xf32>
    %c1_73 = arith.constant 1 : index
    %c0_74 = arith.constant 0 : index
    %c0_75 = arith.constant 0 : index
    %155 = vector.load %arg9[%c1_73, %c0_74, %c0_75] : memref<2x128x128xf32, #tpu.memory_space<vmem>>, vector<1x128x128xf32>
    %156 = vector.shape_cast %155 : vector<1x128x128xf32> to vector<128x128xf32>
    %cst_76 = arith.constant dense<0.000000e+00> : vector<2x128xf32>
    %157 = tpu.matmul %154, %156, %cst_76 {dimension_numbers = #tpu.dot_dimension_numbers<[1], [0], [0], [1], [0, 0, 1, 1], [], []>} : vector<2x128xf32>, vector<128x128xf32>, vector<2x128xf32> -> vector<2x128xf32>
    %158 = vector.extract_strided_slice %117 {offsets = [3, 0], sizes = [1, 128], strides = [1, 1]} : vector<8x128xf32> to vector<1x128xf32>
    %159 = vector.broadcast %158 : vector<1x128xf32> to vector<2x128xf32>
    %160 = arith.addf %157, %159 : vector<2x128xf32>
    %161 = vector.extract_strided_slice %117 {offsets = [4, 0], sizes = [1, 128], strides = [1, 1]} : vector<8x128xf32> to vector<1x128xf32>
    %162 = vector.extract_strided_slice %117 {offsets = [5, 0], sizes = [1, 128], strides = [1, 1]} : vector<8x128xf32> to vector<1x128xf32>
    %cst_77 = arith.constant dense<0.000000e+00> : vector<128xf32>
    %163 = vector.multi_reduction <add>, %160, %cst_77 [0] : vector<2x128xf32> to vector<128xf32>
    %164 = vector.shape_cast %163 : vector<128xf32> to vector<1x128xf32>
    %cst_78 = arith.constant 2.000000e+00 : f32
    %165 = vector.broadcast %cst_78 : f32 to vector<1x128xf32>
    %166 = arith.divf %164, %165 : vector<1x128xf32>
    %167 = vector.broadcast %166 : vector<1x128xf32> to vector<2x128xf32>
    %168 = arith.subf %160, %167 : vector<2x128xf32>
    %169 = arith.mulf %168, %168 : vector<2x128xf32>
    %cst_79 = arith.constant dense<0.000000e+00> : vector<128xf32>
    %170 = vector.multi_reduction <add>, %169, %cst_79 [0] : vector<2x128xf32> to vector<128xf32>
    %171 = vector.shape_cast %170 : vector<128xf32> to vector<1x128xf32>
    %cst_80 = arith.constant 2.000000e+00 : f32
    %172 = vector.broadcast %cst_80 : f32 to vector<1x128xf32>
    %173 = arith.divf %171, %172 : vector<1x128xf32>
    %cst_81 = arith.constant 9.99999974E-6 : f32
    %174 = vector.broadcast %cst_81 : f32 to vector<1x128xf32>
    %175 = arith.addf %173, %174 : vector<1x128xf32>
    %176 = math.rsqrt %175 : vector<1x128xf32>
    %177 = vector.broadcast %176 : vector<1x128xf32> to vector<2x128xf32>
    %178 = arith.mulf %168, %177 : vector<2x128xf32>
    %179 = vector.broadcast %161 : vector<1x128xf32> to vector<2x128xf32>
    %180 = arith.mulf %178, %179 : vector<2x128xf32>
    %181 = vector.broadcast %162 : vector<1x128xf32> to vector<2x128xf32>
    %182 = arith.addf %180, %181 : vector<2x128xf32>
    %cst_82 = arith.constant 0.000000e+00 : f32
    %183 = vector.broadcast %cst_82 : f32 to vector<2x128xf32>
    %184 = arith.cmpf oge, %182, %183 : vector<2x128xf32>
    %cst_83 = arith.constant 0.00999999977 : f32
    %185 = vector.broadcast %cst_83 : f32 to vector<2x128xf32>
    %186 = arith.mulf %185, %182 : vector<2x128xf32>
    %187 = arith.select %184, %182, %186 : vector<2x128xi1>, vector<2x128xf32>
    %c1_84 = arith.constant 1 : index
    %c0_85 = arith.constant 0 : index
    %c0_86 = arith.constant 0 : index
    %188 = vector.load %arg11[%c1_84, %c0_85, %c0_86] : memref<2x128x448xf32, #tpu.memory_space<vmem>>, vector<1x128x448xf32>
    %189 = vector.shape_cast %188 : vector<1x128x448xf32> to vector<128x448xf32>
    %cst_87 = arith.constant dense<0.000000e+00> : vector<2x448xf32>
    %190 = tpu.matmul %187, %189, %cst_87 {dimension_numbers = #tpu.dot_dimension_numbers<[1], [0], [0], [1], [0, 0, 1, 1], [], []>} : vector<2x128xf32>, vector<128x448xf32>, vector<2x448xf32> -> vector<2x448xf32>
    %191 = arith.addf %115, %190 : vector<2x448xf32>
    %c0_88 = arith.constant 0 : index
    %c0_89 = arith.constant 0 : index
    %192 = vector.load %arg12[%c0_88, %c0_89] : memref<1x448xf32, #tpu.memory_space<vmem>>, vector<1x448xf32>
    %193 = vector.broadcast %192 : vector<1x448xf32> to vector<2x448xf32>
    %194 = arith.addf %191, %193 : vector<2x448xf32>
    %c0_90 = arith.constant 0 : index
    %c0_91 = arith.constant 0 : index
    %195 = vector.load %arg13[%c0_90, %c0_91] : memref<2x448xf32, #tpu.memory_space<vmem>>, vector<2x448xf32>
    tpu.vector_store %arg13[%c0_90, %c0_91], %194 {strides = array<i32>} : memref<2x448xf32, #tpu.memory_space<vmem>>, vector<2x448xf32>,
    return
  }
}

module attributes {stable_mosaic.version = 11 : i64} {
  func.func @_heads_kernel(%arg0: memref<8x64xf32, #tpu.memory_space<vmem>>, %arg1: memref<64x256xf32, #tpu.memory_space<vmem>>, %arg2: memref<1x256xf32, #tpu.memory_space<vmem>>, %arg3: memref<256x256xf32, #tpu.memory_space<vmem>>, %arg4: memref<1x256xf32, #tpu.memory_space<vmem>>, %arg5: memref<256x128xf32, #tpu.memory_space<vmem>>, %arg6: memref<1x128xf32, #tpu.memory_space<vmem>>, %arg7: memref<12x32xf32, #tpu.memory_space<vmem>>, %arg8: memref<32x96xf32, #tpu.memory_space<vmem>>, %arg9: memref<1x96xf32, #tpu.memory_space<vmem>>, %arg10: memref<96x96xf32, #tpu.memory_space<vmem>>, %arg11: memref<1x96xf32, #tpu.memory_space<vmem>>, %arg12: memref<96x128xf32, #tpu.memory_space<vmem>>, %arg13: memref<1x128xf32, #tpu.memory_space<vmem>>, %arg14: memref<8x128xf32, #tpu.memory_space<vmem>>, %arg15: memref<12x128xf32, #tpu.memory_space<vmem>>) attributes {dimension_semantics = [], scalar_prefetch = 0 : i64, scratch_operands = 0 : i64, tpu.core_type = #tpu.core_type<tc>} {
    %c0 = arith.constant 0 : index
    %c0_0 = arith.constant 0 : index
    %0 = vector.load %arg0[%c0, %c0_0] : memref<8x64xf32, #tpu.memory_space<vmem>>, vector<8x64xf32>
    %c0_1 = arith.constant 0 : index
    %c0_2 = arith.constant 0 : index
    %1 = vector.load %arg1[%c0_1, %c0_2] : memref<64x256xf32, #tpu.memory_space<vmem>>, vector<64x256xf32>
    %cst = arith.constant dense<0.000000e+00> : vector<8x256xf32>
    %2 = tpu.matmul %0, %1, %cst {dimension_numbers = #tpu.dot_dimension_numbers<[1], [0], [0], [1], [0, 0, 1, 1], [], []>} : vector<8x64xf32>, vector<64x256xf32>, vector<8x256xf32> -> vector<8x256xf32>
    %c0_3 = arith.constant 0 : index
    %c0_4 = arith.constant 0 : index
    %3 = vector.load %arg2[%c0_3, %c0_4] : memref<1x256xf32, #tpu.memory_space<vmem>>, vector<1x256xf32>
    %4 = vector.broadcast %3 : vector<1x256xf32> to vector<8x256xf32>
    %5 = arith.addf %2, %4 : vector<8x256xf32>
    %cst_5 = arith.constant 0.000000e+00 : f32
    %6 = vector.broadcast %cst_5 : f32 to vector<8x256xf32>
    %7 = arith.cmpf oge, %5, %6 : vector<8x256xf32>
    %cst_6 = arith.constant 0.00999999977 : f32
    %8 = vector.broadcast %cst_6 : f32 to vector<8x256xf32>
    %9 = arith.mulf %8, %5 : vector<8x256xf32>
    %10 = arith.select %7, %5, %9 : vector<8x256xi1>, vector<8x256xf32>
    %c0_7 = arith.constant 0 : index
    %c0_8 = arith.constant 0 : index
    %11 = vector.load %arg3[%c0_7, %c0_8] : memref<256x256xf32, #tpu.memory_space<vmem>>, vector<256x256xf32>
    %cst_9 = arith.constant dense<0.000000e+00> : vector<8x256xf32>
    %12 = tpu.matmul %10, %11, %cst_9 {dimension_numbers = #tpu.dot_dimension_numbers<[1], [0], [0], [1], [0, 0, 1, 1], [], []>} : vector<8x256xf32>, vector<256x256xf32>, vector<8x256xf32> -> vector<8x256xf32>
    %c0_10 = arith.constant 0 : index
    %c0_11 = arith.constant 0 : index
    %13 = vector.load %arg4[%c0_10, %c0_11] : memref<1x256xf32, #tpu.memory_space<vmem>>, vector<1x256xf32>
    %14 = vector.broadcast %13 : vector<1x256xf32> to vector<8x256xf32>
    %15 = arith.addf %12, %14 : vector<8x256xf32>
    %cst_12 = arith.constant 0.000000e+00 : f32
    %16 = vector.broadcast %cst_12 : f32 to vector<8x256xf32>
    %17 = arith.cmpf oge, %15, %16 : vector<8x256xf32>
    %cst_13 = arith.constant 0.00999999977 : f32
    %18 = vector.broadcast %cst_13 : f32 to vector<8x256xf32>
    %19 = arith.mulf %18, %15 : vector<8x256xf32>
    %20 = arith.select %17, %15, %19 : vector<8x256xi1>, vector<8x256xf32>
    %c0_14 = arith.constant 0 : index
    %c0_15 = arith.constant 0 : index
    %21 = vector.load %arg5[%c0_14, %c0_15] : memref<256x128xf32, #tpu.memory_space<vmem>>, vector<256x128xf32>
    %cst_16 = arith.constant dense<0.000000e+00> : vector<8x128xf32>
    %22 = tpu.matmul %20, %21, %cst_16 {dimension_numbers = #tpu.dot_dimension_numbers<[1], [0], [0], [1], [0, 0, 1, 1], [], []>} : vector<8x256xf32>, vector<256x128xf32>, vector<8x128xf32> -> vector<8x128xf32>
    %c0_17 = arith.constant 0 : index
    %c0_18 = arith.constant 0 : index
    %23 = vector.load %arg6[%c0_17, %c0_18] : memref<1x128xf32, #tpu.memory_space<vmem>>, vector<1x128xf32>
    %24 = vector.broadcast %23 : vector<1x128xf32> to vector<8x128xf32>
    %25 = arith.addf %22, %24 : vector<8x128xf32>
    %c0_19 = arith.constant 0 : index
    %c0_20 = arith.constant 0 : index
    %26 = vector.load %arg14[%c0_19, %c0_20] : memref<8x128xf32, #tpu.memory_space<vmem>>, vector<8x128xf32>
    tpu.vector_store %arg14[%c0_19, %c0_20], %25 {strides = array<i32>} : memref<8x128xf32, #tpu.memory_space<vmem>>, vector<8x128xf32>,
    %c0_21 = arith.constant 0 : index
    %c0_22 = arith.constant 0 : index
    %27 = vector.load %arg7[%c0_21, %c0_22] : memref<12x32xf32, #tpu.memory_space<vmem>>, vector<12x32xf32>
    %c0_23 = arith.constant 0 : index
    %c0_24 = arith.constant 0 : index
    %28 = vector.load %arg8[%c0_23, %c0_24] : memref<32x96xf32, #tpu.memory_space<vmem>>, vector<32x96xf32>
    %cst_25 = arith.constant dense<0.000000e+00> : vector<12x96xf32>
    %29 = tpu.matmul %27, %28, %cst_25 {dimension_numbers = #tpu.dot_dimension_numbers<[1], [0], [0], [1], [0, 0, 1, 1], [], []>} : vector<12x32xf32>, vector<32x96xf32>, vector<12x96xf32> -> vector<12x96xf32>
    %c0_26 = arith.constant 0 : index
    %c0_27 = arith.constant 0 : index
    %30 = vector.load %arg9[%c0_26, %c0_27] : memref<1x96xf32, #tpu.memory_space<vmem>>, vector<1x96xf32>
    %31 = vector.broadcast %30 : vector<1x96xf32> to vector<12x96xf32>
    %32 = arith.addf %29, %31 : vector<12x96xf32>
    %cst_28 = arith.constant 0.000000e+00 : f32
    %33 = vector.broadcast %cst_28 : f32 to vector<12x96xf32>
    %34 = arith.cmpf oge, %32, %33 : vector<12x96xf32>
    %cst_29 = arith.constant 0.00999999977 : f32
    %35 = vector.broadcast %cst_29 : f32 to vector<12x96xf32>
    %36 = arith.mulf %35, %32 : vector<12x96xf32>
    %37 = arith.select %34, %32, %36 : vector<12x96xi1>, vector<12x96xf32>
    %c0_30 = arith.constant 0 : index
    %c0_31 = arith.constant 0 : index
    %38 = vector.load %arg10[%c0_30, %c0_31] : memref<96x96xf32, #tpu.memory_space<vmem>>, vector<96x96xf32>
    %cst_32 = arith.constant dense<0.000000e+00> : vector<12x96xf32>
    %39 = tpu.matmul %37, %38, %cst_32 {dimension_numbers = #tpu.dot_dimension_numbers<[1], [0], [0], [1], [0, 0, 1, 1], [], []>} : vector<12x96xf32>, vector<96x96xf32>, vector<12x96xf32> -> vector<12x96xf32>
    %c0_33 = arith.constant 0 : index
    %c0_34 = arith.constant 0 : index
    %40 = vector.load %arg11[%c0_33, %c0_34] : memref<1x96xf32, #tpu.memory_space<vmem>>, vector<1x96xf32>
    %41 = vector.broadcast %40 : vector<1x96xf32> to vector<12x96xf32>
    %42 = arith.addf %39, %41 : vector<12x96xf32>
    %cst_35 = arith.constant 0.000000e+00 : f32
    %43 = vector.broadcast %cst_35 : f32 to vector<12x96xf32>
    %44 = arith.cmpf oge, %42, %43 : vector<12x96xf32>
    %cst_36 = arith.constant 0.00999999977 : f32
    %45 = vector.broadcast %cst_36 : f32 to vector<12x96xf32>
    %46 = arith.mulf %45, %42 : vector<12x96xf32>
    %47 = arith.select %44, %42, %46 : vector<12x96xi1>, vector<12x96xf32>
    %c0_37 = arith.constant 0 : index
    %c0_38 = arith.constant 0 : index
    %48 = vector.load %arg12[%c0_37, %c0_38] : memref<96x128xf32, #tpu.memory_space<vmem>>, vector<96x128xf32>
    %cst_39 = arith.constant dense<0.000000e+00> : vector<12x128xf32>
    %49 = tpu.matmul %47, %48, %cst_39 {dimension_numbers = #tpu.dot_dimension_numbers<[1], [0], [0], [1], [0, 0, 1, 1], [], []>} : vector<12x96xf32>, vector<96x128xf32>, vector<12x128xf32> -> vector<12x128xf32>
    %c0_40 = arith.constant 0 : index
    %c0_41 = arith.constant 0 : index
    %50 = vector.load %arg13[%c0_40, %c0_41] : memref<1x128xf32, #tpu.memory_space<vmem>>, vector<1x128xf32>
    %51 = vector.broadcast %50 : vector<1x128xf32> to vector<12x128xf32>
    %52 = arith.addf %49, %51 : vector<12x128xf32>
    %c0_42 = arith.constant 0 : index
    %c0_43 = arith.constant 0 : index
    %53 = vector.load %arg15[%c0_42, %c0_43] : memref<12x128xf32, #tpu.memory_space<vmem>>, vector<12x128xf32>
    tpu.vector_store %arg15[%c0_42, %c0_43], %52 {strides = array<i32>} : memref<12x128xf32, #tpu.memory_space<vmem>>, vector<12x128xf32>,
    return
  }
}

</mosaic_0001>

<bundles_post_ra>
// kernel: _lambda_.3
= control target key start
LH: loop header
LB: loop body
LE: loop exit
PB: predicated region body
PF: predicated region fallthrough
CT: control target
= control target key end

     0   :  { %vm54_vm0 = vcmask 1046528   ;;  %vm50_vm1 = vcmask 187392   ;;  %vm202_vm2 = vcmask 1044480   ;;  %vm195_vm3 = vcmask 105472   ;;  %s565_s1 = inlined_call_operand.vmem [shape: f32[23,256], index: 1, kind: input, shape index: {}]   ;;  %s566_s0 = inlined_call_operand.vmem [shape: f32[8,23], index: 0, kind: input, shape index: {}]   ;;  %s567_s3 = inlined_call_operand.vmem [shape: f32[256,64], index: 3, kind: input, shape index: {}]   ;;  %s568_s6 = inlined_call_operand.vmem [shape: f32[13,96], index: 6, kind: input, shape index: {}]   ;;  %s569_s8 = inlined_call_operand.vmem [shape: f32[96,32], index: 8, kind: input, shape index: {}]   ;;  %s570_s7 = inlined_call_operand.vmem [shape: f32[1,96], index: 7, kind: input, shape index: {}]   ;;  %s571_s5 = inlined_call_operand.vmem [shape: f32[12,13], index: 5, kind: input, shape index: {}]   ;;  %s572_s4 = inlined_call_operand.vmem [shape: f32[1,64], index: 4, kind: input, shape index: {}]   ;;  %s573_s2 = inlined_call_operand.vmem [shape: f32[1,256], index: 2, kind: input, shape index: {}]   ;;  %s574_s9 = inlined_call_operand.vmem [shape: f32[1,32], index: 9, kind: input, shape index: {}]   ;;  %s575_s11 = inlined_call_operand.vmem [shape: f32[12,32], index: 11, kind: output, shape index: {1}]   ;;  %s576_s10 = inlined_call_operand.vmem [shape: f32[8,64], index: 10, kind: output, shape index: {0}]  }
   0x1   :  { %v42_v0 = vld [vmem:[%s565_s1 + $0x20] sm:$0x7f]  ;;  %v40_v1 = vld [vmem:[%s565_s1 + $0x10] sm:$0xff]  ;;  %v116_v4 = vld [vmem:[%s567_s3 + $0x78] sm:$0xff]  ;;  %v307_v56 = vmov 0   ;;  %vm245_vm4 = vcmask 785408  }
   0x2   :  { %293 = vmatpush.msk.msra.mxu0 %vm54_vm0, %v42_v0  ;;  %v38_v2 = vld [vmem:[%s565_s1] sm:$0xff]  ;;  %v43_v5 = vld [vmem:[%s565_s1 + $0x28] sm:$0x7f]  ;;  %137 = vmatpush.msra.mxu2 %v116_v4  ;;  %v115_v6 = vld [vmem:[%s567_s3 + $0x70] sm:$0xff]  ;;  %vm281_vm7 = vcmask 261120   ;;  %vm185_vm8 = vcmask 523264  }
   0x3   :  { %v381_v3 = vld [vmem:[%s566_s0] sm:$0xff]  ;;  %v114_v7 = vld [vmem:[%s567_s3 + $0x68] sm:$0xff]  ;;  %v132_v8 = vld [vmem:[%s567_s3 + $0xf8] sm:$0xff]  ;;  %303 = vset.pattern.permute.xlu0 %v307_v56  ;;  %vm283_vm10 = vcmask 257024  }
   0x4   :  { %75 = vmatpush.msra.mxu0 %v40_v1  ;;  %v41_v9 = vld [vmem:[%s565_s1 + $0x18] sm:$0xff]  ;;  %138 = vmatpush.msra.mxu2 %v115_v6  ;;  %v131_v10 = vld [vmem:[%s567_s3 + $0xf0] sm:$0xff]  ;;  %v113_v11 = vld [vmem:[%s567_s3 + $0x60] sm:$0xff] }
   0x5   :  { %157 = vmatpush.msra.mxu3 %v132_v8  ;;  %v39_v12 = vld [vmem:[%s565_s1 + $0x8] sm:$0xff]  ;;  %v112_v15 = vld [vmem:[%s567_s3 + $0x58] sm:$0xff]  ;;  %v129_v16 = vld [vmem:[%s567_s3 + $0xe0] sm:$0xff]  ;;  %181 = vperm.xlu0 %303, %v381_v3  }
   0x6   :  { %76 = vmatpush.msra.mxu0 %v38_v2  ;;  %139 = vmatpush.msra.mxu2 %v114_v7  ;;  %v130_v13 = vld [vmem:[%s567_s3 + $0xe8] sm:$0xff]  ;;  %v111_v17 = vld [vmem:[%s567_s3 + $0x50] sm:$0xff]  ;;  %v240_v18 = vld [vmem:[%s569_s8 + $0x58] sm:$0xff] }
   0x7   :  { %294 = vmatmul.msk.f32.vlgmr.msra.gmra.mxu0 %vm50_vm1, %v381_v3  ;;  %v190_v14 = vld [vmem:[%s568_s6 + $0x8] sm:$0x1f]  ;;  %158 = vmatpush.msra.mxu3 %v131_v10  ;;  %v189_v19 = vld [vmem:[%s568_s6] sm:$0xff]  ;;  %v128_v20 = vld [vmem:[%s567_s3 + $0xd8] sm:$0xff] }
   0x8   :  { %295 = vmatpush.msk.msrb.mxu0 %vm54_vm0, %v43_v5  ;;  %140 = vmatpush.msra.mxu2 %v113_v11  ;;  %v110_v21 = vld [vmem:[%s567_s3 + $0x48] sm:$0xff]  ;;  %v239_v22 = vld [vmem:[%s569_s8 + $0x50] sm:$0xff]  ;;  %v109_v24 = vld [vmem:[%s567_s3 + $0x40] sm:$0xff] }
   0x9   :  { %159 = vmatpush.msra.mxu3 %v130_v13  ;;  %256 = vmatpush.msra.mxu1 %v240_v18  ;;  %v127_v23 = vld [vmem:[%s567_s3 + $0xd0] sm:$0xff]  ;;  %v126_v25 = vld [vmem:[%s567_s3 + $0xc8] sm:$0xff]  ;;  %v108_v26 = vld [vmem:[%s567_s3 + $0x38] sm:$0xff] }
   0xa   :  { %95 = vmatpush.msrb.mxu0 %v41_v9  ;;  %141 = vmatpush.msra.mxu2 %v112_v15  ;;  %v125_v27 = vld [vmem:[%s567_s3 + $0xc0] sm:$0xff]  ;;  %v107_v29 = vld [vmem:[%s567_s3 + $0x30] sm:$0xff]  ;;  %v124_v30 = vld [vmem:[%s567_s3 + $0xb8] sm:$0xff] }
   0xb   :  { %160 = vmatpush.msra.mxu3 %v129_v16  ;;  %257 = vmatpush.msra.mxu1 %v239_v22  ;;  %v187_v28 = vld [vmem:[%s571_s5] sm:$0xff]  ;;  %v106_v31 = vld [vmem:[%s567_s3 + $0x28] sm:$0xff]  ;;  %v123_v32 = vld [vmem:[%s567_s3 + $0xb0] sm:$0xff] }
   0xc   :  { %96 = vmatpush.msrb.mxu0 %v39_v12  ;;  %142 = vmatpush.msra.mxu2 %v111_v17  ;;  %v105_v33 = vld [vmem:[%s567_s3 + $0x20] sm:$0xff]  ;;  %v104_v34 = vld [vmem:[%s567_s3 + $0x18] sm:$0xff]  ;;  %v188_v35 = vld [vmem:[%s571_s5 + $0x8] sm:$0xf] }
   0xd   :  { %161 = vmatpush.msra.mxu3 %v128_v20  ;;  %v103_v36 = vld [vmem:[%s567_s3 + $0x10] sm:$0xff]  ;;  %v102_v37 = vld [vmem:[%s567_s3 + $0x8] sm:$0xff]  ;;  %v101_v40 = vld [vmem:[%s567_s3] sm:$0xff] }
   0xe   :  { %297 = vmatpush.msk.msra.mxu0 %vm202_vm2, %v190_v14  ;;  %143 = vmatpush.msra.mxu2 %v110_v21  ;;  %v122_v38 = vld [vmem:[%s567_s3 + $0xa8] sm:$0xff]  ;;  %v121_v41 = vld [vmem:[%s567_s3 + $0xa0] sm:$0xff]  ;;  %v120_v43 = vld [vmem:[%s567_s3 + $0x98] sm:$0xff] }
   0xf   :  { %296 = vmatmul.msk.f32.vlgmr.msrb.gmra.mxu0 %vm50_vm1, %v381_v3  ;;  %162 = vmatpush.msra.mxu3 %v127_v23  ;;  %v238_v39 = vld [vmem:[%s569_s8 + $0x48] sm:$0xff]  ;;  %v237_v42 = vld [vmem:[%s569_s8 + $0x40] sm:$0xff]  ;;  %v236_v44 = vld [vmem:[%s569_s8 + $0x38] sm:$0xff] }
  0x10   :  { %221 = vmatpush.msra.mxu0 %v189_v19  ;;  %144 = vmatpush.msra.mxu2 %v109_v24  ;;  %v119_v45 = vld [vmem:[%s567_s3 + $0x90] sm:$0xff]  ;;  %v118_v47 = vld [vmem:[%s567_s3 + $0x88] sm:$0xff]  ;;  %v117_v49 = vld [vmem:[%s567_s3 + $0x80] sm:$0xff] }
  0x11   :  { %163 = vmatpush.msra.mxu3 %v126_v25  ;;  %258 = vmatpush.msra.mxu1 %v238_v39  ;;  %v235_v46 = vld [vmem:[%s569_s8 + $0x30] sm:$0xff]  ;;  %v234_v48 = vld [vmem:[%s569_s8 + $0x28] sm:$0xff]  ;;  %v233_v50 = vld [vmem:[%s569_s8 + $0x20] sm:$0xff] }
  0x12   :  { %145 = vmatpush.msra.mxu2 %v108_v26  ;;  %v232_v51 = vld [vmem:[%s569_s8 + $0x18] sm:$0xff]  ;;  %v231_v52 = vld [vmem:[%s569_s8 + $0x10] sm:$0xff]  ;;  %v230_v53 = vld [vmem:[%s569_s8 + $0x8] sm:$0xff] }
  0x13   :  { %164 = vmatpush.msra.mxu3 %v125_v27  ;;  %259 = vmatpush.msra.mxu1 %v237_v42  ;;  %v229_v54 = vld [vmem:[%s569_s8] sm:$0xff] }
  0x14   :  { %146 = vmatpush.msra.mxu2 %v107_v29  ;;  %v44_v55 = vld [vmem:[%s573_s2] sm:$0x3] }
  0x15   :  { %165 = vmatpush.msra.mxu3 %v124_v30  ;;  %260 = vmatpush.msra.mxu1 %v236_v44  ;;  %v46_v57 = vperm.slane %v44_v55, 0  ;;  %v47_v60 = vperm.slane %v44_v55, 1  ;;  %v304_v63 = vld [vmem:[%s570_s7] ss:$0 sm:$0xff] }
  0x16   :  { %147 = vmatpush.msra.mxu2 %v106_v31  ;;  %v305_v3 = vld [vmem:[%s572_s4] ss:$0 sm:$0xff] }
  0x17   :  { %298 = vmatmul.msk.f32.vlgmr.msra.gmra.mxu0 %vm195_vm3, %v187_v28  ;;  %166 = vmatpush.msra.mxu3 %v123_v32  ;;  %v306_v7 = vld [vmem:[%s574_s9] ss:$0 sm:$0xff] }
  0x18   :  { %148 = vmatpush.msra.mxu2 %v105_v33  ;;  %261 = vmatpush.msra.mxu1 %v235_v46 }
  0x19   :  { %167 = vmatpush.msra.mxu3 %v122_v38 }
  0x1a   :  { %149 = vmatpush.msra.mxu2 %v104_v34  ;;  %262 = vmatpush.msra.mxu1 %v234_v48 }
  0x1b   :  { %168 = vmatpush.msra.mxu3 %v121_v41 }
  0x1c   :  { %150 = vmatpush.msra.mxu2 %v103_v36  ;;  %263 = vmatpush.msra.mxu1 %v233_v50 }
  0x1d   :  { %169 = vmatpush.msra.mxu3 %v120_v43 }
  0x1e   :  { %151 = vmatpush.msra.mxu2 %v102_v37  ;;  %264 = vmatpush.msra.mxu1 %v232_v51 }
  0x1f   :  { %299 = vmatmul.msk.f32.gmra.mxu0 %vm195_vm3, %v188_v35  ;;  %170 = vmatpush.msra.mxu3 %v119_v45 }
  0x20   :  { %152 = vmatpush.msra.mxu2 %v101_v40  ;;  %265 = vmatpush.msra.mxu1 %v231_v52 }
  0x21   :  { %171 = vmatpush.msra.mxu3 %v118_v47 }
  0x22   :  { %266 = vmatpush.msra.mxu1 %v230_v53 }
  0x23   :  { %172 = vmatpush.msra.mxu3 %v117_v49 }
  0x24   :  { %267 = vmatpush.msra.mxu1 %v229_v54 }
  0x77   :  { %v182_v13 = vpop.permute.xlu0 %181 }
  0x84   :  { %v78_v58 = vpop.f32.mrf.mxu0 }
  0x85   :  { %v79_v59 = vadd.f32 %v78_v58, %v46_v57 }
  0x87   :  { %153 = vmatmul.f32.vlgmr.msra.gmra.mxu2 %v79_v59 }
  0x8c   :  { %v98_v61 = vpop.f32.mrf.mxu0 }
  0x8d   :  { %v99_v62 = vadd.f32 %v98_v61, %v47_v60 }
  0x8f   :  { %173 = vmatmul.f32.vlgmr.msra.gmra.mxu3 %v99_v62 }
  0x94   :  { %v223_v0 = vpop.f32.mrf.mxu0 }
  0x95   :  { %v224_v1 = vadd.f32 %v304_v63, %v223_v0 }
  0x97   :  { %300 = vmatmul.msk.f32.vlgmr.msra.gmra.mxu1 %vm245_vm4, %v224_v1 }
  0x9c   :  { %v226_v2 = vpop.f32.mrf.mxu0 }
  0x9d   :  { %v227_v4 = vadd.f32 %v304_v63, %v226_v2 }
  0x9f   :  { %301 = vmatmul.msk.f32.gmra.mxu1 %vm245_vm4, %v227_v4 }
 0x10a   :  { %v154_v5 = vpop.f32.mrf.mxu2 }
 0x10b   :  { %v155_v6 = vadd.f32 %v305_v3, %v154_v5 }
 0x112   :  { %v174_v8 = vpop.f32.mrf.mxu3 }
 0x113   :  { %v175_v9 = vadd.f32 %v174_v8, %v155_v6 }
 0x114   :  { %v269_v10 = vpop.f32.mrf.mxu1 }
 0x115   :  { %v178_v11 = vmul.f32 0.01, %v175_v9  ;;  %v270_v12 = vadd.f32 %v306_v7, %v269_v10  ;;  %vm177_vm5 = vcmp.ge.f32.partialorder %v175_v9, 0.0 }
 0x117   :  { %vm275_vm6 = vcmp.ge.f32.partialorder %v270_v12, 0.0  ;;  %v277_v14 = vmul.f32 0.01, %v270_v12  ;;  %v179_v15 = vsel %vm177_vm5, %v175_v9, %v178_v11 }
 0x118   :  { %v184_v16 = vmul.f32 %v182_v13, %v179_v15 }
 0x119   :  { %v279_v17 = vsel %vm275_vm6, %v270_v12, %v277_v14 }
 0x11a   :  { %282 = vst.msk [vmem:[%s575_s11] sm:$0xff] %vm281_vm7, %v279_v17 }
 0x11b   :  { %186 = vst.msk [vmem:[%s576_s10] sm:$0xff] %vm185_vm8, %v184_v16 }
 0x11c   :  { %v272_v18 = vpop.f32.mrf.mxu1 }
 0x11d   :  { %v273_v19 = vadd.f32 %v306_v7, %v272_v18 }
 0x11f   :  { %vm276_vm9 = vcmp.ge.f32.partialorder %v273_v19, 0.0  ;;  %v278_v20 = vmul.f32 0.01, %v273_v19 }
 0x121   :  { %v280_v21 = vsel %vm276_vm9, %v273_v19, %v278_v20 }
 0x122   :  { %284 = vst.msk [vmem:[%s575_s11 + $0x8] sm:$0xf] %vm283_vm10, %v280_v21 }

// kernel: _lambda_.5
= control target key start
LH: loop header
LB: loop body
LE: loop exit
PB: predicated region body
PF: predicated region fallthrough
CT: control target
= control target key end

     0   :  { %vm73_vm0 = vcmask 523264   ;;  %s1101_s0 = inlined_call_operand.vmem [shape: f32[8,64], index: 0, kind: input, shape index: {}]   ;;  %s1102_s1 = inlined_call_operand.vmem [shape: f32[64,256], index: 1, kind: input, shape index: {}]   ;;  %s1103_s2 = inlined_call_operand.vmem [shape: f32[1,256], index: 2, kind: input, shape index: {}]   ;;  %s1104_s3 = inlined_call_operand.vmem [shape: f32[256,256], index: 3, kind: input, shape index: {}]   ;;  %s1105_s4 = inlined_call_operand.vmem [shape: f32[1,256], index: 4, kind: input, shape index: {}]   ;;  %s1106_s5 = inlined_call_operand.vmem [shape: f32[256,128], index: 5, kind: input, shape index: {}]   ;;  %s1107_s6 = inlined_call_operand.vmem [shape: f32[1,128], index: 6, kind: input, shape index: {}]   ;;  %s1108_s7 = inlined_call_operand.vmem [shape: f32[12,32], index: 7, kind: input, shape index: {}]   ;;  %s1109_s8 = inlined_call_operand.vmem [shape: f32[32,96], index: 8, kind: input, shape index: {}]   ;;  %s1110_s9 = inlined_call_operand.vmem [shape: f32[1,96], index: 9, kind: input, shape index: {}]   ;;  %s1111_s10 = inlined_call_operand.vmem [shape: f32[96,96], index: 10, kind: input, shape index: {}]   ;;  %s1112_s11 = inlined_call_operand.vmem [shape: f32[1,96], index: 11, kind: input, shape index: {}]   ;;  %s1113_s12 = inlined_call_operand.vmem [shape: f32[96,128], index: 12, kind: input, shape index: {}]   ;;  %s1114_s13 = inlined_call_operand.vmem [shape: f32[1,128], index: 13, kind: input, shape index: {}]   ;;  %s1115_s14 = inlined_call_operand.hbm [shape: f32[8,128], index: 14, kind: output, shape index: {0}]   ;;  %s1116_s15 = inlined_call_operand.vmem [shape: f32[12,128], index: 15, kind: output, shape index: {1}]  }
   0x1   :  { %v65_v0 = vld [vmem:[%s1102_s1 + $0x70] sm:$0xff]  ;;  %v63_v1 = vld [vmem:[%s1102_s1 + $0x60] sm:$0xff]  ;;  %v66_v2 = vld [vmem:[%s1102_s1 + $0x78] sm:$0xff] }
   0x2   :  { %85 = vmatpush.msra.mxu2 %v65_v0  ;;  %v61_v3 = vld [vmem:[%s1102_s1 + $0x50] sm:$0xff]  ;;  %105 = vmatpush.msra.mxu1 %v66_v2  ;;  %v64_v4 = vld [vmem:[%s1102_s1 + $0x68] sm:$0xff]  ;;  %v62_v5 = vld [vmem:[%s1102_s1 + $0x58] sm:$0xff] }
   0x3   :  { %v59_v6 = vld [vmem:[%s1102_s1 + $0x40] sm:$0xff]  ;;  %v60_v7 = vld [vmem:[%s1102_s1 + $0x48] sm:$0xff]  ;;  %v57_v8 = vld [vmem:[%s1102_s1 + $0x30] sm:$0xff] }
   0x4   :  { %86 = vmatpush.msra.mxu2 %v63_v1  ;;  %106 = vmatpush.msra.mxu1 %v64_v4  ;;  %v154_v9 = vld [vmem:[%s1104_s3 + $0xf8] sm:$0xff]  ;;  %v185_v10 = vld [vmem:[%s1104_s3 + $0x1f0] sm:$0xff]  ;;  %v152_v12 = vld [vmem:[%s1104_s3 + $0xe8] sm:$0xff] }
   0x5   :  { %v58_v11 = vld [vmem:[%s1102_s1 + $0x38] sm:$0xff]  ;;  %233 = vmatpush.msra.mxu0 %v154_v9  ;;  %v55_v13 = vld [vmem:[%s1102_s1 + $0x20] sm:$0xff]  ;;  %213 = vmatpush.msra.mxu3 %v185_v10  ;;  %v56_v16 = vld [vmem:[%s1102_s1 + $0x28] sm:$0xff] }
   0x6   :  { %87 = vmatpush.msra.mxu2 %v61_v3  ;;  %107 = vmatpush.msra.mxu1 %v62_v5  ;;  %v183_v14 = vld [vmem:[%s1104_s3 + $0x1e0] sm:$0xff]  ;;  %v150_v15 = vld [vmem:[%s1104_s3 + $0xd8] sm:$0xff]  ;;  %v181_v17 = vld [vmem:[%s1104_s3 + $0x1d0] sm:$0xff] }
   0x7   :  { %234 = vmatpush.msra.mxu0 %v152_v12  ;;  %v53_v18 = vld [vmem:[%s1102_s1 + $0x10] sm:$0xff]  ;;  %214 = vmatpush.msra.mxu3 %v183_v14  ;;  %v148_v19 = vld [vmem:[%s1104_s3 + $0xc8] sm:$0xff]  ;;  %v54_v20 = vld [vmem:[%s1102_s1 + $0x18] sm:$0xff] }
   0x8   :  { %88 = vmatpush.msra.mxu2 %v59_v6  ;;  %108 = vmatpush.msra.mxu1 %v60_v7  ;;  %v179_v21 = vld [vmem:[%s1104_s3 + $0x1c0] sm:$0xff]  ;;  %v146_v23 = vld [vmem:[%s1104_s3 + $0xb8] sm:$0xff]  ;;  %v52_v25 = vld [vmem:[%s1102_s1 + $0x8] sm:$0xff] }
   0x9   :  { %235 = vmatpush.msra.mxu0 %v150_v15  ;;  %v51_v22 = vld [vmem:[%s1102_s1] sm:$0xff]  ;;  %215 = vmatpush.msra.mxu3 %v181_v17  ;;  %v153_v26 = vld [vmem:[%s1104_s3 + $0xf0] sm:$0xff]  ;;  %v186_v27 = vld [vmem:[%s1104_s3 + $0x1f8] sm:$0xff] }
   0xa   :  { %89 = vmatpush.msra.mxu2 %v57_v8  ;;  %109 = vmatpush.msra.mxu1 %v58_v11  ;;  %v50_v24 = vld [vmem:[%s1101_s0] sm:$0xff]  ;;  %v177_v28 = vld [vmem:[%s1104_s3 + $0x1b0] sm:$0xff]  ;;  %v144_v30 = vld [vmem:[%s1104_s3 + $0xa8] sm:$0xff] }
   0xb   :  { %236 = vmatpush.msra.mxu0 %v148_v19  ;;  %216 = vmatpush.msra.mxu3 %v179_v21  ;;  %v151_v29 = vld [vmem:[%s1104_s3 + $0xe0] sm:$0xff]  ;;  %v184_v31 = vld [vmem:[%s1104_s3 + $0x1e8] sm:$0xff]  ;;  %v149_v33 = vld [vmem:[%s1104_s3 + $0xd0] sm:$0xff] }
   0xc   :  { %90 = vmatpush.msra.mxu2 %v55_v13  ;;  %110 = vmatpush.msra.mxu1 %v56_v16  ;;  %v175_v32 = vld [vmem:[%s1104_s3 + $0x1a0] sm:$0xff]  ;;  %v142_v34 = vld [vmem:[%s1104_s3 + $0x98] sm:$0xff]  ;;  %v173_v36 = vld [vmem:[%s1104_s3 + $0x190] sm:$0xff] }
   0xd   :  { %237 = vmatpush.msra.mxu0 %v146_v23  ;;  %217 = vmatpush.msra.mxu3 %v177_v28  ;;  %v182_v35 = vld [vmem:[%s1104_s3 + $0x1d8] sm:$0xff]  ;;  %v147_v37 = vld [vmem:[%s1104_s3 + $0xc0] sm:$0xff]  ;;  %v140_v38 = vld [vmem:[%s1104_s3 + $0x88] sm:$0xff] }
   0xe   :  { %91 = vmatpush.msra.mxu2 %v53_v18  ;;  %111 = vmatpush.msra.mxu1 %v54_v20  ;;  %v145_v39 = vld [vmem:[%s1104_s3 + $0xb0] sm:$0xff]  ;;  %v180_v40 = vld [vmem:[%s1104_s3 + $0x1c8] sm:$0xff]  ;;  %v171_v41 = vld [vmem:[%s1104_s3 + $0x180] sm:$0xff] }
   0xf   :  { %238 = vmatpush.msra.mxu0 %v144_v30  ;;  %218 = vmatpush.msra.mxu3 %v175_v32  ;;  %v143_v42 = vld [vmem:[%s1104_s3 + $0xa0] sm:$0xff]  ;;  %v178_v43 = vld [vmem:[%s1104_s3 + $0x1b8] sm:$0xff]  ;;  %v169_v45 = vld [vmem:[%s1104_s3 + $0x170] sm:$0xff] }
  0x10   :  { %92 = vmatpush.msra.mxu2 %v51_v22  ;;  %112 = vmatpush.msra.mxu1 %v52_v25  ;;  %v138_v44 = vld [vmem:[%s1104_s3 + $0x78] sm:$0xff]  ;;  %v136_v46 = vld [vmem:[%s1104_s3 + $0x68] sm:$0xff] }
  0x11   :  { %521 = vmatmul.msk.f32.vlgmr.msra.gmra.mxu2 %vm73_vm0, %v50_v24  ;;  %522 = vmatmul.msk.f32.vlgmr.msra.gmra.mxu1 %vm73_vm0, %v50_v24 }
  0x12   :  { %193 = vmatpush.msrb.mxu2 %v153_v26  ;;  %253 = vmatpush.msrb.mxu1 %v186_v27 }
  0x13   :  { %239 = vmatpush.msra.mxu0 %v142_v34  ;;  %219 = vmatpush.msra.mxu3 %v173_v36 }
  0x14   :  { %194 = vmatpush.msrb.mxu2 %v151_v29  ;;  %254 = vmatpush.msrb.mxu1 %v184_v31 }
  0x15   :  { %240 = vmatpush.msra.mxu0 %v140_v38  ;;  %220 = vmatpush.msra.mxu3 %v171_v41 }
  0x16   :  { %195 = vmatpush.msrb.mxu2 %v149_v33  ;;  %255 = vmatpush.msrb.mxu1 %v182_v35 }
  0x18   :  { %196 = vmatpush.msrb.mxu2 %v147_v37  ;;  %256 = vmatpush.msrb.mxu1 %v180_v40 }
  0x19   :  { %21 = vsyncpa [#allocation3], 0  ;;  %v176_v47 = vld [vmem:[%s1104_s3 + $0x1a8] sm:$0xff]  ;;  %241 = vmatpush.msra.mxu0 %v138_v44  ;;  %v167_v48 = vld [vmem:[%s1104_s3 + $0x160] sm:$0xff]  ;;  %221 = vmatpush.msra.mxu3 %v169_v45  ;;  %vm366_vm3 = vcmask 261120   ;;  %vm418_vm5 = vcmask 785408  }
  0x1a   :  { %197 = vmatpush.msrb.mxu2 %v145_v39  ;;  %257 = vmatpush.msrb.mxu1 %v178_v43  ;;  %v141_v49 = vld [vmem:[%s1104_s3 + $0x90] sm:$0xff]  ;;  %v134_v50 = vld [vmem:[%s1104_s3 + $0x58] sm:$0xff]  ;;  %v139_v53 = vld [vmem:[%s1104_s3 + $0x80] sm:$0xff]  ;;  %s508_s23 = sshll.u32 %s1115_s14, 4  ;;  %s509_s23 = int_to_ptr.hbm [resolvable:$true] %s508_s23 }
  0x1b   :  { %v174_v51 = vld [vmem:[%s1104_s3 + $0x198] sm:$0xff]  ;;  %242 = vmatpush.msra.mxu0 %v136_v46  ;;  %v165_v52 = vld [vmem:[%s1104_s3 + $0x150] sm:$0xff]  ;;  %222 = vmatpush.msra.mxu3 %v167_v48  ;;  %v132_v54 = vld [vmem:[%s1104_s3 + $0x48] sm:$0xff] }
  0x1c   :  { %198 = vmatpush.msrb.mxu2 %v143_v42  ;;  %258 = vmatpush.msrb.mxu1 %v176_v47  ;;  %v172_v55 = vld [vmem:[%s1104_s3 + $0x188] sm:$0xff]  ;;  %v163_v56 = vld [vmem:[%s1104_s3 + $0x140] sm:$0xff]  ;;  %v137_v57 = vld [vmem:[%s1104_s3 + $0x70] sm:$0xff] }
  0x1d   :  { %243 = vmatpush.msra.mxu0 %v134_v50  ;;  %223 = vmatpush.msra.mxu3 %v165_v52  ;;  %v130_v58 = vld [vmem:[%s1104_s3 + $0x38] sm:$0xff]  ;;  %v135_v60 = vld [vmem:[%s1104_s3 + $0x60] sm:$0xff]  ;;  %v168_v61 = vld [vmem:[%s1104_s3 + $0x168] sm:$0xff] }
  0x1e   :  { %199 = vmatpush.msrb.mxu2 %v141_v49  ;;  %259 = vmatpush.msrb.mxu1 %v174_v51  ;;  %v170_v59 = vld [vmem:[%s1104_s3 + $0x178] sm:$0xff]  ;;  %v133_v62 = vld [vmem:[%s1104_s3 + $0x50] sm:$0xff]  ;;  %v131_v0 = vld [vmem:[%s1104_s3 + $0x40] sm:$0xff] }
  0x1f   :  { %244 = vmatpush.msra.mxu0 %v132_v54  ;;  %224 = vmatpush.msra.mxu3 %v163_v56  ;;  %v166_v63 = vld [vmem:[%s1104_s3 + $0x158] sm:$0xff]  ;;  %v164_v1 = vld [vmem:[%s1104_s3 + $0x148] sm:$0xff]  ;;  %v129_v2 = vld [vmem:[%s1104_s3 + $0x30] sm:$0xff] }
  0x20   :  { %200 = vmatpush.msrb.mxu2 %v139_v53  ;;  %260 = vmatpush.msrb.mxu1 %v172_v55  ;;  %v127_v3 = vld [vmem:[%s1104_s3 + $0x20] sm:$0xff]  ;;  %v161_v4 = vld [vmem:[%s1104_s3 + $0x130] sm:$0xff]  ;;  %v128_v5 = vld [vmem:[%s1104_s3 + $0x28] sm:$0xff] }
  0x21   :  { %245 = vmatpush.msra.mxu0 %v130_v58  ;;  %225 = vmatpush.msra.mxu3 %v161_v4  ;;  %v162_v6 = vld [vmem:[%s1104_s3 + $0x138] sm:$0xff]  ;;  %v125_v7 = vld [vmem:[%s1104_s3 + $0x10] sm:$0xff]  ;;  %v159_v8 = vld [vmem:[%s1104_s3 + $0x120] sm:$0xff] }
  0x22   :  { %201 = vmatpush.msrb.mxu2 %v137_v57  ;;  %261 = vmatpush.msrb.mxu1 %v170_v59  ;;  %v126_v9 = vld [vmem:[%s1104_s3 + $0x18] sm:$0xff]  ;;  %v160_v10 = vld [vmem:[%s1104_s3 + $0x128] sm:$0xff]  ;;  %v123_v11 = vld [vmem:[%s1104_s3] sm:$0xff] }
  0x23   :  { %246 = vmatpush.msra.mxu0 %v128_v5  ;;  %226 = vmatpush.msra.mxu3 %v159_v8  ;;  %v157_v12 = vld [vmem:[%s1104_s3 + $0x110] sm:$0xff]  ;;  %v124_v13 = vld [vmem:[%s1104_s3 + $0x8] sm:$0xff]  ;;  %v158_v14 = vld [vmem:[%s1104_s3 + $0x118] sm:$0xff] }
  0x24   :  { %202 = vmatpush.msrb.mxu2 %v135_v60  ;;  %262 = vmatpush.msrb.mxu1 %v168_v61  ;;  %v361_v15 = vld [vmem:[%s1109_s8 + $0x18] sm:$0xff]  ;;  %v155_v16 = vld [vmem:[%s1104_s3 + $0x100] sm:$0xff]  ;;  %v156_v17 = vld [vmem:[%s1104_s3 + $0x108] sm:$0xff] }
  0x25   :  { %247 = vmatpush.msra.mxu0 %v126_v9  ;;  %227 = vmatpush.msra.mxu3 %v157_v12  ;;  %v360_v18 = vld [vmem:[%s1109_s8 + $0x10] sm:$0xff]  ;;  %v359_v19 = vld [vmem:[%s1109_s8 + $0x8] sm:$0xff]  ;;  %v358_v20 = vld [vmem:[%s1109_s8] sm:$0xff] }
  0x26   :  { %203 = vmatpush.msrb.mxu2 %v133_v62  ;;  %263 = vmatpush.msrb.mxu1 %v166_v63  ;;  %v310_v21 = vld [vmem:[%s1106_s5 + $0xf8] sm:$0xff]  ;;  %v309_v22 = vld [vmem:[%s1106_s5 + $0xf0] sm:$0xff]  ;;  %v67_v23 = vld [vmem:[%s1103_s2] sm:$0x3] }
  0x27   :  { %248 = vmatpush.msra.mxu0 %v124_v13  ;;  %228 = vmatpush.msra.mxu3 %v155_v16  ;;  %v294_v24 = vld [vmem:[%s1106_s5 + $0x78] sm:$0xff]  ;;  %v293_v25 = vld [vmem:[%s1106_s5 + $0x70] sm:$0xff]  ;;  %v70_v26 = vperm.slane %v67_v23, 1  ;;  %v308_v27 = vld [vmem:[%s1106_s5 + $0xe8] sm:$0xff]  ;;  %v69_v37 = vperm.slane %v67_v23, 0 }
  0x28   :  { %204 = vmatpush.msrb.mxu2 %v131_v0  ;;  %264 = vmatpush.msrb.mxu1 %v164_v1  ;;  %v292_v28 = vld [vmem:[%s1106_s5 + $0x68] sm:$0xff]  ;;  %v307_v29 = vld [vmem:[%s1106_s5 + $0xe0] sm:$0xff]  ;;  %v413_v30 = vld [vmem:[%s1111_s10 + $0x58] sm:$0xff] }
  0x29   :  { %385 = vmatpush.msrb.mxu0 %v361_v15  ;;  %335 = vmatpush.msrb.mxu3 %v310_v21  ;;  %v291_v32 = vld [vmem:[%s1106_s5 + $0x60] sm:$0xff]  ;;  %v412_v33 = vld [vmem:[%s1111_s10 + $0x50] sm:$0xff]  ;;  %v306_v35 = vld [vmem:[%s1106_s5 + $0xd8] sm:$0xff] }
  0x2a   :  { %205 = vmatpush.msrb.mxu2 %v129_v2  ;;  %265 = vmatpush.msrb.mxu1 %v162_v6  ;;  %v411_v36 = vld [vmem:[%s1111_s10 + $0x48] sm:$0xff]  ;;  %v290_v38 = vld [vmem:[%s1106_s5 + $0x58] sm:$0xff]  ;;  %v305_v40 = vld [vmem:[%s1106_s5 + $0xd0] sm:$0xff] }
  0x2b   :  { %386 = vmatpush.msrb.mxu0 %v360_v18  ;;  %336 = vmatpush.msrb.mxu3 %v309_v22  ;;  %v289_v41 = vld [vmem:[%s1106_s5 + $0x50] sm:$0xff]  ;;  %v410_v44 = vld [vmem:[%s1111_s10 + $0x40] sm:$0xff]  ;;  %v304_v46 = vld [vmem:[%s1106_s5 + $0xc8] sm:$0xff] }
  0x2c   :  { %206 = vmatpush.msrb.mxu2 %v127_v3  ;;  %266 = vmatpush.msrb.mxu1 %v160_v10  ;;  %v288_v47 = vld [vmem:[%s1106_s5 + $0x48] sm:$0xff]  ;;  %v409_v48 = vld [vmem:[%s1111_s10 + $0x38] sm:$0xff]  ;;  %v303_v50 = vld [vmem:[%s1106_s5 + $0xc0] sm:$0xff] }
  0x2d   :  { %387 = vmatpush.msrb.mxu0 %v359_v19  ;;  %337 = vmatpush.msrb.mxu3 %v308_v27  ;;  %v287_v51 = vld [vmem:[%s1106_s5 + $0x40] sm:$0xff]  ;;  %v302_v53 = vld [vmem:[%s1106_s5 + $0xb8] sm:$0xff]  ;;  %v301_v55 = vld [vmem:[%s1106_s5 + $0xb0] sm:$0xff] }
  0x2e   :  { %207 = vmatpush.msrb.mxu2 %v125_v7  ;;  %267 = vmatpush.msrb.mxu1 %v158_v14  ;;  %v286_v54 = vld [vmem:[%s1106_s5 + $0x38] sm:$0xff]  ;;  %v300_v56 = vld [vmem:[%s1106_s5 + $0xa8] sm:$0xff]  ;;  %v356_v57 = vld [vmem:[%s1108_s7] sm:$0xff] }
  0x2f   :  { %388 = vmatpush.msrb.mxu0 %v358_v20  ;;  %338 = vmatpush.msrb.mxu3 %v307_v29  ;;  %v299_v58 = vld [vmem:[%s1106_s5 + $0xa0] sm:$0xff]  ;;  %v357_v59 = vld [vmem:[%s1108_s7 + $0x8] sm:$0xf]  ;;  %v285_v60 = vld [vmem:[%s1106_s5 + $0x30] sm:$0xff] }
  0x30   :  { %208 = vmatpush.msrb.mxu2 %v123_v11  ;;  %268 = vmatpush.msrb.mxu1 %v156_v17  ;;  %v298_v61 = vld [vmem:[%s1106_s5 + $0x98] sm:$0xff]  ;;  %v408_v62 = vld [vmem:[%s1111_s10 + $0x30] sm:$0xff]  ;;  %v284_v63 = vld [vmem:[%s1106_s5 + $0x28] sm:$0xff] }
  0x31   :  { %339 = vmatpush.msrb.mxu3 %v306_v35  ;;  %v297_v0 = vld [vmem:[%s1106_s5 + $0x90] sm:$0xff]  ;;  %v407_v1 = vld [vmem:[%s1111_s10 + $0x28] sm:$0xff]  ;;  %v283_v2 = vld [vmem:[%s1106_s5 + $0x20] sm:$0xff] }
  0x32   :  { %315 = vmatpush.msra.mxu2 %v294_v24  ;;  %429 = vmatpush.msra.mxu1 %v413_v30  ;;  %v296_v3 = vld [vmem:[%s1106_s5 + $0x88] sm:$0xff]  ;;  %v406_v4 = vld [vmem:[%s1111_s10 + $0x20] sm:$0xff]  ;;  %v282_v5 = vld [vmem:[%s1106_s5 + $0x18] sm:$0xff] }
  0x33   :  { %340 = vmatpush.msrb.mxu3 %v305_v40  ;;  %v295_v6 = vld [vmem:[%s1106_s5 + $0x80] sm:$0xff]  ;;  %v405_v7 = vld [vmem:[%s1111_s10 + $0x18] sm:$0xff]  ;;  %v281_v8 = vld [vmem:[%s1106_s5 + $0x10] sm:$0xff] }
  0x34   :  { %316 = vmatpush.msra.mxu2 %v293_v25  ;;  %430 = vmatpush.msra.mxu1 %v412_v33  ;;  %v404_v9 = vld [vmem:[%s1111_s10 + $0x10] sm:$0xff]  ;;  %v280_v10 = vld [vmem:[%s1106_s5 + $0x8] sm:$0xff]  ;;  %v279_v12 = vld [vmem:[%s1106_s5] sm:$0xff] }
  0x35   :  { %341 = vmatpush.msrb.mxu3 %v304_v46  ;;  %v403_v11 = vld [vmem:[%s1111_s10 + $0x8] sm:$0xff]  ;;  %v402_v13 = vld [vmem:[%s1111_s10] sm:$0xff]  ;;  %v465_v14 = vld [vmem:[%s1113_s12 + $0x58] sm:$0xff] }
  0x36   :  { %317 = vmatpush.msra.mxu2 %v292_v28  ;;  %431 = vmatpush.msra.mxu1 %v411_v36  ;;  %v464_v15 = vld [vmem:[%s1113_s12 + $0x50] sm:$0xff]  ;;  %v463_v16 = vld [vmem:[%s1113_s12 + $0x48] sm:$0xff]  ;;  %v187_v17 = vld [vmem:[%s1105_s4] sm:$0x3] }
  0x37   :  { %342 = vmatpush.msrb.mxu3 %v303_v50  ;;  %v462_v18 = vld [vmem:[%s1113_s12 + $0x40] sm:$0xff]  ;;  %v461_v19 = vld [vmem:[%s1113_s12 + $0x38] sm:$0xff]  ;;  %v190_v20 = vperm.slane %v187_v17, 1  ;;  %v460_v21 = vld [vmem:[%s1113_s12 + $0x30] sm:$0xff]  ;;  %v189_v28 = vperm.slane %v187_v17, 0 }
  0x38   :  { %318 = vmatpush.msra.mxu2 %v291_v32  ;;  %432 = vmatpush.msra.mxu1 %v410_v44  ;;  %v459_v24 = vld [vmem:[%s1113_s12 + $0x28] sm:$0xff]  ;;  %v457_v29 = vld [vmem:[%s1113_s12 + $0x18] sm:$0xff]  ;;  %v531_v50 = vld [vmem:[%s1112_s11] ss:$0 sm:$0xff]  ;;  %s560_s11 = smov [#allocation2]  }
  0x39   :  { %343 = vmatpush.msrb.mxu3 %v302_v53 }
  0x3a   :  { %319 = vmatpush.msra.mxu2 %v290_v38  ;;  %433 = vmatpush.msra.mxu1 %v409_v48  ;;  %v455_v48 = vld [vmem:[%s1113_s12 + $0x8] sm:$0xff] }
  0x3b   :  { %344 = vmatpush.msrb.mxu3 %v301_v55 }
  0x3c   :  { %320 = vmatpush.msra.mxu2 %v289_v41  ;;  %434 = vmatpush.msra.mxu1 %v408_v62 }
  0x3d   :  { %345 = vmatpush.msrb.mxu3 %v300_v56 }
  0x3e   :  { %321 = vmatpush.msra.mxu2 %v288_v47  ;;  %435 = vmatpush.msra.mxu1 %v407_v1  ;;  %v456_v47 = vld [vmem:[%s1113_s12 + $0x10] sm:$0xff] }
  0x3f   :  { %346 = vmatpush.msrb.mxu3 %v299_v58 }
  0x40   :  { %322 = vmatpush.msra.mxu2 %v287_v51  ;;  %436 = vmatpush.msra.mxu1 %v406_v4 }
  0x41   :  { %347 = vmatpush.msrb.mxu3 %v298_v61 }
  0x42   :  { %323 = vmatpush.msra.mxu2 %v286_v54  ;;  %437 = vmatpush.msra.mxu1 %v405_v7  ;;  %v532_v54 = vld [vmem:[%s1107_s6] ss:$0 sm:$0xff] }
  0x43   :  { %348 = vmatpush.msrb.mxu3 %v297_v0  ;;  %v533_v0 = vld [vmem:[%s1114_s13] ss:$0 sm:$0xff] }
  0x44   :  { %324 = vmatpush.msra.mxu2 %v285_v60  ;;  %438 = vmatpush.msra.mxu1 %v404_v9 }
  0x45   :  { %349 = vmatpush.msrb.mxu3 %v296_v3 }
  0x46   :  { %325 = vmatpush.msra.mxu2 %v284_v63  ;;  %439 = vmatpush.msra.mxu1 %v403_v11 }
  0x47   :  { %350 = vmatpush.msrb.mxu3 %v295_v6 }
  0x48   :  { %326 = vmatpush.msra.mxu2 %v283_v2  ;;  %440 = vmatpush.msra.mxu1 %v402_v13 }
  0x4a   :  { %327 = vmatpush.msra.mxu2 %v282_v5 }
  0x4c   :  { %328 = vmatpush.msra.mxu2 %v281_v8 }
  0x4e   :  { %329 = vmatpush.msra.mxu2 %v280_v10 }
  0x50   :  { %330 = vmatpush.msra.mxu2 %v279_v12 }
  0x8e   :  { %v114_v31 = vpop.f32.mrf.mxu1 }
  0x8f   :  { %v115_v34 = vadd.f32 %v114_v31, %v70_v26  ;;  %v458_v26 = vld [vmem:[%s1113_s12 + $0x20] sm:$0xff] }
  0x90   :  { %v530_v31 = vld [vmem:[%s1110_s9] ss:$0 sm:$0xff] }
  0x91   :  { %vm118_vm1 = vcmp.ge.f32.partialorder %v115_v34, 0.0  ;;  %v120_v39 = vmul.f32 0.01, %v115_v34 }
  0x93   :  { %v122_v43 = vsel %vm118_vm1, %v115_v34, %v120_v39 }
  0x94   :  { %v94_v42 = vpop.f32.mrf.mxu2  ;;  %229 = vmatmul.f32.vlgmr.msra.gmra.mxu3 %v122_v43  ;;  %269 = vmatmul.f32.vlgmr.msrb.gmra.mxu1 %v122_v43 }
  0x95   :  { %v95_v45 = vadd.f32 %v94_v42, %v69_v37 }
  0x97   :  { %v119_v49 = vmul.f32 0.01, %v95_v45  ;;  %vm117_vm2 = vcmp.ge.f32.partialorder %v95_v45, 0.0 }
  0x99   :  { %v121_v52 = vsel %vm117_vm2, %v95_v45, %v119_v49  ;;  %v454_v49 = vld [vmem:[%s1113_s12] sm:$0xff]  ;;  %s506_s12 = sshll.u32 %s560_s11, 4  ;;  %s507_s12 = int_to_ptr.vmem [resolvable:$true] %s506_s12 }
  0x9a   :  { %209 = vmatmul.f32.vlgmr.msrb.gmra.mxu2 %v121_v52  ;;  %249 = vmatmul.f32.vlgmr.msra.gmra.mxu0 %v121_v52 }
  0x9b   :  { %480 = vmatpush.msra.mxu0 %v465_v14 }
  0x9d   :  { %481 = vmatpush.msra.mxu0 %v464_v15 }
  0x9f   :  { %482 = vmatpush.msra.mxu0 %v463_v16 }
  0xa1   :  { %483 = vmatpush.msra.mxu0 %v462_v18 }
  0xa2   :  { %523 = vmatmul.msk.f32.vlgmr.msrb.gmra.mxu0 %vm366_vm3, %v356_v57 }
  0xa3   :  { %484 = vmatpush.msra.mxu0 %v461_v19 }
  0xa5   :  { %485 = vmatpush.msra.mxu0 %v460_v21 }
  0xa7   :  { %486 = vmatpush.msra.mxu0 %v459_v24 }
  0xa9   :  { %487 = vmatpush.msra.mxu0 %v458_v26 }
  0xaa   :  { %524 = vmatmul.msk.f32.gmra.mxu0 %vm366_vm3, %v357_v59 }
  0xab   :  { %488 = vmatpush.msra.mxu0 %v457_v29 }
  0xad   :  { %489 = vmatpush.msra.mxu0 %v456_v47 }
  0xaf   :  { %490 = vmatpush.msra.mxu0 %v455_v48 }
  0xb1   :  { %491 = vmatpush.msra.mxu0 %v454_v49 }
 0x111   :  { %v270_v23 = vpop.f32.mrf.mxu1 }
 0x117   :  { %v250_v22 = vpop.f32.mrf.mxu0  ;;  %v230_v33 = vpop.f32.mrf.mxu3 }
 0x118   :  { %v251_v25 = vadd.f32 %v250_v22, %v190_v20 }
 0x11a   :  { %v271_v27 = vadd.f32 %v270_v23, %v251_v25 }
 0x11c   :  { %v276_v30 = vmul.f32 0.01, %v271_v27  ;;  %vm274_vm4 = vcmp.ge.f32.partialorder %v271_v27, 0.0 }
 0x11d   :  { %v210_v32 = vpop.f32.mrf.mxu2 }
 0x11e   :  { %v211_v34 = vadd.f32 %v210_v32, %v189_v28  ;;  %v278_v35 = vsel %vm274_vm4, %v271_v27, %v276_v30 }
 0x11f   :  { %351 = vmatmul.f32.vlgmr.msrb.gmra.mxu3 %v278_v35  ;;  %v390_v36 = vpop.f32.mrf.mxu0 }
 0x120   :  { %v231_v37 = vadd.f32 %v230_v33, %v211_v34  ;;  %v391_v38 = vadd.f32 %v530_v31, %v390_v36 }
 0x122   :  { %vm273_vm6 = vcmp.ge.f32.partialorder %v231_v37, 0.0  ;;  %v275_v39 = vmul.f32 0.01, %v231_v37  ;;  %vm396_vm7 = vcmp.ge.f32.partialorder %v391_v38, 0.0  ;;  %v398_v40 = vmul.f32 0.01, %v391_v38 }
 0x124   :  { %v400_v41 = vsel %vm396_vm7, %v391_v38, %v398_v40  ;;  %v277_v42 = vsel %vm273_vm6, %v231_v37, %v275_v39 }
 0x125   :  { %331 = vmatmul.f32.vlgmr.msra.gmra.mxu2 %v277_v42  ;;  %525 = vmatmul.msk.f32.vlgmr.msra.gmra.mxu1 %vm418_vm5, %v400_v41 }
 0x127   :  { %v393_v43 = vpop.f32.mrf.mxu0 }
 0x128   :  { %v394_v44 = vadd.f32 %v530_v31, %v393_v43 }
 0x12a   :  { %v399_v45 = vmul.f32 0.01, %v394_v44  ;;  %vm397_vm8 = vcmp.ge.f32.partialorder %v394_v44, 0.0 }
 0x12c   :  { %v401_v46 = vsel %vm397_vm8, %v394_v44, %v399_v45 }
 0x12d   :  { %526 = vmatmul.msk.f32.gmra.mxu1 %vm418_vm5, %v401_v46 }
 0x1a2   :  { %v442_v51 = vpop.f32.mrf.mxu1  ;;  %v352_v58 = vpop.f32.mrf.mxu3 }
 0x1a3   :  { %v443_v52 = vadd.f32 %v531_v50, %v442_v51 }
 0x1a5   :  { %vm448_vm9 = vcmp.ge.f32.partialorder %v443_v52, 0.0  ;;  %v450_v53 = vmul.f32 0.01, %v443_v52 }
 0x1a7   :  { %v452_v55 = vsel %vm448_vm9, %v443_v52, %v450_v53 }
 0x1a8   :  { %v332_v56 = vpop.f32.mrf.mxu2  ;;  %527 = vmatmul.msk.f32.vlgmr.msra.gmra.mxu0 %vm418_vm5, %v452_v55 }
 0x1a9   :  { %v333_v57 = vadd.f32 %v532_v54, %v332_v56 }
 0x1aa   :  { %v445_v59 = vpop.f32.mrf.mxu1 }
 0x1ab   :  { %v353_v60 = vadd.f32 %v352_v58, %v333_v57  ;;  %v446_v61 = vadd.f32 %v531_v50, %v445_v59 }
 0x1ad   :  { %355 = vst [vmem:[#allocation2] sm:$0xff] %v353_v60  ;;  %v451_v62 = vmul.f32 0.01, %v446_v61  ;;  %vm449_vm10 = vcmp.ge.f32.partialorder %v446_v61, 0.0 }
 0x1ae   :  { %511 = dma.vmem_to_hbm [thread:$0]  %s507_s12, 128, %s509_s23, [#allocation3]  }
 0x1af   :  { %v453_v63 = vsel %vm449_vm10, %v446_v61, %v451_v62 }
 0x1b0   :  { %528 = vmatmul.msk.f32.gmra.mxu0 %vm418_vm5, %v453_v63 }
 0x225   :  { %v493_v1 = vpop.f32.mrf.mxu0 }
 0x226   :  { %v494_v2 = vadd.f32 %v533_v0, %v493_v1 }
 0x228   :  { %499 = vst [vmem:[%s1116_s15] sm:$0xff] %v494_v2 }
 0x22d   :  { %v496_v3 = vpop.f32.mrf.mxu0 }
 0x22e   :  { %v497_v4 = vadd.f32 %v533_v0, %v496_v3 }
 0x230   :  { %500 = vst [vmem:[%s1116_s15 + $0x8] sm:$0xf] %v497_v4 }
 0x231   :  { %558 = dma.done.wait [#allocation3], 128  }
 0x232   :  { %559 = vsyncadd [#allocation3], 4294967168 }
 0x233   :  { %520 = vsyncpa [#allocation3], 1 }

// kernel: _lambda_.4
= control target key start
LH: loop header
LB: loop body
LE: loop exit
PB: predicated region body
PF: predicated region fallthrough
CT: control target
= control target key end

     0   :  { %vm160_vm0 = vcmask 523264   ;;  %vm282_vm1 = vcmask 261120   ;;  %vm375_vm5 = vcmask 1041408   ;;  %s2147_s4 = inlined_call_operand.vmem [shape: f32[192,128], index: 4, kind: input, shape index: {}]   ;;  %s2148_s3 = inlined_call_operand.vmem [shape: f32[256,128], index: 3, kind: input, shape index: {}]   ;;  %s2149_s0 = inlined_call_operand.vmem [shape: f32[2,256], index: 0, kind: input, shape index: {}]   ;;  %s2150_s1 = inlined_call_operand.vmem [shape: f32[2,192], index: 1, kind: input, shape index: {}]   ;;  %s2151_s5 = inlined_call_operand.vmem [shape: f32[288,128], index: 5, kind: input, shape index: {}]   ;;  %s2152_s2 = inlined_call_operand.vmem [shape: f32[2,32], index: 2, kind: input, shape index: {}]   ;;  %s2153_s8 = inlined_call_operand.vmem [shape: f32[2,32,128], index: 8, kind: input, shape index: {}]   ;;  %s2154_s7 = inlined_call_operand.vmem [shape: f32[2,128,128], index: 7, kind: input, shape index: {}]   ;;  %s2155_s6 = inlined_call_operand.vmem [shape: f32[8,128], index: 6, kind: input, shape index: {}]   ;;  %s2156_s10 = inlined_call_operand.vmem [shape: f32[2,8,128], index: 10, kind: input, shape index: {}]   ;;  %s2157_s9 = inlined_call_operand.vmem [shape: f32[2,128,128], index: 9, kind: input, shape index: {}]   ;;  %s2158_s11 = inlined_call_operand.vmem [shape: f32[2,128,448], index: 11, kind: input, shape index: {}]   ;;  %s2159_s12 = inlined_call_operand.vmem [shape: f32[1,448], index: 12, kind: input, shape index: {}]   ;;  %s2160_s13 = inlined_call_operand.vmem [shape: f32[2,448], index: 13, kind: output, shape index: {}]  }
   0x1   :  { %v145_v0 = vld [vmem:[%s2147_s4 + $0x78] sm:$0xff]  ;;  %v144_v1 = vld [vmem:[%s2147_s4 + $0x70] sm:$0xff]  ;;  %v143_v3 = vld [vmem:[%s2147_s4 + $0x68] sm:$0xff] }
   0x2   :  { %163 = vmatpush.msra.mxu2 %v145_v0  ;;  %v62_v2 = vld [vmem:[%s2148_s3 + $0x78] sm:$0xff]  ;;  %v61_v4 = vld [vmem:[%s2148_s3 + $0x70] sm:$0xff]  ;;  %v60_v6 = vld [vmem:[%s2148_s3 + $0x68] sm:$0xff] }
   0x3   :  { %86 = vmatpush.msra.mxu0 %v62_v2  ;;  %v78_v5 = vld [vmem:[%s2148_s3 + $0xf8] sm:$0xff]  ;;  %v77_v7 = vld [vmem:[%s2148_s3 + $0xf0] sm:$0xff]  ;;  %v142_v8 = vld [vmem:[%s2147_s4 + $0x60] sm:$0xff] }
   0x4   :  { %164 = vmatpush.msra.mxu2 %v144_v1  ;;  %106 = vmatpush.msra.mxu1 %v78_v5  ;;  %v76_v9 = vld [vmem:[%s2148_s3 + $0xe8] sm:$0xff]  ;;  %v59_v10 = vld [vmem:[%s2148_s3 + $0x60] sm:$0xff]  ;;  %v141_v11 = vld [vmem:[%s2147_s4 + $0x58] sm:$0xff] }
   0x5   :  { %87 = vmatpush.msra.mxu0 %v61_v4  ;;  %v75_v12 = vld [vmem:[%s2148_s3 + $0xe0] sm:$0xff]  ;;  %v153_v13 = vld [vmem:[%s2147_s4 + $0xb8] sm:$0xff]  ;;  %v152_v15 = vld [vmem:[%s2147_s4 + $0xb0] sm:$0xff] }
   0x6   :  { %165 = vmatpush.msra.mxu2 %v143_v3  ;;  %107 = vmatpush.msra.mxu1 %v77_v7  ;;  %v58_v14 = vld [vmem:[%s2148_s3 + $0x58] sm:$0xff]  ;;  %v140_v16 = vld [vmem:[%s2147_s4 + $0x50] sm:$0xff]  ;;  %v151_v19 = vld [vmem:[%s2147_s4 + $0xa8] sm:$0xff] }
   0x7   :  { %88 = vmatpush.msra.mxu0 %v60_v6  ;;  %191 = vmatpush.msra.mxu3 %v153_v13  ;;  %v74_v17 = vld [vmem:[%s2148_s3 + $0xd8] sm:$0xff]  ;;  %v57_v18 = vld [vmem:[%s2148_s3 + $0x50] sm:$0xff]  ;;  %v139_v20 = vld [vmem:[%s2147_s4 + $0x48] sm:$0xff] }
   0x8   :  { %166 = vmatpush.msra.mxu2 %v142_v8  ;;  %108 = vmatpush.msra.mxu1 %v76_v9  ;;  %v73_v21 = vld [vmem:[%s2148_s3 + $0xd0] sm:$0xff]  ;;  %v56_v22 = vld [vmem:[%s2148_s3 + $0x48] sm:$0xff]  ;;  %v150_v23 = vld [vmem:[%s2147_s4 + $0xa0] sm:$0xff] }
   0x9   :  { %89 = vmatpush.msra.mxu0 %v59_v10  ;;  %192 = vmatpush.msra.mxu3 %v152_v15  ;;  %v138_v24 = vld [vmem:[%s2147_s4 + $0x40] sm:$0xff]  ;;  %v72_v25 = vld [vmem:[%s2148_s3 + $0xc8] sm:$0xff]  ;;  %v149_v27 = vld [vmem:[%s2147_s4 + $0x98] sm:$0xff] }
   0xa   :  { %167 = vmatpush.msra.mxu2 %v141_v11  ;;  %109 = vmatpush.msra.mxu1 %v75_v12  ;;  %v55_v26 = vld [vmem:[%s2148_s3 + $0x40] sm:$0xff]  ;;  %v137_v28 = vld [vmem:[%s2147_s4 + $0x38] sm:$0xff]  ;;  %v148_v32 = vld [vmem:[%s2147_s4 + $0x90] sm:$0xff] }
   0xb   :  { %90 = vmatpush.msra.mxu0 %v58_v14  ;;  %193 = vmatpush.msra.mxu3 %v151_v19  ;;  %v71_v29 = vld [vmem:[%s2148_s3 + $0xc0] sm:$0xff]  ;;  %v54_v31 = vld [vmem:[%s2148_s3 + $0x38] sm:$0xff]  ;;  %v136_v33 = vld [vmem:[%s2147_s4 + $0x30] sm:$0xff] }
   0xc   :  { %168 = vmatpush.msra.mxu2 %v140_v16  ;;  %110 = vmatpush.msra.mxu1 %v74_v17  ;;  %v46_v30 = vld [vmem:[%s2149_s0] sm:$0xf]  ;;  %v70_v34 = vld [vmem:[%s2148_s3 + $0xb8] sm:$0xff]  ;;  %v53_v35 = vld [vmem:[%s2148_s3 + $0x30] sm:$0xff] }
   0xd   :  { %91 = vmatpush.msra.mxu0 %v57_v18  ;;  %194 = vmatpush.msra.mxu3 %v150_v23  ;;  %81 = vst [vmem:[#allocation1] ss:$4 sm:$0xff] %v46_v30  ;;  %v147_v36 = vld [vmem:[%s2147_s4 + $0x88] sm:$0xff]  ;;  %v69_v38 = vld [vmem:[%s2148_s3 + $0xb0] sm:$0xff]  ;;  %v134_v39 = vld [vmem:[%s2147_s4 + $0x20] sm:$0xff] }
   0xe   :  { %169 = vmatpush.msra.mxu2 %v139_v20  ;;  %111 = vmatpush.msra.mxu1 %v73_v21  ;;  %v135_v37 = vld [vmem:[%s2147_s4 + $0x28] sm:$0xff]  ;;  %v146_v41 = vld [vmem:[%s2147_s4 + $0x80] sm:$0xff]  ;;  %v133_v42 = vld [vmem:[%s2147_s4 + $0x18] sm:$0xff] }
   0xf   :  { %92 = vmatpush.msra.mxu0 %v56_v22  ;;  %195 = vmatpush.msra.mxu3 %v149_v27  ;;  %v52_v40 = vld [vmem:[%s2148_s3 + $0x28] sm:$0xff]  ;;  %v129_v43 = vld [vmem:[%s2150_s1] sm:$0xf]  ;;  %v237_v47 = vld [vmem:[%s2151_s5 + $0xf8] sm:$0xff] }
  0x10   :  { %170 = vmatpush.msra.mxu2 %v138_v24  ;;  %112 = vmatpush.msra.mxu1 %v72_v25  ;;  %v68_v44 = vld [vmem:[%s2148_s3 + $0xa8] sm:$0xff]  ;;  %v51_v45 = vld [vmem:[%s2148_s3 + $0x20] sm:$0xff]  ;;  %v50_v50 = vld [vmem:[%s2148_s3 + $0x18] sm:$0xff] }
  0x11   :  { %93 = vmatpush.msra.mxu0 %v55_v26  ;;  %196 = vmatpush.msra.mxu3 %v148_v32  ;;  %v67_v46 = vld [vmem:[%s2148_s3 + $0xa0] sm:$0xff]  ;;  %v236_v51 = vld [vmem:[%s2151_s5 + $0xf0] sm:$0xff]  ;;  %v66_v53 = vld [vmem:[%s2148_s3 + $0x98] sm:$0xff] }
  0x12   :  { %171 = vmatpush.msra.mxu2 %v137_v28  ;;  %113 = vmatpush.msra.mxu1 %v71_v29  ;;  %v132_v52 = vld [vmem:[%s2147_s4 + $0x10] sm:$0xff]  ;;  %v235_v55 = vld [vmem:[%s2151_s5 + $0xe8] sm:$0xff]  ;;  %v234_v59 = vld [vmem:[%s2151_s5 + $0xe0] sm:$0xff] }
  0x13   :  { %94 = vmatpush.msra.mxu0 %v54_v31  ;;  %197 = vmatpush.msra.mxu3 %v147_v36  ;;  %v49_v54 = vld [vmem:[%s2148_s3 + $0x10] sm:$0xff]  ;;  %v131_v56 = vld [vmem:[%s2147_s4 + $0x8] sm:$0xff]  ;;  %v130_v60 = vld [vmem:[%s2147_s4] sm:$0xff] }
  0x14   :  { %172 = vmatpush.msra.mxu2 %v136_v33  ;;  %114 = vmatpush.msra.mxu1 %v70_v34  ;;  %v82_v48 = vld.sshfl [vmem:[#allocation1] sm:$0xff pattern:$0x73625140]  ;;  %v83_v49 = vld.sshfl [vmem:[#allocation1 + $0x8] sm:$0xff pattern:$0x73625140] }
  0x15   :  { %95 = vmatpush.msra.mxu0 %v53_v35  ;;  %198 = vmatpush.msra.mxu3 %v146_v41  ;;  %156 = vst [vmem:[#allocation1] ss:$4 sm:$0xff] %v129_v43  ;;  %v65_v57 = vld [vmem:[%s2148_s3 + $0x90] sm:$0xff]  ;;  %v48_v58 = vld [vmem:[%s2148_s3 + $0x8] sm:$0xff]  ;;  %v47_v61 = vld [vmem:[%s2148_s3] sm:$0xff] }
  0x16   :  { %173 = vmatpush.msra.mxu2 %v135_v37  ;;  %115 = vmatpush.msra.mxu1 %v69_v38  ;;  %v64_v62 = vld [vmem:[%s2148_s3 + $0x88] sm:$0xff]  ;;  %v221_v1 = vld [vmem:[%s2151_s5 + $0x78] sm:$0xff]  ;;  %v63_v3 = vld [vmem:[%s2148_s3 + $0x80] sm:$0xff] }
  0x17   :  { %96 = vmatpush.msra.mxu0 %v52_v40  ;;  %242 = vmatpush.msrb.mxu3 %v237_v47  ;;  %v233_v2 = vld [vmem:[%s2151_s5 + $0xd8] sm:$0xff]  ;;  %v220_v4 = vld [vmem:[%s2151_s5 + $0x70] sm:$0xff]  ;;  %v219_v6 = vld [vmem:[%s2151_s5 + $0x68] sm:$0xff] }
  0x18   :  { %174 = vmatpush.msra.mxu2 %v134_v39  ;;  %116 = vmatpush.msra.mxu1 %v68_v44  ;;  %v232_v5 = vld [vmem:[%s2151_s5 + $0xd0] sm:$0xff]  ;;  %v231_v7 = vld [vmem:[%s2151_s5 + $0xc8] sm:$0xff]  ;;  %v218_v8 = vld [vmem:[%s2151_s5 + $0x60] sm:$0xff] }
  0x19   :  { %97 = vmatpush.msra.mxu0 %v51_v45  ;;  %243 = vmatpush.msrb.mxu3 %v236_v51  ;;  %v230_v9 = vld [vmem:[%s2151_s5 + $0xc0] sm:$0xff]  ;;  %v217_v10 = vld [vmem:[%s2151_s5 + $0x58] sm:$0xff]  ;;  %v216_v12 = vld [vmem:[%s2151_s5 + $0x50] sm:$0xff] }
  0x1a   :  { %175 = vmatpush.msra.mxu2 %v133_v42  ;;  %117 = vmatpush.msra.mxu1 %v67_v46  ;;  %v229_v11 = vld [vmem:[%s2151_s5 + $0xb8] sm:$0xff]  ;;  %v228_v13 = vld [vmem:[%s2151_s5 + $0xb0] sm:$0xff]  ;;  %v215_v14 = vld [vmem:[%s2151_s5 + $0x48] sm:$0xff] }
  0x1b   :  { %98 = vmatpush.msra.mxu0 %v50_v50  ;;  %244 = vmatpush.msrb.mxu3 %v235_v55  ;;  %v227_v15 = vld [vmem:[%s2151_s5 + $0xa8] sm:$0xff]  ;;  %v214_v16 = vld [vmem:[%s2151_s5 + $0x40] sm:$0xff]  ;;  %v213_v18 = vld [vmem:[%s2151_s5 + $0x38] sm:$0xff] }
  0x1c   :  { %176 = vmatpush.msra.mxu2 %v132_v52  ;;  %118 = vmatpush.msra.mxu1 %v66_v53  ;;  %v157_v63 = vld.sshfl [vmem:[#allocation1] sm:$0xff pattern:$0x73625140]  ;;  %v158_v0 = vld.sshfl [vmem:[#allocation1 + $0x8] sm:$0xff pattern:$0x73625140] }
  0x1d   :  { %99 = vmatpush.msra.mxu0 %v49_v54  ;;  %245 = vmatpush.msrb.mxu3 %v234_v59  ;;  %v226_v17 = vld [vmem:[%s2151_s5 + $0xa0] sm:$0xff]  ;;  %v212_v19 = vld [vmem:[%s2151_s5 + $0x30] sm:$0xff]  ;;  %v225_v20 = vld [vmem:[%s2151_s5 + $0x98] sm:$0xff] }
  0x1e   :  { %177 = vmatpush.msra.mxu2 %v131_v56  ;;  %119 = vmatpush.msra.mxu1 %v65_v57  ;;  %v211_v21 = vld [vmem:[%s2151_s5 + $0x28] sm:$0xff]  ;;  %v224_v22 = vld [vmem:[%s2151_s5 + $0x90] sm:$0xff]  ;;  %v210_v23 = vld [vmem:[%s2151_s5 + $0x20] sm:$0xff] }
  0x1f   :  { %100 = vmatpush.msra.mxu0 %v48_v58  ;;  %998 = vmatmul.msk.f32.vlgmr.msra.gmra.mxu3 %vm160_vm0, %v158_v0  ;;  %v223_v24 = vld [vmem:[%s2151_s5 + $0x88] sm:$0xff]  ;;  %v209_v25 = vld [vmem:[%s2151_s5 + $0x18] sm:$0xff]  ;;  %v222_v26 = vld [vmem:[%s2151_s5 + $0x80] sm:$0xff] }
  0x20   :  { %178 = vmatpush.msra.mxu2 %v130_v60  ;;  %120 = vmatpush.msra.mxu1 %v64_v62  ;;  %v208_v27 = vld [vmem:[%s2151_s5 + $0x10] sm:$0xff]  ;;  %v241_v28 = vld [vmem:[%s2151_s5 + $0x118] sm:$0xff]  ;;  %v207_v29 = vld [vmem:[%s2151_s5 + $0x8] sm:$0xff] }
  0x21   :  { %179 = vmatmul.f32.vlgmr.msra.gmra.mxu2 %v157_v63  ;;  %101 = vmatpush.msra.mxu0 %v47_v61  ;;  %v240_v30 = vld [vmem:[%s2151_s5 + $0x110] sm:$0xff]  ;;  %v206_v31 = vld [vmem:[%s2151_s5] sm:$0xff]  ;;  %v239_v32 = vld [vmem:[%s2151_s5 + $0x108] sm:$0xff] }
  0x22   :  { %102 = vmatmul.f32.vlgmr.msra.gmra.mxu0 %v82_v48  ;;  %246 = vmatpush.msrb.mxu3 %v233_v2  ;;  %v238_v33 = vld [vmem:[%s2151_s5 + $0x100] sm:$0xff]  ;;  %v332_v35 = vld [vmem:[%s2153_s8 + $0x18] sm:$0xff]  ;;  %v327_v37 = vld [vmem:[%s2154_s7 + $0x70] sm:$0xff] }
  0x23   :  { %262 = vmatpush.msrb.mxu0 %v221_v1  ;;  %121 = vmatpush.msra.mxu1 %v63_v3  ;;  %v1470_v34 = vld [vmem:[%s2152_s2] sm:$0x3]  ;;  %v328_v36 = vld [vmem:[%s2154_s7 + $0x78] sm:$0xff]  ;;  %v326_v38 = vld [vmem:[%s2154_s7 + $0x68] sm:$0xff] }
  0x24   :  { %122 = vmatmul.f32.vlgmr.msra.gmra.mxu1 %v83_v49  ;;  %247 = vmatpush.msrb.mxu3 %v232_v5  ;;  %v325_v39 = vld [vmem:[%s2154_s7 + $0x60] sm:$0xff]  ;;  %v324_v40 = vld [vmem:[%s2154_s7 + $0x58] sm:$0xff]  ;;  %v323_v43 = vld [vmem:[%s2154_s7 + $0x50] sm:$0xff] }
  0x25   :  { %263 = vmatpush.msrb.mxu0 %v220_v4  ;;  %298 = vmatpush.msrb.mxu1 %v241_v28  ;;  %v45_v41 = vld [vmem:[%s2155_s6] sm:$0xff]  ;;  %v322_v44 = vld [vmem:[%s2154_s7 + $0x48] sm:$0xff]  ;;  %v320_v50 = vld [vmem:[%s2154_s7 + $0x38] sm:$0xff] }
  0x26   :  { %248 = vmatpush.msrb.mxu3 %v231_v7  ;;  %345 = vmatpush.msrb.mxu2 %v332_v35  ;;  %v79_v42 = vperm.slane %v45_v41, 0  ;;  %v321_v47 = vld [vmem:[%s2154_s7 + $0x40] sm:$0xff]  ;;  %v154_v48 = vperm.slane %v45_v41, 1  ;;  %v319_v54 = vld [vmem:[%s2154_s7 + $0x30] sm:$0xff]  ;;  %v318_v62 = vld [vmem:[%s2154_s7 + $0x28] sm:$0xff] }
  0x27   :  { %264 = vmatpush.msrb.mxu0 %v219_v6  ;;  %299 = vmatpush.msrb.mxu1 %v240_v30  ;;  %v331_v61 = vld [vmem:[%s2153_s8 + $0x10] sm:$0xff]  ;;  %v330_v63 = vld [vmem:[%s2153_s8 + $0x8] sm:$0xff]  ;;  %v317_v0 = vld [vmem:[%s2154_s7 + $0x20] sm:$0xff] }
  0x28   :  { %249 = vmatpush.msrb.mxu3 %v230_v9  ;;  %346 = vmatpush.msrb.mxu2 %v331_v61  ;;  %v329_v1 = vld [vmem:[%s2153_s8] sm:$0xff]  ;;  %v316_v2 = vld [vmem:[%s2154_s7 + $0x18] sm:$0xff]  ;;  %v315_v3 = vld [vmem:[%s2154_s7 + $0x10] sm:$0xff] }
  0x29   :  { %265 = vmatpush.msrb.mxu0 %v218_v8  ;;  %300 = vmatpush.msrb.mxu1 %v239_v32  ;;  %v314_v4 = vld [vmem:[%s2154_s7 + $0x8] sm:$0xff]  ;;  %v313_v5 = vld [vmem:[%s2154_s7] sm:$0xff]  ;;  %v434_v28 = vld [vmem:[%s2157_s9 + $0x70] sm:$0xff] }
  0x2a   :  { %250 = vmatpush.msrb.mxu3 %v229_v11  ;;  %347 = vmatpush.msrb.mxu2 %v330_v63 }
  0x2b   :  { %266 = vmatpush.msrb.mxu0 %v217_v10  ;;  %301 = vmatpush.msrb.mxu1 %v238_v33  ;;  %v307_v10 = vperm.slane %v45_v41, 2  ;;  %v432_v33 = vld [vmem:[%s2157_s9 + $0x60] sm:$0xff] }
  0x2c   :  { %251 = vmatpush.msrb.mxu3 %v228_v13  ;;  %999 = vmatmul.msk.f32.vlgmr.msrb.gmra.mxu1 %vm282_vm1, %v1470_v34 }
  0x2d   :  { %267 = vmatpush.msrb.mxu0 %v216_v12  ;;  %353 = vmatpush.msra.mxu1 %v328_v36 }
  0x2e   :  { %252 = vmatpush.msrb.mxu3 %v227_v15  ;;  %348 = vmatpush.msrb.mxu2 %v329_v1  ;;  %v1114_v15 = vmov 2.0  }
  0x2f   :  { %268 = vmatpush.msrb.mxu0 %v215_v14  ;;  %354 = vmatpush.msra.mxu1 %v327_v37  ;;  %1104 = vrcp.f32 %v1114_v15  ;;  %v431_v37 = vld [vmem:[%s2157_s9 + $0x58] sm:$0xff] }
  0x30   :  { %253 = vmatpush.msrb.mxu3 %v226_v17  ;;  %1000 = vmatmul.msk.f32.vlgmr.msrb.gmra.mxu2 %vm282_vm1, %v1470_v34  ;;  %v1542_v17 = vld [vmem:[%s2156_s10] sm:$0xff] }
  0x31   :  { %269 = vmatpush.msrb.mxu0 %v214_v16  ;;  %355 = vmatpush.msra.mxu1 %v326_v38  ;;  %v436_v15 = vperm.slane %v1542_v17, 3 }
  0x32   :  { %254 = vmatpush.msrb.mxu3 %v225_v20 }
  0x33   :  { %270 = vmatpush.msrb.mxu0 %v213_v18  ;;  %356 = vmatpush.msra.mxu1 %v325_v39  ;;  %v430_v39 = vld [vmem:[%s2157_s9 + $0x50] sm:$0xff] }
  0x34   :  { %255 = vmatpush.msrb.mxu3 %v224_v22 }
  0x35   :  { %271 = vmatpush.msrb.mxu0 %v212_v19  ;;  %357 = vmatpush.msra.mxu1 %v324_v40  ;;  %v1105_v16 = vpop.eup %1104  ;;  %v373_v19 = vperm.slane %v1542_v17, 0 }
  0x36   :  { %256 = vmatpush.msrb.mxu3 %v223_v24  ;;  %v384_v20 = vmul.f32 2.0, %v1105_v16  ;;  %vm388_vm6 = vweird.f32 %v1105_v16 }
  0x37   :  { %272 = vmatpush.msrb.mxu0 %v211_v21  ;;  %358 = vmatpush.msra.mxu1 %v323_v43 }
  0x38   :  { %257 = vmatpush.msrb.mxu3 %v222_v26  ;;  %v385_v24 = vsub.f32 1.0, %v384_v20 }
  0x39   :  { %273 = vmatpush.msrb.mxu0 %v210_v23  ;;  %359 = vmatpush.msra.mxu1 %v322_v44  ;;  %v428_v44 = vld [vmem:[%s2157_s9 + $0x40] sm:$0xff] }
  0x3b   :  { %274 = vmatpush.msrb.mxu0 %v209_v25  ;;  %360 = vmatpush.msra.mxu1 %v321_v47  ;;  %v435_v25 = vld [vmem:[%s2157_s9 + $0x78] sm:$0xff] }
  0x3c   :  { %437 = vmatpush.msra.mxu2 %v435_v25  ;;  %v1016_v25 = vld [vmem:[%s2154_s7 + $0xf0] sm:$0xff] }
  0x3d   :  { %275 = vmatpush.msrb.mxu0 %v208_v27  ;;  %361 = vmatpush.msra.mxu1 %v320_v50  ;;  %v425_v50 = vld [vmem:[%s2157_s9 + $0x28] sm:$0xff] }
  0x3e   :  { %438 = vmatpush.msra.mxu2 %v434_v28 }
  0x3f   :  { %276 = vmatpush.msrb.mxu0 %v207_v29  ;;  %362 = vmatpush.msra.mxu1 %v319_v54  ;;  %v386_v29 = vmul.f32 %v1105_v16, %v385_v24  ;;  %v423_v54 = vld [vmem:[%s2157_s9 + $0x18] sm:$0xff] }
  0x41   :  { %277 = vmatpush.msrb.mxu0 %v206_v31  ;;  %363 = vmatpush.msra.mxu1 %v318_v62  ;;  %v433_v31 = vld [vmem:[%s2157_s9 + $0x68] sm:$0xff]  ;;  %v387_v35 = vadd.f32 %v1105_v16, %v386_v29  ;;  %v1014_v29 = vld [vmem:[%s2154_s7 + $0xe0] sm:$0xff] }
  0x42   :  { %439 = vmatpush.msra.mxu2 %v433_v31  ;;  %v1013_v31 = vld [vmem:[%s2154_s7 + $0xd8] sm:$0xff] }
  0x43   :  { %364 = vmatpush.msra.mxu1 %v317_v0  ;;  %v1564_v40 = vsel %vm388_vm6, %v1105_v16, %v387_v35  ;;  %v1020_v16 = vld [vmem:[%s2153_s8 + $0x30] sm:$0xff]  ;;  %v1011_v35 = vld [vmem:[%s2154_s7 + $0xc8] sm:$0xff] }
  0x44   :  { %440 = vmatpush.msra.mxu2 %v432_v33 }
  0x45   :  { %365 = vmatpush.msra.mxu1 %v316_v2 }
  0x46   :  { %441 = vmatpush.msra.mxu2 %v431_v37  ;;  %v1010_v37 = vld [vmem:[%s2154_s7 + $0xc0] sm:$0xff] }
  0x47   :  { %366 = vmatpush.msra.mxu1 %v315_v3 }
  0x48   :  { %442 = vmatpush.msra.mxu2 %v430_v39  ;;  %v1009_v39 = vld [vmem:[%s2154_s7 + $0xb8] sm:$0xff] }
  0x49   :  { %367 = vmatpush.msra.mxu1 %v314_v4 }
  0x4b   :  { %368 = vmatpush.msra.mxu1 %v313_v5 }
  0x9f   :  { %v103_v45 = vpop.f32.mrf.mxu0 }
  0xa0   :  { %v104_v46 = vadd.f32 %v103_v45, %v79_v42  ;;  %v429_v42 = vld [vmem:[%s2157_s9 + $0x48] sm:$0xff] }
  0xa1   :  { %v123_v49 = vpop.f32.mrf.mxu1  ;;  %443 = vmatpush.msra.mxu2 %v429_v42  ;;  %v1008_v42 = vld [vmem:[%s2154_s7 + $0xb0] sm:$0xff] }
  0xa2   :  { %v124_v51 = vadd.f32 %v123_v49, %v104_v46  ;;  %v200_v53 = vpop.f32.mrf.mxu3  ;;  %v427_v46 = vld [vmem:[%s2157_s9 + $0x38] sm:$0xff] }
  0xa3   :  { %444 = vmatpush.msra.mxu2 %v428_v44  ;;  %v1007_v44 = vld [vmem:[%s2154_s7 + $0xa8] sm:$0xff] }
  0xa4   :  { %v180_v52 = vpop.f32.mrf.mxu2  ;;  %v127_v56 = vmul.f32 0.01, %v124_v51  ;;  %vm126_vm2 = vcmp.ge.f32.partialorder %v124_v51, 0.0 }
  0xa5   :  { %v181_v55 = vadd.f32 %v180_v52, %v154_v48  ;;  %445 = vmatpush.msra.mxu2 %v427_v46  ;;  %v426_v48 = vld [vmem:[%s2157_s9 + $0x30] sm:$0xff]  ;;  %v424_v52 = vld [vmem:[%s2157_s9 + $0x20] sm:$0xff] }
  0xa6   :  { %v128_v58 = vsel %vm126_vm2, %v124_v51, %v127_v56  ;;  %v422_v56 = vld [vmem:[%s2157_s9 + $0x10] sm:$0xff]  ;;  %v1006_v46 = vld [vmem:[%s2154_s7 + $0xa0] sm:$0xff] }
  0xa7   :  { %v201_v57 = vadd.f32 %v200_v53, %v181_v55  ;;  %278 = vmatmul.f32.vlgmr.msrb.gmra.mxu0 %v128_v58  ;;  %446 = vmatpush.msra.mxu2 %v426_v48  ;;  %v1005_v48 = vld [vmem:[%s2154_s7 + $0x98] sm:$0xff] }
  0xa9   :  { %v204_v59 = vmul.f32 0.01, %v201_v57  ;;  %vm203_vm3 = vcmp.ge.f32.partialorder %v201_v57, 0.0  ;;  %v303_v6 = vpop.f32.mrf.mxu1  ;;  %447 = vmatpush.msra.mxu2 %v425_v50  ;;  %v1004_v50 = vld [vmem:[%s2154_s7 + $0x90] sm:$0xff] }
  0xab   :  { %v205_v60 = vsel %vm203_vm3, %v201_v57, %v204_v59  ;;  %448 = vmatpush.msra.mxu2 %v424_v52  ;;  %v421_v57 = vld [vmem:[%s2157_s9 + $0x8] sm:$0xff]  ;;  %v420_v59 = vld [vmem:[%s2157_s9] sm:$0xff] }
  0xac   :  { %258 = vmatmul.f32.vlgmr.msrb.gmra.mxu3 %v205_v60  ;;  %v1003_v52 = vld [vmem:[%s2154_s7 + $0x88] sm:$0xff] }
  0xad   :  { %449 = vmatpush.msra.mxu2 %v423_v54 }
  0xaf   :  { %450 = vmatpush.msra.mxu2 %v422_v56 }
  0xb1   :  { %451 = vmatpush.msra.mxu2 %v421_v57 }
  0xb3   :  { %v350_v18 = vpop.f32.mrf.mxu2  ;;  %452 = vmatpush.msra.mxu2 %v420_v59 }
 0x124   :  { %v279_v7 = vpop.f32.mrf.mxu0 }
 0x12f   :  { %v259_v8 = vpop.f32.mrf.mxu3 }
 0x130   :  { %v280_v9 = vadd.f32 %v279_v7, %v259_v8 }
 0x132   :  { %v306_v11 = vadd.f32 %v303_v6, %v280_v9  ;;  %v413_v6 = vperm.slane %v1542_v17, 1  ;;  %v415_v9 = vperm.slane %v1542_v17, 2 }
 0x134   :  { %v308_v12 = vadd.f32 %v307_v10, %v306_v11 }
 0x136   :  { %v310_v13 = vmul.f32 0.01, %v308_v12  ;;  %vm309_vm4 = vcmp.ge.f32.partialorder %v308_v12, 0.0 }
 0x138   :  { %v311_v14 = vsel %vm309_vm4, %v308_v12, %v310_v13 }
 0x139   :  { %369 = vmatmul.f32.vlgmr.msra.gmra.mxu1 %v311_v14  ;;  %v1021_v14 = vld [vmem:[%s2153_s8 + $0x38] sm:$0xff] }
 0x13a   :  { %594 = vmatpush.msra.mxu3 %v1021_v14 }
 0x13c   :  { %595 = vmatpush.msra.mxu3 %v1020_v16  ;;  %v1037_v16 = vld [vmem:[%s2157_s9 + $0xf0] sm:$0xff] }
 0x1b6   :  { %v370_v21 = vpop.f32.mrf.mxu1 }
 0x1b7   :  { %v371_v22 = vadd.f32 %v370_v21, %v350_v18  ;;  %v1019_v18 = vld [vmem:[%s2153_s8 + $0x28] sm:$0xff]  ;;  %v1018_v21 = vld [vmem:[%s2153_s8 + $0x20] sm:$0xff] }
 0x1b8   :  { %596 = vmatpush.msra.mxu3 %v1019_v18 }
 0x1b9   :  { %v374_v23 = vadd.f32 %v373_v19, %v371_v22  ;;  %v1017_v22 = vld [vmem:[%s2154_s7 + $0xf8] sm:$0xff] }
 0x1ba   :  { %597 = vmatpush.msra.mxu3 %v1018_v21  ;;  %v1035_v21 = vld [vmem:[%s2157_s9 + $0xe0] sm:$0xff] }
 0x1bb   :  { %v376_v26 = vsel %vm375_vm5, %v374_v23, 0.0  ;;  %1022 = vmatmul.msk.f32.vlgmr.msra.gmra.mxu3 %vm282_vm1, %v1470_v34 }
 0x1bc   :  { %v377_v27 = vrot.slane %v376_v26, 4  ;;  %602 = vmatpush.msrb.mxu3 %v1017_v22 }
 0x1be   :  { %v378_v30 = vadd.f32 %v377_v27, %v376_v26  ;;  %603 = vmatpush.msrb.mxu3 %v1016_v25  ;;  %v1015_v27 = vld [vmem:[%s2154_s7 + $0xe8] sm:$0xff]  ;;  %v1033_v25 = vld [vmem:[%s2157_s9 + $0xd0] sm:$0xff] }
 0x1c0   :  { %v379_v32 = vrot.slane %v378_v30, 2  ;;  %604 = vmatpush.msrb.mxu3 %v1015_v27  ;;  %v1032_v27 = vld [vmem:[%s2157_s9 + $0xc8] sm:$0xff] }
 0x1c2   :  { %v380_v36 = vadd.f32 %v379_v32, %v378_v30  ;;  %605 = vmatpush.msrb.mxu3 %v1014_v29  ;;  %v1012_v32 = vld [vmem:[%s2154_s7 + $0xd0] sm:$0xff]  ;;  %v1031_v29 = vld [vmem:[%s2157_s9 + $0xc0] sm:$0xff] }
 0x1c4   :  { %v381_v38 = vrot.slane %v380_v36, 1  ;;  %606 = vmatpush.msrb.mxu3 %v1013_v31  ;;  %v1030_v31 = vld [vmem:[%s2157_s9 + $0xb8] sm:$0xff] }
 0x1c6   :  { %v382_v41 = vadd.f32 %v381_v38, %v380_v36  ;;  %607 = vmatpush.msrb.mxu3 %v1012_v32  ;;  %v1029_v32 = vld [vmem:[%s2157_s9 + $0xb0] sm:$0xff] }
 0x1c8   :  { %v390_v43 = vmul.f32 %v1564_v40, %v382_v41  ;;  %608 = vmatpush.msrb.mxu3 %v1011_v35  ;;  %v1028_v35 = vld [vmem:[%s2157_s9 + $0xa8] sm:$0xff] }
 0x1ca   :  { %v391_v45 = vsub.f32 %v374_v23, %v390_v43  ;;  %609 = vmatpush.msrb.mxu3 %v1010_v37  ;;  %v1027_v37 = vld [vmem:[%s2157_s9 + $0xa0] sm:$0xff] }
 0x1cc   :  { %v392_v47 = vmul.f32 %v391_v45, %v391_v45  ;;  %610 = vmatpush.msrb.mxu3 %v1009_v39  ;;  %v1026_v39 = vld [vmem:[%s2157_s9 + $0x98] sm:$0xff] }
 0x1ce   :  { %v393_v49 = vsel %vm375_vm5, %v392_v47, 0.0  ;;  %611 = vmatpush.msrb.mxu3 %v1008_v42  ;;  %v1025_v42 = vld [vmem:[%s2157_s9 + $0x90] sm:$0xff] }
 0x1cf   :  { %v394_v51 = vrot.slane %v393_v49, 4 }
 0x1d0   :  { %612 = vmatpush.msrb.mxu3 %v1007_v44 }
 0x1d1   :  { %v395_v53 = vadd.f32 %v394_v51, %v393_v49 }
 0x1d2   :  { %613 = vmatpush.msrb.mxu3 %v1006_v46 }
 0x1d3   :  { %v396_v55 = vrot.slane %v395_v53, 2 }
 0x1d4   :  { %614 = vmatpush.msrb.mxu3 %v1005_v48 }
 0x1d5   :  { %v397_v58 = vadd.f32 %v396_v55, %v395_v53  ;;  %v1002_v53 = vld [vmem:[%s2154_s7 + $0x80] sm:$0xff] }
 0x1d6   :  { %615 = vmatpush.msrb.mxu3 %v1004_v50 }
 0x1d7   :  { %v398_v60 = vrot.slane %v397_v58, 1 }
 0x1d8   :  { %616 = vmatpush.msrb.mxu3 %v1003_v52 }
 0x1d9   :  { %v399_v61 = vadd.f32 %v398_v60, %v397_v58 }
 0x1da   :  { %617 = vmatpush.msrb.mxu3 %v1002_v53 }
 0x1db   :  { %v400_v62 = vmul.f32 %v399_v61, %v1564_v40 }
 0x1dd   :  { %v401_v63 = vadd.f32 1e-05, %v400_v62 }
 0x1df   :  { %1106 = vrsqrt.f32 %v401_v63  ;;  %vm408_vm8 = vweird.f32 %v401_v63 }
 0x1e5   :  { %v1107_v0 = vpop.eup %1106 }
 0x1e6   :  { %v403_v1 = vmul.f32 %v1107_v0, %v401_v63  ;;  %vm409_vm7 = vweird.f32 %v1107_v0 }
 0x1e7   :  { %vm410_vm9 = vmor %vm408_vm8, %vm409_vm7  ;;  %vm988_vm8 = vcmask 1043458  }
 0x1e8   :  { %v404_v2 = vmul.f32 %v1107_v0, %v403_v1 }
 0x1ea   :  { %v405_v3 = vmul.f32 0.5, %v404_v2 }
 0x1ec   :  { %v406_v4 = vsub.f32 1.5, %v405_v3  ;;  %v489_v3 = vperm.slane %v1542_v17, 5 }
 0x1ee   :  { %v407_v5 = vmul.f32 %v1107_v0, %v406_v4 }
 0x1f0   :  { %v411_v7 = vsel %vm410_vm9, %v1107_v0, %v407_v5  ;;  %v487_v0 = vperm.slane %v1542_v17, 4  ;;  %v1038_v17 = vld [vmem:[%s2157_s9 + $0xf8] sm:$0xff]  ;;  %vm983_vm9 = vcmask 1045508  }
 0x1f1   :  { %v412_v8 = vmul.f32 %v411_v7, %v391_v45  ;;  %679 = vmatpush.msra.mxu0 %v1038_v17  ;;  %v1087_v17 = vld [vmem:[%s2158_s11 + $0x380] sm:$0xff] }
 0x1f3   :  { %v414_v10 = vmul.f32 %v413_v6, %v412_v8  ;;  %680 = vmatpush.msra.mxu0 %v1037_v16  ;;  %v1090_v16 = vld [vmem:[%s2158_s11 + $0x398] sm:$0xff] }
 0x1f5   :  { %v416_v11 = vadd.f32 %v415_v9, %v414_v10  ;;  %v1676_v9 = vld [vmem:[%s2156_s10 + $0x8] sm:$0xff] }
 0x1f6   :  { %v622_v10 = vperm.slane %v1676_v9, 0 }
 0x1f7   :  { %vm417_vm10 = vcmp.ge.f32.partialorder %v416_v11, 0.0  ;;  %v418_v12 = vmul.f32 0.01, %v416_v11 }
 0x1f9   :  { %v419_v13 = vsel %vm417_vm10, %v416_v11, %v418_v12  ;;  %vm989_vm10 = vmor %vm988_vm8, %vm375_vm5 }
 0x1fa   :  { %453 = vmatmul.f32.vlgmr.msra.gmra.mxu2 %v419_v13 }
 0x23e   :  { %v599_v8 = vpop.f32.mrf.mxu3 }
 0x27d   :  { %v454_v19 = vpop.f32.mrf.mxu2 }
 0x27e   :  { %v455_v20 = vadd.f32 %v454_v19, %v436_v15  ;;  %v1036_v19 = vld [vmem:[%s2157_s9 + $0xe8] sm:$0xff] }
 0x27f   :  { %681 = vmatpush.msra.mxu0 %v1036_v19  ;;  %v1084_v19 = vld [vmem:[%s2158_s11 + $0x368] sm:$0xff] }
 0x280   :  { %v457_v23 = vsel %vm375_vm5, %v455_v20, 0.0 }
 0x281   :  { %v458_v24 = vrot.slane %v457_v23, 4  ;;  %682 = vmatpush.msra.mxu0 %v1035_v21  ;;  %v1086_v21 = vld [vmem:[%s2158_s11 + $0x378] sm:$0xff] }
 0x283   :  { %v459_v26 = vadd.f32 %v458_v24, %v457_v23  ;;  %v1034_v23 = vld [vmem:[%s2157_s9 + $0xd8] sm:$0xff] }
 0x284   :  { %683 = vmatpush.msra.mxu0 %v1034_v23  ;;  %v1080_v23 = vld [vmem:[%s2158_s11 + $0x348] sm:$0xff] }
 0x285   :  { %v460_v28 = vrot.slane %v459_v26, 2 }
 0x286   :  { %684 = vmatpush.msra.mxu0 %v1033_v25  ;;  %v1082_v25 = vld [vmem:[%s2158_s11 + $0x358] sm:$0xff] }
 0x287   :  { %v461_v30 = vadd.f32 %v460_v28, %v459_v26 }
 0x288   :  { %685 = vmatpush.msra.mxu0 %v1032_v27  ;;  %v1076_v27 = vld [vmem:[%s2158_s11 + $0x328] sm:$0xff] }
 0x289   :  { %v462_v34 = vrot.slane %v461_v30, 1 }
 0x28a   :  { %686 = vmatpush.msra.mxu0 %v1031_v29  ;;  %v1078_v29 = vld [vmem:[%s2158_s11 + $0x338] sm:$0xff] }
 0x28b   :  { %v463_v33 = vadd.f32 %v462_v34, %v461_v30 }
 0x28c   :  { %687 = vmatpush.msra.mxu0 %v1030_v31  ;;  %v1072_v31 = vld [vmem:[%s2158_s11 + $0x308] sm:$0xff] }
 0x28d   :  { %v464_v36 = vmul.f32 %v463_v33, %v1564_v40 }
 0x28e   :  { %688 = vmatpush.msra.mxu0 %v1029_v32  ;;  %v1074_v32 = vld [vmem:[%s2158_s11 + $0x318] sm:$0xff] }
 0x28f   :  { %v465_v38 = vsub.f32 %v455_v20, %v464_v36 }
 0x290   :  { %689 = vmatpush.msra.mxu0 %v1028_v35  ;;  %v1068_v35 = vld [vmem:[%s2158_s11 + $0x2e8] sm:$0xff] }
 0x291   :  { %v466_v41 = vmul.f32 %v465_v38, %v465_v38 }
 0x292   :  { %690 = vmatpush.msra.mxu0 %v1027_v37  ;;  %v1070_v37 = vld [vmem:[%s2158_s11 + $0x2f8] sm:$0xff] }
 0x293   :  { %v467_v43 = vsel %vm375_vm5, %v466_v41, 0.0 }
 0x294   :  { %v468_v45 = vrot.slane %v467_v43, 4  ;;  %691 = vmatpush.msra.mxu0 %v1026_v39  ;;  %v1063_v39 = vld [vmem:[%s2158_s11 + $0x2c0] sm:$0xff] }
 0x296   :  { %v469_v47 = vadd.f32 %v468_v45, %v467_v43  ;;  %v1024_v43 = vld [vmem:[%s2157_s9 + $0x88] sm:$0xff]  ;;  %692 = vmatpush.msra.mxu0 %v1025_v42  ;;  %v1023_v45 = vld [vmem:[%s2157_s9 + $0x80] sm:$0xff]  ;;  %v1065_v42 = vld [vmem:[%s2158_s11 + $0x2d0] sm:$0xff] }
 0x298   :  { %v470_v49 = vrot.slane %v469_v47, 2  ;;  %693 = vmatpush.msra.mxu0 %v1024_v43  ;;  %v1066_v43 = vld [vmem:[%s2158_s11 + $0x2d8] sm:$0xff] }
 0x29a   :  { %v471_v51 = vadd.f32 %v470_v49, %v469_v47  ;;  %694 = vmatpush.msra.mxu0 %v1023_v45  ;;  %v1060_v45 = vld [vmem:[%s2158_s11 + $0x2a8] sm:$0xff] }
 0x29c   :  { %v472_v54 = vrot.slane %v471_v51, 1 }
 0x29e   :  { %v473_v55 = vadd.f32 %v472_v54, %v471_v51 }
 0x2a0   :  { %v474_v56 = vmul.f32 %v473_v55, %v1564_v40 }
 0x2a2   :  { %v475_v57 = vadd.f32 1e-05, %v474_v56  ;;  %v654_v56 = vperm.slane %v1676_v9, 1 }
 0x2a4   :  { %1108 = vrsqrt.f32 %v475_v57  ;;  %vm482_vm12 = vweird.f32 %v475_v57 }
 0x2aa   :  { %v1109_v58 = vpop.eup %1108 }
 0x2ab   :  { %v477_v59 = vmul.f32 %v1109_v58, %v475_v57  ;;  %vm483_vm11 = vweird.f32 %v1109_v58 }
 0x2ac   :  { %vm484_vm13 = vmor %vm482_vm12, %vm483_vm11  ;;  %vm991_vm12 = vcmask 523270  }
 0x2ad   :  { %v478_v60 = vmul.f32 %v1109_v58, %v477_v59  ;;  %v656_v59 = vperm.slane %v1676_v9, 2  ;;  %vm990_vm11 = vmor %vm983_vm9, %vm989_vm10 }
 0x2af   :  { %v479_v61 = vmul.f32 0.5, %v478_v60 }
 0x2b1   :  { %v480_v62 = vsub.f32 1.5, %v479_v61 }
 0x2b3   :  { %v481_v63 = vmul.f32 %v1109_v58, %v480_v62 }
 0x2b5   :  { %v485_v1 = vsel %vm484_vm13, %v1109_v58, %v481_v63  ;;  %vm985_vm13 = vcmask 1043456  }
 0x2b6   :  { %v486_v2 = vmul.f32 %v485_v1, %v465_v38  ;;  %v1100_v1 = vld [vmem:[%s2158_s11 + $0x3e8] sm:$0xff] }
 0x2b7   :  { %821 = vmatpush.msrb.mxu2 %v1100_v1  ;;  %v1043_v1 = vld [vmem:[%s2158_s11 + $0x220] sm:$0xff] }
 0x2b8   :  { %v488_v4 = vmul.f32 %v487_v0, %v486_v2  ;;  %v1099_v0 = vld [vmem:[%s2158_s11 + $0x3e0] sm:$0xff]  ;;  %v1101_v2 = vld [vmem:[%s2158_s11 + $0x3f0] sm:$0xff] }
 0x2b9   :  { %801 = vmatpush.msrb.mxu1 %v1099_v0  ;;  %841 = vmatpush.msra.mxu3 %v1101_v2  ;;  %v1050_v0 = vld [vmem:[%s2158_s11 + $0x258] sm:$0xff]  ;;  %v1044_v2 = vld [vmem:[%s2158_s11 + $0x228] sm:$0xff] }
 0x2ba   :  { %v490_v5 = vadd.f32 %v489_v3, %v488_v4  ;;  %v1102_v3 = vld [vmem:[%s2158_s11 + $0x3f8] sm:$0xff]  ;;  %v1095_v4 = vld [vmem:[%s2158_s11 + $0x3c0] sm:$0xff] }
 0x2bb   :  { %861 = vmatpush.msrb.mxu0 %v1102_v3  ;;  %802 = vmatpush.msrb.mxu1 %v1095_v4  ;;  %v1045_v3 = vld [vmem:[%s2158_s11 + $0x230] sm:$0xff] }
 0x2bc   :  { %vm491_vm14 = vcmp.ge.f32.partialorder %v490_v5, 0.0  ;;  %v492_v6 = vmul.f32 0.01, %v490_v5 }
 0x2be   :  { %v1670_v7 = vsel %vm491_vm14, %v490_v5, %v492_v6  ;;  %v1096_v5 = vld [vmem:[%s2158_s11 + $0x3c8] sm:$0xff]  ;;  %v1097_v6 = vld [vmem:[%s2158_s11 + $0x3d0] sm:$0xff]  ;;  %vm992_vm14 = vmor %vm991_vm12, %vm990_vm11 }
 0x2bf   :  { %618 = vmatmul.f32.vlgmr.msrb.gmra.mxu3 %v1670_v7  ;;  %822 = vmatpush.msrb.mxu2 %v1096_v5  ;;  %v1046_v5 = vld [vmem:[%s2158_s11 + $0x238] sm:$0xff] }
 0x2c0   :  { %842 = vmatpush.msra.mxu3 %v1097_v6  ;;  %v1039_v6 = vld [vmem:[%s2158_s11 + $0x200] sm:$0xff] }
 0x342   :  { %v619_v11 = vpop.f32.mrf.mxu3 }
 0x343   :  { %v620_v12 = vadd.f32 %v619_v11, %v599_v8  ;;  %v1098_v8 = vld [vmem:[%s2158_s11 + $0x3d8] sm:$0xff]  ;;  %v1092_v11 = vld [vmem:[%s2158_s11 + $0x3a8] sm:$0xff] }
 0x344   :  { %862 = vmatpush.msrb.mxu0 %v1098_v8  ;;  %823 = vmatpush.msrb.mxu2 %v1092_v11  ;;  %v1040_v8 = vld [vmem:[%s2158_s11 + $0x208] sm:$0xff] }
 0x345   :  { %v623_v13 = vadd.f32 %v622_v10, %v620_v12  ;;  %v1091_v10 = vld [vmem:[%s2158_s11 + $0x3a0] sm:$0xff]  ;;  %v1093_v12 = vld [vmem:[%s2158_s11 + $0x3b0] sm:$0xff] }
 0x346   :  { %803 = vmatpush.msrb.mxu1 %v1091_v10  ;;  %843 = vmatpush.msra.mxu3 %v1093_v12  ;;  %v1041_v10 = vld [vmem:[%s2158_s11 + $0x210] sm:$0xff]  ;;  %v1042_v12 = vld [vmem:[%s2158_s11 + $0x218] sm:$0xff] }
 0x347   :  { %v624_v14 = vsel %vm375_vm5, %v623_v13, 0.0 }
 0x348   :  { %v625_v15 = vrot.slane %v624_v14, 4  ;;  %804 = vmatpush.msrb.mxu1 %v1087_v17  ;;  %v555_v17 = vld [vmem:[%s2158_s11 + $0x1e8] sm:$0xff] }
 0x34a   :  { %v626_v18 = vadd.f32 %v625_v15, %v624_v14  ;;  %v1088_v14 = vld [vmem:[%s2158_s11 + $0x388] sm:$0xff]  ;;  %v1089_v15 = vld [vmem:[%s2158_s11 + $0x390] sm:$0xff] }
 0x34b   :  { %824 = vmatpush.msrb.mxu2 %v1088_v14  ;;  %844 = vmatpush.msra.mxu3 %v1089_v15  ;;  %v556_v14 = vld [vmem:[%s2158_s11 + $0x1f0] sm:$0xff]  ;;  %v557_v15 = vld [vmem:[%s2158_s11 + $0x1f8] sm:$0xff] }
 0x34c   :  { %v627_v20 = vrot.slane %v626_v18, 2 }
 0x34d   :  { %825 = vmatpush.msrb.mxu2 %v1084_v19  ;;  %v551_v19 = vld [vmem:[%s2158_s11 + $0x1c8] sm:$0xff] }
 0x34e   :  { %v628_v22 = vadd.f32 %v627_v20, %v626_v18  ;;  %v1083_v18 = vld [vmem:[%s2158_s11 + $0x360] sm:$0xff]  ;;  %v1085_v20 = vld [vmem:[%s2158_s11 + $0x370] sm:$0xff] }
 0x34f   :  { %805 = vmatpush.msrb.mxu1 %v1083_v18  ;;  %845 = vmatpush.msra.mxu3 %v1085_v20  ;;  %v550_v18 = vld [vmem:[%s2158_s11 + $0x1c0] sm:$0xff]  ;;  %v552_v20 = vld [vmem:[%s2158_s11 + $0x1d0] sm:$0xff] }
 0x350   :  { %v629_v24 = vrot.slane %v628_v22, 1  ;;  %826 = vmatpush.msrb.mxu2 %v1080_v23  ;;  %v546_v23 = vld [vmem:[%s2158_s11 + $0x1a0] sm:$0xff] }
 0x352   :  { %v630_v26 = vadd.f32 %v629_v24, %v628_v22  ;;  %v1079_v22 = vld [vmem:[%s2158_s11 + $0x340] sm:$0xff]  ;;  %v1081_v24 = vld [vmem:[%s2158_s11 + $0x350] sm:$0xff]  ;;  %827 = vmatpush.msrb.mxu2 %v1076_v27 }
 0x353   :  { %806 = vmatpush.msrb.mxu1 %v1079_v22  ;;  %846 = vmatpush.msra.mxu3 %v1081_v24  ;;  %v547_v24 = vld [vmem:[%s2158_s11 + $0x1a8] sm:$0xff] }
 0x354   :  { %v631_v28 = vmul.f32 %v630_v26, %v1564_v40  ;;  %v1075_v26 = vld [vmem:[%s2158_s11 + $0x320] sm:$0xff]  ;;  %828 = vmatpush.msrb.mxu2 %v1072_v31  ;;  %v545_v31 = vld [vmem:[%s2158_s11 + $0x198] sm:$0xff] }
 0x355   :  { %807 = vmatpush.msrb.mxu1 %v1075_v26  ;;  %v549_v26 = vld [vmem:[%s2158_s11 + $0x1b8] sm:$0xff] }
 0x356   :  { %v632_v30 = vsub.f32 %v623_v13, %v631_v28  ;;  %v1094_v13 = vld [vmem:[%s2158_s11 + $0x3b8] sm:$0xff]  ;;  %v1077_v28 = vld [vmem:[%s2158_s11 + $0x330] sm:$0xff]  ;;  %829 = vmatpush.msrb.mxu2 %v1068_v35 }
 0x357   :  { %863 = vmatpush.msrb.mxu0 %v1094_v13  ;;  %847 = vmatpush.msra.mxu3 %v1077_v28  ;;  %v554_v13 = vld [vmem:[%s2158_s11 + $0x1e0] sm:$0xff]  ;;  %v540_v35 = vld [vmem:[%s2158_s11 + $0x170] sm:$0xff] }
 0x358   :  { %v633_v34 = vmul.f32 %v632_v30, %v632_v30  ;;  %v542_v28 = vld [vmem:[%s2158_s11 + $0x180] sm:$0xff] }
 0x359   :  { %864 = vmatpush.msrb.mxu0 %v1090_v16 }
 0x35a   :  { %v634_v33 = vsel %vm375_vm5, %v633_v34, 0.0  ;;  %v1073_v34 = vld [vmem:[%s2158_s11 + $0x310] sm:$0xff] }
 0x35b   :  { %v635_v36 = vrot.slane %v634_v33, 4  ;;  %865 = vmatpush.msrb.mxu0 %v1086_v21  ;;  %848 = vmatpush.msra.mxu3 %v1073_v34  ;;  %v553_v21 = vld [vmem:[%s2158_s11 + $0x1d8] sm:$0xff] }
 0x35d   :  { %v636_v38 = vadd.f32 %v635_v36, %v634_v33  ;;  %866 = vmatpush.msrb.mxu0 %v1082_v25  ;;  %v1067_v33 = vld [vmem:[%s2158_s11 + $0x2e0] sm:$0xff]  ;;  %v1069_v36 = vld [vmem:[%s2158_s11 + $0x2f0] sm:$0xff] }
 0x35e   :  { %849 = vmatpush.msra.mxu3 %v1069_v36  ;;  %v548_v25 = vld [vmem:[%s2158_s11 + $0x1b0] sm:$0xff]  ;;  %v541_v36 = vld [vmem:[%s2158_s11 + $0x178] sm:$0xff] }
 0x35f   :  { %v637_v41 = vrot.slane %v636_v38, 2  ;;  %867 = vmatpush.msrb.mxu0 %v1078_v29  ;;  %v543_v29 = vld [vmem:[%s2158_s11 + $0x188] sm:$0xff] }
 0x360   :  { %850 = vmatpush.msra.mxu3 %v1065_v42  ;;  %v537_v42 = vld [vmem:[%s2158_s11 + $0x158] sm:$0xff] }
 0x361   :  { %v638_v44 = vadd.f32 %v637_v41, %v636_v38  ;;  %868 = vmatpush.msrb.mxu0 %v1074_v32  ;;  %v678_v38 = vperm.slane %v1676_v9, 3  ;;  %v1064_v41 = vld [vmem:[%s2158_s11 + $0x2c8] sm:$0xff]  ;;  %v538_v32 = vld [vmem:[%s2158_s11 + $0x160] sm:$0xff] }
 0x362   :  { %830 = vmatpush.msrb.mxu2 %v1064_v41  ;;  %v536_v41 = vld [vmem:[%s2158_s11 + $0x150] sm:$0xff] }
 0x363   :  { %v639_v46 = vrot.slane %v638_v44, 1  ;;  %869 = vmatpush.msrb.mxu0 %v1070_v37 }
 0x364   :  { %831 = vmatpush.msrb.mxu2 %v1060_v45  ;;  %v531_v45 = vld [vmem:[%s2158_s11 + $0x128] sm:$0xff] }
 0x365   :  { %v640_v47 = vadd.f32 %v639_v46, %v638_v44  ;;  %870 = vmatpush.msrb.mxu0 %v1066_v43  ;;  %v1059_v44 = vld [vmem:[%s2158_s11 + $0x2a0] sm:$0xff]  ;;  %v1061_v46 = vld [vmem:[%s2158_s11 + $0x2b0] sm:$0xff] }
 0x366   :  { %851 = vmatpush.msra.mxu3 %v1061_v46  ;;  %v532_v46 = vld [vmem:[%s2158_s11 + $0x130] sm:$0xff] }
 0x367   :  { %v641_v48 = vmul.f32 %v640_v47, %v1564_v40 }
 0x369   :  { %v642_v49 = vadd.f32 1e-05, %v641_v48  ;;  %v1062_v48 = vld [vmem:[%s2158_s11 + $0x2b8] sm:$0xff] }
 0x36a   :  { %871 = vmatpush.msrb.mxu0 %v1062_v48  ;;  %v533_v48 = vld [vmem:[%s2158_s11 + $0x138] sm:$0xff] }
 0x36b   :  { %1110 = vrsqrt.f32 %v642_v49  ;;  %vm649_vm0 = vweird.f32 %v642_v49 }
 0x371   :  { %v1111_v50 = vpop.eup %1110 }
 0x372   :  { %v644_v51 = vmul.f32 %v1111_v50, %v642_v49  ;;  %vm650_vm15 = vweird.f32 %v1111_v50 }
 0x373   :  { %vm651_vm1 = vmor %vm649_vm0, %vm650_vm15 }
 0x374   :  { %v645_v52 = vmul.f32 %v1111_v50, %v644_v51  ;;  %v1056_v51 = vld [vmem:[%s2158_s11 + $0x288] sm:$0xff] }
 0x375   :  { %832 = vmatpush.msrb.mxu2 %v1056_v51  ;;  %v528_v51 = vld [vmem:[%s2158_s11 + $0x110] sm:$0xff] }
 0x376   :  { %v646_v53 = vmul.f32 0.5, %v645_v52  ;;  %v1057_v52 = vld [vmem:[%s2158_s11 + $0x290] sm:$0xff] }
 0x377   :  { %852 = vmatpush.msra.mxu3 %v1057_v52 }
 0x378   :  { %v647_v54 = vsub.f32 1.5, %v646_v53  ;;  %v1058_v53 = vld [vmem:[%s2158_s11 + $0x298] sm:$0xff] }
 0x379   :  { %872 = vmatpush.msrb.mxu0 %v1058_v53  ;;  %v529_v53 = vld [vmem:[%s2158_s11 + $0x118] sm:$0xff] }
 0x37a   :  { %v648_v55 = vmul.f32 %v1111_v50, %v647_v54 }
 0x37c   :  { %v652_v57 = vsel %vm651_vm1, %v1111_v50, %v648_v55  ;;  %v1055_v50 = vld [vmem:[%s2158_s11 + $0x280] sm:$0xff] }
 0x37d   :  { %v653_v58 = vmul.f32 %v652_v57, %v632_v30  ;;  %v1071_v30 = vld [vmem:[%s2158_s11 + $0x300] sm:$0xff]  ;;  %v1053_v57 = vld [vmem:[%s2158_s11 + $0x270] sm:$0xff] }
 0x37e   :  { %808 = vmatpush.msrb.mxu1 %v1071_v30  ;;  %v1051_v55 = vld [vmem:[%s2158_s11 + $0x260] sm:$0xff]  ;;  %853 = vmatpush.msra.mxu3 %v1053_v57  ;;  %v544_v30 = vld [vmem:[%s2158_s11 + $0x190] sm:$0xff] }
 0x37f   :  { %v655_v60 = vmul.f32 %v654_v56, %v653_v58  ;;  %v1052_v56 = vld [vmem:[%s2158_s11 + $0x268] sm:$0xff] }
 0x380   :  { %809 = vmatpush.msrb.mxu1 %v1067_v33  ;;  %833 = vmatpush.msrb.mxu2 %v1052_v56  ;;  %v539_v33 = vld [vmem:[%s2158_s11 + $0x168] sm:$0xff]  ;;  %v524_v56 = vld [vmem:[%s2158_s11 + $0xf0] sm:$0xff] }
 0x381   :  { %v657_v61 = vadd.f32 %v656_v59, %v655_v60  ;;  %v1054_v59 = vld [vmem:[%s2158_s11 + $0x278] sm:$0xff]  ;;  %v1047_v60 = vld [vmem:[%s2158_s11 + $0x240] sm:$0xff] }
 0x382   :  { %810 = vmatpush.msrb.mxu1 %v1063_v39  ;;  %873 = vmatpush.msrb.mxu0 %v1054_v59  ;;  %v535_v39 = vld [vmem:[%s2158_s11 + $0x148] sm:$0xff]  ;;  %v518_v59 = vld [vmem:[%s2158_s11 + $0xc0] sm:$0xff] }
 0x383   :  { %vm658_vm2 = vcmp.ge.f32.partialorder %v657_v61, 0.0  ;;  %v659_v62 = vmul.f32 0.01, %v657_v61 }
 0x384   :  { %811 = vmatpush.msrb.mxu1 %v1059_v44  ;;  %874 = vmatpush.msrb.mxu0 %v1050_v0  ;;  %v530_v44 = vld [vmem:[%s2158_s11 + $0x120] sm:$0xff] }
 0x385   :  { %v660_v63 = vsel %vm658_vm2, %v657_v61, %v659_v62  ;;  %v1048_v61 = vld [vmem:[%s2158_s11 + $0x248] sm:$0xff]  ;;  %v1049_v62 = vld [vmem:[%s2158_s11 + $0x250] sm:$0xff]  ;;  %v514_v0 = vld [vmem:[%s2158_s11 + $0xa0] sm:$0xff] }
 0x386   :  { %695 = vmatmul.f32.vlgmr.msra.gmra.mxu0 %v660_v63  ;;  %812 = vmatpush.msrb.mxu1 %v1055_v50  ;;  %v527_v50 = vld [vmem:[%s2158_s11 + $0x108] sm:$0xff] }
 0x387   :  { %834 = vmatpush.msrb.mxu2 %v1048_v61  ;;  %854 = vmatpush.msra.mxu3 %v1049_v62  ;;  %v520_v61 = vld [vmem:[%s2158_s11 + $0xd0] sm:$0xff]  ;;  %v521_v62 = vld [vmem:[%s2158_s11 + $0xd8] sm:$0xff] }
 0x388   :  { %813 = vmatpush.msrb.mxu1 %v1051_v55  ;;  %875 = vmatpush.msrb.mxu0 %v1046_v5  ;;  %v523_v55 = vld [vmem:[%s2158_s11 + $0xe8] sm:$0xff]  ;;  %v510_v5 = vld [vmem:[%s2158_s11 + $0x80] sm:$0xff] }
 0x389   :  { %835 = vmatpush.msrb.mxu2 %v1044_v2  ;;  %855 = vmatpush.msra.mxu3 %v1045_v3  ;;  %v516_v2 = vld [vmem:[%s2158_s11 + $0xb0] sm:$0xff]  ;;  %v517_v3 = vld [vmem:[%s2158_s11 + $0xb8] sm:$0xff] }
 0x38a   :  { %814 = vmatpush.msrb.mxu1 %v1047_v60  ;;  %876 = vmatpush.msrb.mxu0 %v1042_v12  ;;  %v519_v60 = vld [vmem:[%s2158_s11 + $0xc8] sm:$0xff] }
 0x38b   :  { %836 = vmatpush.msrb.mxu2 %v1040_v8  ;;  %856 = vmatpush.msra.mxu3 %v1041_v10  ;;  %v512_v8 = vld [vmem:[%s2158_s11 + $0x90] sm:$0xff]  ;;  %v513_v10 = vld [vmem:[%s2158_s11 + $0x98] sm:$0xff] }
 0x38c   :  { %815 = vmatpush.msrb.mxu1 %v1043_v1  ;;  %941 = vmatpush.msra.mxu0 %v557_v15  ;;  %v515_v1 = vld [vmem:[%s2158_s11 + $0xa8] sm:$0xff]  ;;  %v502_v15 = vld [vmem:[%s2158_s11 + $0x40] sm:$0xff] }
 0x38d   :  { %901 = vmatpush.msra.mxu2 %v555_v17  ;;  %921 = vmatpush.msrb.mxu3 %v556_v14  ;;  %v507_v17 = vld [vmem:[%s2158_s11 + $0x68] sm:$0xff]  ;;  %v508_v14 = vld [vmem:[%s2158_s11 + $0x70] sm:$0xff] }
 0x38e   :  { %816 = vmatpush.msrb.mxu1 %v1039_v6  ;;  %942 = vmatpush.msra.mxu0 %v553_v21  ;;  %v511_v6 = vld [vmem:[%s2158_s11 + $0x88] sm:$0xff]  ;;  %v498_v21 = vld [vmem:[%s2158_s11 + $0x20] sm:$0xff] }
 0x38f   :  { %902 = vmatpush.msra.mxu2 %v551_v19  ;;  %922 = vmatpush.msrb.mxu3 %v552_v20  ;;  %v504_v19 = vld [vmem:[%s2158_s11 + $0x50] sm:$0xff]  ;;  %v505_v20 = vld [vmem:[%s2158_s11 + $0x58] sm:$0xff] }
 0x390   :  { %881 = vmatpush.msra.mxu1 %v554_v13  ;;  %943 = vmatpush.msra.mxu0 %v549_v26  ;;  %v506_v13 = vld [vmem:[%s2158_s11 + $0x60] sm:$0xff]  ;;  %v495_v26 = vld [vmem:[%s2158_s11 + $0x8] sm:$0xff] }
 0x391   :  { %903 = vmatpush.msra.mxu2 %v547_v24  ;;  %923 = vmatpush.msrb.mxu3 %v548_v25  ;;  %v501_v24 = vld [vmem:[%s2158_s11 + $0x38] sm:$0xff]  ;;  %v494_v25 = vld [vmem:[%s2158_s11] sm:$0xff] }
 0x392   :  { %882 = vmatpush.msra.mxu1 %v550_v18  ;;  %944 = vmatpush.msra.mxu0 %v545_v31 }
 0x393   :  { %904 = vmatpush.msra.mxu2 %v543_v29  ;;  %924 = vmatpush.msrb.mxu3 %v544_v30 }
 0x394   :  { %883 = vmatpush.msra.mxu1 %v546_v23  ;;  %945 = vmatpush.msra.mxu0 %v541_v36  ;;  %v500_v23 = vld [vmem:[%s2158_s11 + $0x30] sm:$0xff]  ;;  %v729_v36 = vperm.slane %v1676_v9, 4 }
 0x395   :  { %905 = vmatpush.msra.mxu2 %v539_v33  ;;  %925 = vmatpush.msrb.mxu3 %v540_v35 }
 0x396   :  { %884 = vmatpush.msra.mxu1 %v542_v28  ;;  %946 = vmatpush.msra.mxu0 %v537_v42  ;;  %v497_v28 = vld [vmem:[%s2158_s11 + $0x18] sm:$0xff] }
 0x397   :  { %906 = vmatpush.msra.mxu2 %v535_v39  ;;  %926 = vmatpush.msrb.mxu3 %v536_v41  ;;  %v731_v39 = vperm.slane %v1676_v9, 5 }
 0x398   :  { %885 = vmatpush.msra.mxu1 %v538_v32  ;;  %947 = vmatpush.msra.mxu0 %v533_v48 }
 0x399   :  { %907 = vmatpush.msra.mxu2 %v531_v45  ;;  %927 = vmatpush.msrb.mxu3 %v532_v46 }
 0x39a   :  { %948 = vmatpush.msra.mxu0 %v529_v53 }
 0x39b   :  { %908 = vmatpush.msra.mxu2 %v527_v50  ;;  %928 = vmatpush.msrb.mxu3 %v528_v51 }
 0x39d   :  { %909 = vmatpush.msra.mxu2 %v523_v55  ;;  %929 = vmatpush.msrb.mxu3 %v524_v56 }
 0x39f   :  { %910 = vmatpush.msra.mxu2 %v519_v60  ;;  %930 = vmatpush.msrb.mxu3 %v520_v61 }
 0x3a1   :  { %911 = vmatpush.msra.mxu2 %v515_v1  ;;  %931 = vmatpush.msrb.mxu3 %v516_v2 }
 0x3a3   :  { %912 = vmatpush.msra.mxu2 %v511_v6  ;;  %932 = vmatpush.msrb.mxu3 %v512_v8 }
 0x3a5   :  { %913 = vmatpush.msra.mxu2 %v507_v17  ;;  %933 = vmatpush.msrb.mxu3 %v508_v14 }
 0x3a7   :  { %934 = vmatpush.msrb.mxu3 %v504_v19 }
 0x3a9   :  { %935 = vmatpush.msrb.mxu3 %v500_v23 }
 0x403   :  { %v696_v47 = vpop.f32.mrf.mxu0 }
 0x404   :  { %v1866_v49 = vadd.f32 %v696_v47, %v678_v38  ;;  %v534_v38 = vld [vmem:[%s2158_s11 + $0x140] sm:$0xff] }
 0x405   :  { %886 = vmatpush.msra.mxu1 %v534_v38 }
 0x406   :  { %v699_v54 = vsel %vm375_vm5, %v1866_v49, 0.0 }
 0x407   :  { %v700_v58 = vrot.slane %v699_v54, 4  ;;  %887 = vmatpush.msra.mxu1 %v530_v44 }
 0x409   :  { %v701_v63 = vadd.f32 %v700_v58, %v699_v54  ;;  %v522_v54 = vld [vmem:[%s2158_s11 + $0xe0] sm:$0xff]  ;;  %v525_v58 = vld [vmem:[%s2158_s11 + $0xf8] sm:$0xff] }
 0x40a   :  { %949 = vmatpush.msra.mxu0 %v525_v58 }
 0x40b   :  { %v702_v4 = vrot.slane %v701_v63, 2 }
 0x40c   :  { %950 = vmatpush.msra.mxu0 %v521_v62 }
 0x40d   :  { %v703_v11 = vadd.f32 %v702_v4, %v701_v63 }
 0x40e   :  { %951 = vmatpush.msra.mxu0 %v517_v3 }
 0x40f   :  { %v704_v16 = vrot.slane %v703_v11, 1 }
 0x410   :  { %952 = vmatpush.msra.mxu0 %v513_v10 }
 0x411   :  { %v705_v22 = vadd.f32 %v704_v16, %v703_v11  ;;  %v503_v16 = vld [vmem:[%s2158_s11 + $0x48] sm:$0xff] }
 0x412   :  { %914 = vmatpush.msra.mxu2 %v503_v16 }
 0x413   :  { %v706_v27 = vmul.f32 %v705_v22, %v1564_v40  ;;  %v499_v22 = vld [vmem:[%s2158_s11 + $0x28] sm:$0xff] }
 0x414   :  { %915 = vmatpush.msra.mxu2 %v499_v22 }
 0x415   :  { %v1980_v34 = vsub.f32 %v1866_v49, %v706_v27  ;;  %v526_v49 = vld [vmem:[%s2158_s11 + $0x100] sm:$0xff]  ;;  %v496_v27 = vld [vmem:[%s2158_s11 + $0x10] sm:$0xff] }
 0x416   :  { %888 = vmatpush.msra.mxu1 %v526_v49  ;;  %916 = vmatpush.msra.mxu2 %v495_v26 }
 0x417   :  { %v708_v37 = vmul.f32 %v1980_v34, %v1980_v34  ;;  %936 = vmatpush.msrb.mxu3 %v496_v27 }
 0x418   :  { %889 = vmatpush.msra.mxu1 %v522_v54 }
 0x419   :  { %v709_v43 = vsel %vm375_vm5, %v708_v37, 0.0 }
 0x41a   :  { %v710_v47 = vrot.slane %v709_v43, 4  ;;  %890 = vmatpush.msra.mxu1 %v518_v59 }
 0x41c   :  { %v711_v52 = vadd.f32 %v710_v47, %v709_v43  ;;  %891 = vmatpush.msra.mxu1 %v514_v0  ;;  %v961_v47 = vld [vmem:[%s2159_s12] sm:$0xf] }
 0x41d   :  { %v966_v51 = vperm.slane %v961_v47, 3  ;;  %v965_v54 = vperm.slane %v961_v47, 2  ;;  %v963_v56 = vperm.slane %v961_v47, 0 }
 0x41e   :  { %v712_v57 = vrot.slane %v711_v52, 2  ;;  %892 = vmatpush.msra.mxu1 %v510_v5 }
 0x420   :  { %v713_v63 = vadd.f32 %v712_v57, %v711_v52  ;;  %893 = vmatpush.msra.mxu1 %v506_v13  ;;  %v964_v52 = vperm.slane %v961_v47, 1 }
 0x422   :  { %v714_v4 = vrot.slane %v713_v63, 1  ;;  %894 = vmatpush.msra.mxu1 %v502_v15 }
 0x424   :  { %v715_v11 = vadd.f32 %v714_v4, %v713_v63  ;;  %895 = vmatpush.msra.mxu1 %v498_v21 }
 0x426   :  { %v716_v12 = vmul.f32 %v715_v11, %v1564_v40  ;;  %v509_v40 = vld [vmem:[%s2158_s11 + $0x78] sm:$0xff]  ;;  %896 = vmatpush.msra.mxu1 %v494_v25 }
 0x427   :  { %953 = vmatpush.msra.mxu0 %v509_v40 }
 0x428   :  { %v717_v18 = vadd.f32 1e-05, %v716_v12 }
 0x429   :  { %954 = vmatpush.msra.mxu0 %v505_v20 }
 0x42a   :  { %1112 = vrsqrt.f32 %v717_v18  ;;  %vm724_vm4 = vweird.f32 %v717_v18 }
 0x42b   :  { %955 = vmatpush.msra.mxu0 %v501_v24 }
 0x42d   :  { %956 = vmatpush.msra.mxu0 %v497_v28 }
 0x430   :  { %v1113_v29 = vpop.eup %1112 }
 0x431   :  { %v719_v30 = vmul.f32 %v1113_v29, %v717_v18  ;;  %vm725_vm3 = vweird.f32 %v1113_v29 }
 0x432   :  { %vm726_vm6 = vmor %vm724_vm4, %vm725_vm3 }
 0x433   :  { %v720_v31 = vmul.f32 %v1113_v29, %v719_v30 }
 0x435   :  { %v721_v32 = vmul.f32 0.5, %v720_v31 }
 0x437   :  { %v722_v33 = vsub.f32 1.5, %v721_v32 }
 0x439   :  { %v723_v35 = vmul.f32 %v1113_v29, %v722_v33 }
 0x43b   :  { %v727_v37 = vsel %vm726_vm6, %v1113_v29, %v723_v35 }
 0x43c   :  { %v728_v38 = vmul.f32 %v727_v37, %v1980_v34 }
 0x43e   :  { %v730_v41 = vmul.f32 %v729_v36, %v728_v38 }
 0x440   :  { %v732_v42 = vadd.f32 %v731_v39, %v730_v41 }
 0x442   :  { %vm733_vm7 = vcmp.ge.f32.partialorder %v732_v42, 0.0  ;;  %v734_v43 = vmul.f32 0.01, %v732_v42 }
 0x444   :  { %v735_v44 = vsel %vm733_vm7, %v732_v42, %v734_v43 }
 0x445   :  { %817 = vmatmul.f32.vlgmr.msrb.gmra.mxu1 %v735_v44  ;;  %837 = vmatmul.f32.vlgmr.msrb.gmra.mxu2 %v735_v44 }
 0x446   :  { %857 = vmatmul.f32.vlgmr.msra.gmra.mxu3 %v735_v44  ;;  %877 = vmatmul.f32.vlgmr.msrb.gmra.mxu0 %v735_v44 }
 0x44d   :  { %897 = vmatmul.f32.vlgmr.msra.gmra.mxu1 %v1670_v7  ;;  %917 = vmatmul.f32.vlgmr.msra.gmra.mxu2 %v1670_v7 }
 0x44e   :  { %937 = vmatmul.f32.vlgmr.msrb.gmra.mxu3 %v1670_v7  ;;  %957 = vmatmul.f32.vlgmr.msra.gmra.mxu0 %v1670_v7 }
 0x4c2   :  { %v818_v45 = vpop.f32.mrf.mxu1 }
 0x4c3   :  { %v878_v34 = vpop.f32.mrf.mxu0 }
 0x4c8   :  { %v838_v9 = vpop.f32.mrf.mxu2 }
 0x4c9   :  { %v858_v46 = vpop.f32.mrf.mxu3 }
 0x4ca   :  { %v898_v49 = vpop.f32.mrf.mxu1 }
 0x4cb   :  { %v958_v48 = vpop.f32.mrf.mxu0  ;;  %v899_v55 = vadd.f32 %v898_v49, %v818_v45 }
 0x4cc   :  { %v959_v50 = vadd.f32 %v958_v48, %v878_v34 }
 0x4cd   :  { %v971_v62 = vadd.f32 %v963_v56, %v899_v55 }
 0x4ce   :  { %v974_v58 = vadd.f32 %v966_v51, %v959_v50 }
 0x4d0   :  { %v918_v53 = vpop.f32.mrf.mxu2  ;;  %v981_v0 = vrot.slane %v974_v58, 2 }
 0x4d1   :  { %v919_v57 = vadd.f32 %v918_v53, %v838_v9  ;;  %v938_v7 = vpop.f32.mrf.mxu3 }
 0x4d2   :  { %v939_v59 = vadd.f32 %v938_v7, %v858_v46 }
 0x4d3   :  { %v972_v60 = vadd.f32 %v964_v52, %v919_v57 }
 0x4d4   :  { %v973_v61 = vadd.f32 %v965_v54, %v939_v59 }
 0x4d5   :  { %v979_v63 = vrot.slane %v972_v60, 6 }
 0x4d6   :  { %v980_v1 = vrot.slane %v973_v61, 4 }
 0x4d7   :  { %v982_v2 = vsel %vm375_vm5, %v971_v62, %v979_v63 }
 0x4d8   :  { %v984_v3 = vsel %vm983_vm9, %v980_v1, %v981_v0 }
 0x4d9   :  { %v986_v4 = vsel %vm985_vm13, %v982_v2, %v984_v3 }
 0x4da   :  { %993 = vst.msk [vmem:[%s2160_s13] sm:$0xff] %vm992_vm14, %v986_v4 }

</bundles_post_ra>
